<compile_context>
chip_gen: v5e
topology: v5e:2x2
jax: 0.10.0
libtpu: 0.0.40
codegen_flags: <defaults>
</compile_context>

<pallas_src>
import jax
import jax.numpy as jnp
from jax.experimental import pallas as pl
from jax.experimental.pallas import tpu as pltpu

NCLASSES = 500
HIDDEN_SIZE = 1024          # dinov2-large hidden_size
HIDDEN_DIM = 512            # head hidden dim (spec)
LN_EPS = 1e-5               # torch nn.LayerNorm default


def _round_up(x: int, m: int) -> int:
    return (x + m - 1) // m * m


NCLASSES_PAD = _round_up(NCLASSES, 128)          # 512: lane-dense output width
PW = max(HIDDEN_DIM, NCLASSES_PAD)               # width of the stacked-vector block


# ----------------------------------------------------------------------------
# Fused head kernel: GEMM1 + bias + LayerNorm + GELU + GEMM2 + bias
# ----------------------------------------------------------------------------
def _head_kernel(x_ref, w1_ref, w2_ref, p_ref, o_ref):
    # p_ref rows: [b1, ln_gamma, ln_beta, b2_padded, 0...], zero-padded to PW lanes.
    p = p_ref[...]
    b1 = p[0:1, :HIDDEN_DIM]
    gamma = p[1:2, :HIDDEN_DIM]
    beta = p[2:3, :HIDDEN_DIM]
    b2 = p[3:4, :NCLASSES_PAD]

    # Linear 1: bf16 MXU inputs, f32 accumulate.  x is cast in-kernel (free VPU
    # op) rather than in the wrapper, which would add an extra HBM round trip.
    h = jnp.dot(x_ref[...].astype(jnp.bfloat16), w1_ref[...],
                preferred_element_type=jnp.float32) + b1

    # LayerNorm over the feature (lane) dimension, in f32.
    mu = jnp.mean(h, axis=-1, keepdims=True)
    c = h - mu
    var = jnp.mean(c * c, axis=-1, keepdims=True)
    hn = c * jax.lax.rsqrt(var + LN_EPS) * gamma + beta

    # GELU (tanh approximation; tanh goes to the EUP slot, effectively free here).
    g = 0.5 * hn * (1.0 + jnp.tanh(0.7978845608028654 * (hn + 0.044715 * hn * hn * hn)))

    # Dropout(p=0.3) is identity in inference mode.
    # Linear 2 (output padded 500 -> 512: lane-dense, unmasked stores).
    o_ref[...] = (
        jnp.dot(g.astype(jnp.bfloat16), w2_ref[...],
                preferred_element_type=jnp.float32) + b2
    ).astype(o_ref.dtype)


# ----------------------------------------------------------------------------
# One-time parameter preparation (pad / cast / stack) — NOT on the per-call path
# ----------------------------------------------------------------------------
def prepare_head_params(params):
    w1 = params["w1"].astype(jnp.bfloat16)                               # (1024, 512)
    w2 = jnp.zeros((HIDDEN_DIM, NCLASSES_PAD), jnp.bfloat16)
    w2 = w2.at[:, :NCLASSES].set(params["w2"].astype(jnp.bfloat16))      # (512, 512)
    pvec = jnp.zeros((8, PW), jnp.float32)                               # full (8,128) tile
    pvec = pvec.at[0, :HIDDEN_DIM].set(params["b1"].astype(jnp.float32))
    pvec = pvec.at[1, :HIDDEN_DIM].set(params["ln_gamma"].astype(jnp.float32))
    pvec = pvec.at[2, :HIDDEN_DIM].set(params["ln_beta"].astype(jnp.float32))
    pvec = pvec.at[3, :NCLASSES].set(params["b2"].astype(jnp.float32))
    return {"w1": w1, "w2": w2, "pvec": pvec}


def dinov2_head(cls_features, prep, *, block_m: int = 256):
    """cls_features: (B, 1024) f32 CLS-token features -> logits (B, 500) f32.

    block_m tuning: v6e can go to 512 (single TC, fewer grid steps); v7x should
    keep >= 2 grid steps for large B so both TensorCores engage; v5e is fine at
    <= 256 (its MXU M-dim is 128 and bf16 weights keep VMEM well under budget).
    """
    B, D = cls_features.shape
    assert D == HIDDEN_SIZE

    if B <= block_m:
        bm = B                      # single block == full array dim (no 8-divisibility needed)
        grid_m = 1
    else:
        bm = block_m                # multiple of 8; ragged tail is masked by Pallas
        grid_m = pl.cdiv(B, bm)

    out = pl.pallas_call(
        _head_kernel,
        out_shape=jax.ShapeDtypeStruct((B, NCLASSES_PAD), jnp.float32),
        grid=(grid_m,),
        in_specs=[
            pl.BlockSpec((bm, HIDDEN_SIZE), lambda i: (i, 0)),
            pl.BlockSpec((HIDDEN_SIZE, HIDDEN_DIM), lambda i: (0, 0)),
            pl.BlockSpec((HIDDEN_DIM, NCLASSES_PAD), lambda i: (0, 0)),
            pl.BlockSpec((8, PW), lambda i: (0, 0)),
        ],
        out_specs=pl.BlockSpec((bm, NCLASSES_PAD), lambda i: (i, 0)),
        # Working set (bf16 weights + double-buffered x/out blocks) < ~8 MiB even
        # at block_m=512 — inside v5e/v6e/v7x default scoped VMEM, so no
        # vmem_limit override and no single-buffered (pl.Buffered(1)) weights.
        compiler_params=pltpu.CompilerParams(dimension_semantics=("parallel",)),
    )(cls_features, prep["w1"], prep["w2"], prep["pvec"])

    return out[:, :NCLASSES]


# ----------------------------------------------------------------------------
# Params + reference
# ----------------------------------------------------------------------------
def init_params(key):
    ks = jax.random.split(key, 4)
    s = 0.02
    return {
        # stored in GEMM orientation (in, out) == torch nn.Linear weight.T
        "w1": s * jax.random.normal(ks[0], (HIDDEN_SIZE, HIDDEN_DIM), jnp.float32),
        "b1": s * jax.random.normal(ks[1], (HIDDEN_DIM,), jnp.float32),
        "ln_gamma": jnp.ones((HIDDEN_DIM,), jnp.float32),
        "ln_beta": jnp.zeros((HIDDEN_DIM,), jnp.float32),
        "w2": s * jax.random.normal(ks[2], (HIDDEN_DIM, NCLASSES), jnp.float32),
        "b2": s * jax.random.normal(ks[3], (NCLASSES,), jnp.float32),
    }


def _ref_forward(x, p):
    # Mirrors the torch module, with the same bf16 MXU-input casts as the kernel
    # so the comparison isolates kernel bugs from dtype rounding.
    h = jnp.dot(x.astype(jnp.bfloat16), p["w1"].astype(jnp.bfloat16),
                preferred_element_type=jnp.float32) + p["b1"]
    mu = h.mean(-1, keepdims=True)
    var = ((h - mu) ** 2).mean(-1, keepdims=True)
    hn = (h - mu) / jnp.sqrt(var + LN_EPS) * p["ln_gamma"] + p["ln_beta"]
    g = 0.5 * hn * (1.0 + jnp.tanh(0.7978845608028654 * (hn + 0.044715 * hn ** 3)))
    return jnp.dot(g.astype(jnp.bfloat16), p["w2"].astype(jnp.bfloat16),
                   preferred_element_type=jnp.float32) + p["b2"]


if __name__ == "__main__":
    key = jax.random.PRNGKey(0)
    pkey, xkey, xkey2 = jax.random.split(key, 3)
    params = init_params(pkey)
    prep = prepare_head_params(params)          # one-time, off the per-call path

    head = jax.jit(dinov2_head)

    # Backbone output stand-in: CLS-token features from dinov2-large, (B, 1024).
    cls_features = jax.random.normal(xkey, (2, HIDDEN_SIZE), jnp.float32)
    logits = jax.block_until_ready(head(cls_features, prep))
    assert logits.shape == (2, NCLASSES), logits.shape
    assert logits.dtype == jnp.float32
    ref = _ref_forward(cls_features, params)
    assert bool(jnp.allclose(logits, ref, atol=2e-3, rtol=2e-3)), "mismatch vs reference (B=2)"

    # Second check exercises the tiled + ragged-tail path (grid = cdiv(20, 8) = 3).
    x2 = jax.random.normal(xkey2, (20, HIDDEN_SIZE), jnp.float32)
    logits2 = jax.block_until_ready(
        jax.jit(lambda x, p: dinov2_head(x, p, block_m=8))(x2, prep))
    ref2 = _ref_forward(x2, params)
    assert logits2.shape == (20, NCLASSES), logits2.shape
    assert bool(jnp.allclose(logits2, ref2, atol=2e-3, rtol=2e-3)), "mismatch vs reference (B=20)"

    print("KERNEL_OK")
</pallas_src>

<mosaic_0001>
module attributes {stable_mosaic.version = 11 : i64} {
  func.func @_head_kernel(%arg0: i32, %arg1: memref<2x1024xf32, #tpu.memory_space<vmem>>, %arg2: memref<1024x512xbf16, #tpu.memory_space<vmem>>, %arg3: memref<512x512xbf16, #tpu.memory_space<vmem>>, %arg4: memref<8x512xf32, #tpu.memory_space<vmem>>, %arg5: memref<2x512xf32, #tpu.memory_space<vmem>>) attributes {dimension_semantics = [#tpu.dimension_semantics<parallel>], iteration_bounds = array<i64: 1>, scalar_prefetch = 0 : i64, scratch_operands = 0 : i64, tpu.core_type = #tpu.core_type<tc>, window_params = [{transform_indices = @transform_0, window_bounds = array<i64: 2, 1024>}, {pipeline_mode = #tpu.pipeline_mode<synchronous>, transform_indices = @transform_1, window_bounds = array<i64: 1024, 512>}, {pipeline_mode = #tpu.pipeline_mode<synchronous>, transform_indices = @transform_2, window_bounds = array<i64: 512, 512>}, {pipeline_mode = #tpu.pipeline_mode<synchronous>, transform_indices = @transform_3, window_bounds = array<i64: 8, 512>}, {transform_indices = @transform_4, window_bounds = array<i64: 2, 512>}]} {
    %c0 = arith.constant 0 : index
    %c0_0 = arith.constant 0 : index
    %0 = vector.load %arg4[%c0, %c0_0] : memref<8x512xf32, #tpu.memory_space<vmem>>, vector<8x512xf32>
    %1 = vector.extract_strided_slice %0 {offsets = [0, 0], sizes = [1, 512], strides = [1, 1]} : vector<8x512xf32> to vector<1x512xf32>
    %2 = vector.extract_strided_slice %0 {offsets = [1, 0], sizes = [1, 512], strides = [1, 1]} : vector<8x512xf32> to vector<1x512xf32>
    %3 = vector.extract_strided_slice %0 {offsets = [2, 0], sizes = [1, 512], strides = [1, 1]} : vector<8x512xf32> to vector<1x512xf32>
    %4 = vector.extract_strided_slice %0 {offsets = [3, 0], sizes = [1, 512], strides = [1, 1]} : vector<8x512xf32> to vector<1x512xf32>
    %c0_1 = arith.constant 0 : index
    %c0_2 = arith.constant 0 : index
    %5 = vector.load %arg1[%c0_1, %c0_2] : memref<2x1024xf32, #tpu.memory_space<vmem>>, vector<2x1024xf32>
    %6 = arith.truncf %5 : vector<2x1024xf32> to vector<2x1024xbf16>
    %c0_3 = arith.constant 0 : index
    %c0_4 = arith.constant 0 : index
    %7 = vector.load %arg2[%c0_3, %c0_4] : memref<1024x512xbf16, #tpu.memory_space<vmem>>, vector<1024x512xbf16>
    %cst = arith.constant dense<0.000000e+00> : vector<2x512xf32>
    %8 = tpu.matmul %6, %7, %cst {dimension_numbers = #tpu.dot_dimension_numbers<[1], [0], [0], [1], [0, 0, 1, 1], [], []>} : vector<2x1024xbf16>, vector<1024x512xbf16>, vector<2x512xf32> -> vector<2x512xf32>
    %9 = vector.broadcast %1 : vector<1x512xf32> to vector<2x512xf32>
    %10 = arith.addf %8, %9 : vector<2x512xf32>
    %cst_5 = arith.constant dense<0.000000e+00> : vector<2xf32>
    %11 = vector.multi_reduction <add>, %10, %cst_5 [1] : vector<2x512xf32> to vector<2xf32>
    %12 = vector.shape_cast %11 : vector<2xf32> to vector<2x1xf32>
    %cst_6 = arith.constant 5.120000e+02 : f32
    %13 = vector.broadcast %cst_6 : f32 to vector<2x1xf32>
    %14 = arith.divf %12, %13 : vector<2x1xf32>
    %15 = vector.broadcast %14 : vector<2x1xf32> to vector<2x512xf32>
    %16 = arith.subf %10, %15 : vector<2x512xf32>
    %17 = arith.mulf %16, %16 : vector<2x512xf32>
    %cst_7 = arith.constant dense<0.000000e+00> : vector<2xf32>
    %18 = vector.multi_reduction <add>, %17, %cst_7 [1] : vector<2x512xf32> to vector<2xf32>
    %19 = vector.shape_cast %18 : vector<2xf32> to vector<2x1xf32>
    %cst_8 = arith.constant 5.120000e+02 : f32
    %20 = vector.broadcast %cst_8 : f32 to vector<2x1xf32>
    %21 = arith.divf %19, %20 : vector<2x1xf32>
    %cst_9 = arith.constant 9.99999974E-6 : f32
    %22 = vector.broadcast %cst_9 : f32 to vector<2x1xf32>
    %23 = arith.addf %21, %22 : vector<2x1xf32>
    %24 = math.rsqrt %23 : vector<2x1xf32>
    %25 = vector.broadcast %24 : vector<2x1xf32> to vector<2x512xf32>
    %26 = arith.mulf %16, %25 : vector<2x512xf32>
    %27 = vector.broadcast %2 : vector<1x512xf32> to vector<2x512xf32>
    %28 = arith.mulf %26, %27 : vector<2x512xf32>
    %29 = vector.broadcast %3 : vector<1x512xf32> to vector<2x512xf32>
    %30 = arith.addf %28, %29 : vector<2x512xf32>
    %cst_10 = arith.constant 5.000000e-01 : f32
    %31 = vector.broadcast %cst_10 : f32 to vector<2x512xf32>
    %32 = arith.mulf %31, %30 : vector<2x512xf32>
    %cst_11 = arith.constant 4.471500e-02 : f32
    %33 = vector.broadcast %cst_11 : f32 to vector<2x512xf32>
    %34 = arith.mulf %33, %30 : vector<2x512xf32>
    %35 = arith.mulf %34, %30 : vector<2x512xf32>
    %36 = arith.mulf %35, %30 : vector<2x512xf32>
    %37 = arith.addf %30, %36 : vector<2x512xf32>
    %cst_12 = arith.constant 0.797884583 : f32
    %38 = vector.broadcast %cst_12 : f32 to vector<2x512xf32>
    %39 = arith.mulf %38, %37 : vector<2x512xf32>
    %40 = math.tanh %39 : vector<2x512xf32>
    %cst_13 = arith.constant 1.000000e+00 : f32
    %41 = vector.broadcast %cst_13 : f32 to vector<2x512xf32>
    %42 = arith.addf %41, %40 : vector<2x512xf32>
    %43 = arith.mulf %32, %42 : vector<2x512xf32>
    %44 = arith.truncf %43 : vector<2x512xf32> to vector<2x512xbf16>
    %c0_14 = arith.constant 0 : index
    %c0_15 = arith.constant 0 : index
    %45 = vector.load %arg3[%c0_14, %c0_15] : memref<512x512xbf16, #tpu.memory_space<vmem>>, vector<512x512xbf16>
    %cst_16 = arith.constant dense<0.000000e+00> : vector<2x512xf32>
    %46 = tpu.matmul %44, %45, %cst_16 {dimension_numbers = #tpu.dot_dimension_numbers<[1], [0], [0], [1], [0, 0, 1, 1], [], []>} : vector<2x512xbf16>, vector<512x512xbf16>, vector<2x512xf32> -> vector<2x512xf32>
    %47 = vector.broadcast %4 : vector<1x512xf32> to vector<2x512xf32>
    %48 = arith.addf %46, %47 : vector<2x512xf32>
    %c0_17 = arith.constant 0 : index
    %c0_18 = arith.constant 0 : index
    %49 = vector.load %arg5[%c0_17, %c0_18] : memref<2x512xf32, #tpu.memory_space<vmem>>, vector<2x512xf32>
    tpu.vector_store %arg5[%c0_17, %c0_18], %48 {strides = array<i32>} : memref<2x512xf32, #tpu.memory_space<vmem>>, vector<2x512xf32>,
    return
  }
  func.func @transform_0(%arg0: i32) -> (i32, i32) {
    %c0_i32 = arith.constant 0 : i32
    %c0_i32_0 = arith.constant 0 : i32
    return %arg0, %c0_i32 : i32, i32
  }
  func.func @transform_1(%arg0: i32) -> (i32, i32) {
    %c0_i32 = arith.constant 0 : i32
    %c0_i32_0 = arith.constant 0 : i32
    %c0_i32_1 = arith.constant 0 : i32
    return %c0_i32, %c0_i32_0 : i32, i32
  }
  func.func @transform_2(%arg0: i32) -> (i32, i32) {
    %c0_i32 = arith.constant 0 : i32
    %c0_i32_0 = arith.constant 0 : i32
    %c0_i32_1 = arith.constant 0 : i32
    return %c0_i32, %c0_i32_0 : i32, i32
  }
  func.func @transform_3(%arg0: i32) -> (i32, i32) {
    %c0_i32 = arith.constant 0 : i32
    %c0_i32_0 = arith.constant 0 : i32
    %c0_i32_1 = arith.constant 0 : i32
    return %c0_i32, %c0_i32_0 : i32, i32
  }
  func.func @transform_4(%arg0: i32) -> (i32, i32) {
    %c0_i32 = arith.constant 0 : i32
    %c0_i32_0 = arith.constant 0 : i32
    return %arg0, %c0_i32 : i32, i32
  }
}

</mosaic_0001>

<bundles_post_ra>
// kernel: dinov2_head.1
= control target key start
LH: loop header
LB: loop body
LE: loop exit
PB: predicated region body
PF: predicated region fallthrough
CT: control target
= control target key end

     0   :  { %9 = vsyncpa [#allocation3], 0  ;;  %s5451_s0 = inlined_call_operand.hbm [shape: f32[2,1024], index: 0, kind: input, shape index: {}]   ;;  %s5452_s1 = inlined_call_operand.hbm [shape: bf16[1024,512], index: 1, kind: input, shape index: {}]   ;;  %s5453_s2 = inlined_call_operand.hbm [shape: bf16[512,512], index: 2, kind: input, shape index: {}]   ;;  %s5454_s3 = inlined_call_operand.hbm [shape: f32[8,512], index: 3, kind: input, shape index: {}]   ;;  %s5455_s4 = inlined_call_operand.hbm [shape: f32[2,512], index: 4, kind: output, shape index: {}]  }
   0x1   :  { %10 = vsyncpa [#allocation6], 0 }
   0x2   :  { %11 = vsyncpa [#allocation9], 0  ;;  %s28_s17 = sshll.u32 %s5452_s1, 4  ;;  %s29_s17 = int_to_ptr.hbm [resolvable:$true] %s28_s17 }
   0x3   :  { %12 = vsyncpa [#allocation4], 0  ;;  %s5260_s18 = smov [#allocation5]   ;;  %s18_s22 = sshll.u32 %s5451_s0, 4  ;;  %s19_s22 = int_to_ptr.hbm [resolvable:$true] %s18_s22 }
   0x4   :  { %s30_s19 = sshll.u32 %s5260_s18, 4  ;;  %s5261_s23 = smov 256   ;;  %s31_s19 = int_to_ptr.vmem [resolvable:$true] %s30_s19 }
   0x5   :  { %s5262_s24 = smov 16   ;;  %s5263_s25 = smov [#allocation2]  }
   0x6   :  { %36 = dma.hbm_to_vmem [thread:$0]  %s29_s17, 32768, %s31_s19, [#allocation6], %s5261_s23, %s5261_s23, %s5262_s24  }
   0x7   :  { %s20_s26 = sshll.u32 %s5263_s25, 4  ;;  %s41_s29 = sshll.u32 %s5453_s2, 4  ;;  %s21_s26 = int_to_ptr.vmem [resolvable:$true] %s20_s26  ;;  %s42_s29 = int_to_ptr.hbm [resolvable:$true] %s41_s29 }
   0x8   :  { %23 = dma.hbm_to_vmem [thread:$0]  %s19_s22, 256, %s21_s26, [#allocation3]  }
   0x9   :  { %s55_s5 = sshll.u32 %s5454_s3, 4  ;;  %s5264_s6 = smov [#allocation7]   ;;  %s56_s5 = int_to_ptr.hbm [resolvable:$true] %s55_s5 }
   0xa   :  { %s43_s7 = sshll.u32 %s5264_s6, 4  ;;  %s5265_s0 = smov [#allocation8]   ;;  %s44_s7 = int_to_ptr.vmem [resolvable:$true] %s43_s7 }
   0xb   :  { %49 = dma.hbm_to_vmem [thread:$0]  %s42_s29, 16384, %s44_s7, [#allocation6], %s5261_s23, %s5261_s23, %s5262_s24  }
   0xc   :  { %s57_s8 = sshll.u32 %s5265_s0, 4  ;;  %s58_s8 = int_to_ptr.vmem [resolvable:$true] %s57_s8 }
   0xd   :  { %60 = dma.hbm_to_vmem [thread:$0]  %s56_s5, 512, %s58_s8, [#allocation9]  }
   0xe   :  { %5252 = dma.done.wait [#allocation3], 256  }
   0xf   :  { %5253 = vsyncadd [#allocation3], 4294967040 }
  0x10   :  { %5254 = dma.done.wait [#allocation6], 49152  }
  0x11   :  { %5255 = vsyncadd [#allocation6], 4294918144 }
  0x12   :  { %5256 = dma.done.wait [#allocation9], 512  }
  0x13   :  { %5257 = vsyncadd [#allocation9], 4294966784  ;;  %v3302_v0 = vld [vmem:[#allocation5 + $0xe0] sm:$0xf]  ;;  %v4754_v1 = vld [vmem:[#allocation5 + $0xec] sm:$0xf0] }
  0x14   :  { %v3430_v2 = vld [vmem:[#allocation5 + $0x1e0] sm:$0xf]  ;;  %v3303_v3 = vor.u32 %v4754_v1, %v3302_v0  ;;  %v4786_v4 = vld [vmem:[#allocation5 + $0x1ec] sm:$0xf0]  ;;  %vm2068_vm0 = vcmask 1041408   ;;  %vm3163_vm5 = vcmask 1045508  }
  0x15   :  { %v3558_v5 = vld [vmem:[#allocation5 + $0x2e0] sm:$0xf]  ;;  %v4818_v6 = vld [vmem:[#allocation5 + $0x2ec] sm:$0xf0]  ;;  %v3431_v7 = vor.u32 %v4786_v4, %v3430_v2  ;;  %s5267_s2 = smov [#allocation10]   ;;  %s3176_s11 = sshll.u32 %s5455_s4, 4  ;;  %s3177_s11 = int_to_ptr.hbm [resolvable:$true] %s3176_s11 }
  0x16   :  { %v3559_v8 = vor.u32 %v4818_v6, %v3558_v5  ;;  %v3686_v9 = vld [vmem:[#allocation5 + $0x3e0] sm:$0xf]  ;;  %v4850_v10 = vld [vmem:[#allocation5 + $0x3ec] sm:$0xf0]  ;;  %1652 = vmatpush.bf16.msra.mxu0 %v3303_v3  ;;  %s3174_s3 = sshll.u32 %s5267_s2, 4  ;;  %vm3165_vm6 = vcmask 1043456   ;;  %s3175_s3 = int_to_ptr.vmem [resolvable:$true] %s3174_s3 }
  0x17   :  { %v3286_v11 = vld [vmem:[#allocation5 + $0xc0] sm:$0xf]  ;;  %v3687_v12 = vor.u32 %v4850_v10, %v3686_v9  ;;  %v4750_v13 = vld [vmem:[#allocation5 + $0xcc] sm:$0xf0]  ;;  %1665 = vmatpush.bf16.msra.mxu1 %v3431_v7 }
  0x18   :  { %v3414_v14 = vld [vmem:[#allocation5 + $0x1c0] sm:$0xf]  ;;  %v4782_v15 = vld [vmem:[#allocation5 + $0x1cc] sm:$0xf0]  ;;  %1678 = vmatpush.bf16.msra.mxu2 %v3559_v8  ;;  %v3287_v16 = vor.u32 %v4750_v13, %v3286_v11 }
  0x19   :  { %v3415_v17 = vor.u32 %v4782_v15, %v3414_v14  ;;  %v3542_v18 = vld [vmem:[#allocation5 + $0x2c0] sm:$0xf]  ;;  %v4814_v19 = vld [vmem:[#allocation5 + $0x2cc] sm:$0xf0]  ;;  %1691 = vmatpush.bf16.msra.mxu3 %v3687_v12 }
  0x1a   :  { %v3670_v20 = vld [vmem:[#allocation5 + $0x3c0] sm:$0xf]  ;;  %v3543_v21 = vor.u32 %v4814_v19, %v3542_v18  ;;  %v4846_v22 = vld [vmem:[#allocation5 + $0x3cc] sm:$0xf0]  ;;  %1653 = vmatpush.bf16.msra.mxu0 %v3287_v16 }
  0x1b   :  { %v3270_v23 = vld [vmem:[#allocation5 + $0xa0] sm:$0xf]  ;;  %v4746_v24 = vld [vmem:[#allocation5 + $0xac] sm:$0xf0]  ;;  %v3671_v25 = vor.u32 %v4846_v22, %v3670_v20  ;;  %1666 = vmatpush.bf16.msra.mxu1 %v3415_v17 }
  0x1c   :  { %v3398_v26 = vld [vmem:[#allocation5 + $0x1a0] sm:$0xf]  ;;  %v4778_v27 = vld [vmem:[#allocation5 + $0x1ac] sm:$0xf0]  ;;  %v3271_v29 = vor.u32 %v4746_v24, %v3270_v23  ;;  %1679 = vmatpush.bf16.msra.mxu2 %v3543_v21 }
  0x1d   :  { %v3526_v28 = vld [vmem:[#allocation5 + $0x2a0] sm:$0xf]  ;;  %v4810_v30 = vld [vmem:[#allocation5 + $0x2ac] sm:$0xf0]  ;;  %v3399_v33 = vor.u32 %v4778_v27, %v3398_v26  ;;  %1692 = vmatpush.bf16.msra.mxu3 %v3671_v25 }
  0x1e   :  { %v3654_v31 = vld [vmem:[#allocation5 + $0x3a0] sm:$0xf]  ;;  %v4842_v32 = vld [vmem:[#allocation5 + $0x3ac] sm:$0xf0]  ;;  %v3527_v34 = vor.u32 %v4810_v30, %v3526_v28  ;;  %1654 = vmatpush.bf16.msra.mxu0 %v3271_v29 }
  0x1f   :  { %v3254_v35 = vld [vmem:[#allocation5 + $0x80] sm:$0xf]  ;;  %v4742_v36 = vld [vmem:[#allocation5 + $0x8c] sm:$0xf0]  ;;  %v3655_v38 = vor.u32 %v4842_v32, %v3654_v31  ;;  %1667 = vmatpush.bf16.msra.mxu1 %v3399_v33 }
  0x20   :  { %v3382_v37 = vld [vmem:[#allocation5 + $0x180] sm:$0xf]  ;;  %v4774_v39 = vld [vmem:[#allocation5 + $0x18c] sm:$0xf0]  ;;  %v3255_v44 = vor.u32 %v4742_v36, %v3254_v35  ;;  %1680 = vmatpush.bf16.msra.mxu2 %v3527_v34 }
  0x21   :  { %v3510_v40 = vld [vmem:[#allocation5 + $0x280] sm:$0xf]  ;;  %v4806_v41 = vld [vmem:[#allocation5 + $0x28c] sm:$0xf0]  ;;  %v3383_v45 = vor.u32 %v4774_v39, %v3382_v37  ;;  %1693 = vmatpush.bf16.msra.mxu3 %v3655_v38 }
  0x22   :  { %v3638_v42 = vld [vmem:[#allocation5 + $0x380] sm:$0xf]  ;;  %v4838_v43 = vld [vmem:[#allocation5 + $0x38c] sm:$0xf0]  ;;  %v3511_v46 = vor.u32 %v4806_v41, %v3510_v40  ;;  %1655 = vmatpush.bf16.msra.mxu0 %v3255_v44 }
  0x23   :  { %v3238_v47 = vld [vmem:[#allocation5 + $0x60] sm:$0xf]  ;;  %v4738_v48 = vld [vmem:[#allocation5 + $0x6c] sm:$0xf0]  ;;  %v3639_v50 = vor.u32 %v4838_v43, %v3638_v42  ;;  %1668 = vmatpush.bf16.msra.mxu1 %v3383_v45 }
  0x24   :  { %v3366_v49 = vld [vmem:[#allocation5 + $0x160] sm:$0xf]  ;;  %v4770_v51 = vld [vmem:[#allocation5 + $0x16c] sm:$0xf0]  ;;  %v3239_v56 = vor.u32 %v4738_v48, %v3238_v47  ;;  %1681 = vmatpush.bf16.msra.mxu2 %v3511_v46 }
  0x25   :  { %v3494_v52 = vld [vmem:[#allocation5 + $0x260] sm:$0xf]  ;;  %v4802_v53 = vld [vmem:[#allocation5 + $0x26c] sm:$0xf0]  ;;  %v3367_v57 = vor.u32 %v4770_v51, %v3366_v49  ;;  %1694 = vmatpush.bf16.msra.mxu3 %v3639_v50 }
  0x26   :  { %v3622_v54 = vld [vmem:[#allocation5 + $0x360] sm:$0xf]  ;;  %v4834_v55 = vld [vmem:[#allocation5 + $0x36c] sm:$0xf0]  ;;  %v3495_v58 = vor.u32 %v4802_v53, %v3494_v52  ;;  %1656 = vmatpush.bf16.msra.mxu0 %v3239_v56 }
  0x27   :  { %v3222_v59 = vld [vmem:[#allocation5 + $0x40] sm:$0xf]  ;;  %v4734_v60 = vld [vmem:[#allocation5 + $0x4c] sm:$0xf0]  ;;  %v3623_v62 = vor.u32 %v4834_v55, %v3622_v54  ;;  %1669 = vmatpush.bf16.msra.mxu1 %v3367_v57 }
  0x28   :  { %v3350_v61 = vld [vmem:[#allocation5 + $0x140] sm:$0xf]  ;;  %v4766_v63 = vld [vmem:[#allocation5 + $0x14c] sm:$0xf0]  ;;  %v3223_v4 = vor.u32 %v4734_v60, %v3222_v59  ;;  %1682 = vmatpush.bf16.msra.mxu2 %v3495_v58 }
  0x29   :  { %v3478_v0 = vld [vmem:[#allocation5 + $0x240] sm:$0xf]  ;;  %v4798_v1 = vld [vmem:[#allocation5 + $0x24c] sm:$0xf0]  ;;  %v3351_v5 = vor.u32 %v4766_v63, %v3350_v61  ;;  %1695 = vmatpush.bf16.msra.mxu3 %v3623_v62 }
  0x2a   :  { %v3606_v2 = vld [vmem:[#allocation5 + $0x340] sm:$0xf]  ;;  %v4830_v3 = vld [vmem:[#allocation5 + $0x34c] sm:$0xf0]  ;;  %v3479_v6 = vor.u32 %v4798_v1, %v3478_v0  ;;  %1657 = vmatpush.bf16.msra.mxu0 %v3223_v4 }
  0x2b   :  { %v3206_v7 = vld [vmem:[#allocation5 + $0x20] sm:$0xf]  ;;  %v4730_v8 = vld [vmem:[#allocation5 + $0x2c] sm:$0xf0]  ;;  %v3607_v10 = vor.u32 %v4830_v3, %v3606_v2  ;;  %1670 = vmatpush.bf16.msra.mxu1 %v3351_v5 }
  0x2c   :  { %v3334_v9 = vld [vmem:[#allocation5 + $0x120] sm:$0xf]  ;;  %v4762_v11 = vld [vmem:[#allocation5 + $0x12c] sm:$0xf0]  ;;  %v3207_v16 = vor.u32 %v4730_v8, %v3206_v7  ;;  %1683 = vmatpush.bf16.msra.mxu2 %v3479_v6 }
  0x2d   :  { %v3462_v12 = vld [vmem:[#allocation5 + $0x220] sm:$0xf]  ;;  %v4794_v13 = vld [vmem:[#allocation5 + $0x22c] sm:$0xf0]  ;;  %v3335_v19 = vor.u32 %v4762_v11, %v3334_v9  ;;  %1696 = vmatpush.bf16.msra.mxu3 %v3607_v10 }
  0x2e   :  { %v3590_v14 = vld [vmem:[#allocation5 + $0x320] sm:$0xf]  ;;  %v4826_v15 = vld [vmem:[#allocation5 + $0x32c] sm:$0xf0]  ;;  %v3463_v20 = vor.u32 %v4794_v13, %v3462_v12  ;;  %1658 = vmatpush.bf16.msra.mxu0 %v3207_v16 }
  0x2f   :  { %v3190_v17 = vld [vmem:[#allocation5] sm:$0xf]  ;;  %v4726_v18 = vld [vmem:[#allocation5 + $0xc] sm:$0xf0]  ;;  %v3591_v24 = vor.u32 %v4826_v15, %v3590_v14  ;;  %1671 = vmatpush.bf16.msra.mxu1 %v3335_v19 }
  0x30   :  { %v3318_v21 = vld [vmem:[#allocation5 + $0x100] sm:$0xf]  ;;  %v4758_v22 = vld [vmem:[#allocation5 + $0x10c] sm:$0xf0]  ;;  %v3191_v31 = vor.u32 %v4726_v18, %v3190_v17  ;;  %1684 = vmatpush.bf16.msra.mxu2 %v3463_v20 }
  0x31   :  { %v3446_v23 = vld [vmem:[#allocation5 + $0x200] sm:$0xf]  ;;  %v4790_v25 = vld [vmem:[#allocation5 + $0x20c] sm:$0xf0]  ;;  %v3319_v35 = vor.u32 %v4758_v22, %v3318_v21  ;;  %1697 = vmatpush.bf16.msra.mxu3 %v3591_v24 }
  0x32   :  { %v3574_v26 = vld [vmem:[#allocation5 + $0x300] sm:$0xf]  ;;  %v4822_v27 = vld [vmem:[#allocation5 + $0x30c] sm:$0xf0]  ;;  %v3447_v36 = vor.u32 %v4790_v25, %v3446_v23  ;;  %1659 = vmatpush.bf16.msra.mxu0 %v3191_v31 }
  0x33   :  { %v3814_v28 = vld [vmem:[#allocation5 + $0x4e0] sm:$0xf]  ;;  %v4882_v29 = vld [vmem:[#allocation5 + $0x4ec] sm:$0xf0]  ;;  %v3575_v39 = vor.u32 %v4822_v27, %v3574_v26  ;;  %1672 = vmatpush.bf16.msra.mxu1 %v3319_v35 }
  0x34   :  { %v3942_v30 = vld [vmem:[#allocation5 + $0x5e0] sm:$0xf]  ;;  %v4914_v32 = vld [vmem:[#allocation5 + $0x5ec] sm:$0xf0]  ;;  %v3815_v40 = vor.u32 %v4882_v29, %v3814_v28  ;;  %1685 = vmatpush.bf16.msra.mxu2 %v3447_v36 }
  0x35   :  { %v4070_v33 = vld [vmem:[#allocation5 + $0x6e0] sm:$0xf]  ;;  %v4946_v34 = vld [vmem:[#allocation5 + $0x6ec] sm:$0xf0]  ;;  %v3943_v41 = vor.u32 %v4914_v32, %v3942_v30  ;;  %1698 = vmatpush.bf16.msra.mxu3 %v3575_v39 }
  0x36   :  { %v4198_v37 = vld [vmem:[#allocation5 + $0x7e0] sm:$0xf]  ;;  %v4978_v38 = vld [vmem:[#allocation5 + $0x7ec] sm:$0xf0]  ;;  %v4071_v42 = vor.u32 %v4946_v34, %v4070_v33  ;;  %1704 = vmatpush.bf16.msrb.mxu0 %v3815_v40 }
  0x37   :  { %v3798_v43 = vld [vmem:[#allocation5 + $0x4c0] sm:$0xf]  ;;  %v4878_v44 = vld [vmem:[#allocation5 + $0x4cc] sm:$0xf0]  ;;  %v4199_v46 = vor.u32 %v4978_v38, %v4198_v37  ;;  %1717 = vmatpush.bf16.msrb.mxu1 %v3943_v41 }
  0x38   :  { %v3926_v45 = vld [vmem:[#allocation5 + $0x5c0] sm:$0xf]  ;;  %v4910_v47 = vld [vmem:[#allocation5 + $0x5cc] sm:$0xf0]  ;;  %v3799_v52 = vor.u32 %v4878_v44, %v3798_v43  ;;  %1730 = vmatpush.bf16.msrb.mxu2 %v4071_v42 }
  0x39   :  { %v4054_v48 = vld [vmem:[#allocation5 + $0x6c0] sm:$0xf]  ;;  %v4942_v49 = vld [vmem:[#allocation5 + $0x6cc] sm:$0xf0]  ;;  %v3927_v53 = vor.u32 %v4910_v47, %v3926_v45  ;;  %1743 = vmatpush.bf16.msrb.mxu3 %v4199_v46 }
  0x3a   :  { %v4182_v50 = vld [vmem:[#allocation5 + $0x7c0] sm:$0xf]  ;;  %v4974_v51 = vld [vmem:[#allocation5 + $0x7cc] sm:$0xf0]  ;;  %v4055_v54 = vor.u32 %v4942_v49, %v4054_v48  ;;  %1705 = vmatpush.bf16.msrb.mxu0 %v3799_v52  ;;  %v82_v52 = vld [vmem:[#allocation2 + $0x8] sm:$0xff] }
  0x3b   :  { %v3782_v55 = vld [vmem:[#allocation5 + $0x4a0] sm:$0xf]  ;;  %v4874_v56 = vld [vmem:[#allocation5 + $0x4ac] sm:$0xf0]  ;;  %v4183_v58 = vor.u32 %v4974_v51, %v4182_v50  ;;  %1718 = vmatpush.bf16.msrb.mxu1 %v3927_v53  ;;  %87 = vst [vmem:[#allocation1 + $0x20] ss:$4 sm:$0xff] %v82_v52 }
  0x3c   :  { %v3910_v57 = vld [vmem:[#allocation5 + $0x5a0] sm:$0xf]  ;;  %v4906_v59 = vld [vmem:[#allocation5 + $0x5ac] sm:$0xf0]  ;;  %v3783_v0 = vor.u32 %v4874_v56, %v3782_v55  ;;  %1731 = vmatpush.bf16.msrb.mxu2 %v4055_v54  ;;  %v4840_v52 = vld [vmem:[#allocation5 + $0x3a4] sm:$0xf] }
  0x3d   :  { %v4038_v60 = vld [vmem:[#allocation5 + $0x6a0] sm:$0xf]  ;;  %v4938_v61 = vld [vmem:[#allocation5 + $0x6ac] sm:$0xf0]  ;;  %v3911_v3 = vor.u32 %v4906_v59, %v3910_v57  ;;  %1744 = vmatpush.bf16.msrb.mxu3 %v4183_v58 }
  0x3e   :  { %v4166_v62 = vld [vmem:[#allocation5 + $0x7a0] sm:$0xf]  ;;  %v4970_v63 = vld [vmem:[#allocation5 + $0x7ac] sm:$0xf0]  ;;  %v4039_v4 = vor.u32 %v4938_v61, %v4038_v60  ;;  %1706 = vmatpush.bf16.msrb.mxu0 %v3783_v0 }
  0x3f   :  { %v3766_v1 = vld [vmem:[#allocation5 + $0x480] sm:$0xf]  ;;  %v81_v2 = vld [vmem:[#allocation2] sm:$0xff]  ;;  %v4167_v7 = vor.u32 %v4970_v63, %v4166_v62  ;;  %1719 = vmatpush.bf16.msrb.mxu1 %v3911_v3 }
  0x40   :  { %v4870_v5 = vld [vmem:[#allocation5 + $0x48c] sm:$0xf0]  ;;  %v3894_v6 = vld [vmem:[#allocation5 + $0x580] sm:$0xf]  ;;  %85 = vst [vmem:[#allocation1] ss:$4 sm:$0xff] %v81_v2  ;;  %1732 = vmatpush.bf16.msrb.mxu2 %v4039_v4 }
  0x41   :  { %v4902_v8 = vld [vmem:[#allocation5 + $0x58c] sm:$0xf0]  ;;  %v4022_v9 = vld [vmem:[#allocation5 + $0x680] sm:$0xf]  ;;  %v3767_v13 = vor.u32 %v4870_v5, %v3766_v1  ;;  %1745 = vmatpush.bf16.msrb.mxu3 %v4167_v7  ;;  %v3304_v7 = vld [vmem:[#allocation5 + $0xf0] sm:$0xf0] }
  0x42   :  { %v4934_v10 = vld [vmem:[#allocation5 + $0x68c] sm:$0xf0]  ;;  %v4150_v11 = vld [vmem:[#allocation5 + $0x780] sm:$0xf]  ;;  %v3895_v15 = vor.u32 %v4902_v8, %v3894_v6  ;;  %v4752_v6 = vld [vmem:[#allocation5 + $0xe4] sm:$0xf] }
  0x43   :  { %v4966_v12 = vld [vmem:[#allocation5 + $0x78c] sm:$0xf0]  ;;  %v3750_v14 = vld [vmem:[#allocation5 + $0x460] sm:$0xf]  ;;  %v4023_v16 = vor.u32 %v4934_v10, %v4022_v9  ;;  %1707 = vmatpush.bf16.msrb.mxu0 %v3767_v13  ;;  %v4784_v8 = vld [vmem:[#allocation5 + $0x1e4] sm:$0xf] }
  0x44   :  { %v4866_v17 = vld [vmem:[#allocation5 + $0x46c] sm:$0xf0]  ;;  %v3878_v18 = vld [vmem:[#allocation5 + $0x560] sm:$0xf]  ;;  %v4151_v20 = vor.u32 %v4966_v12, %v4150_v11  ;;  %1720 = vmatpush.bf16.msrb.mxu1 %v3895_v15  ;;  %v3432_v9 = vld [vmem:[#allocation5 + $0x1f0] sm:$0xf0] }
  0x45   :  { %v4898_v19 = vld [vmem:[#allocation5 + $0x56c] sm:$0xf0]  ;;  %v4006_v21 = vld [vmem:[#allocation5 + $0x660] sm:$0xf]  ;;  %v3751_v27 = vor.u32 %v4866_v17, %v3750_v14  ;;  %1733 = vmatpush.bf16.msrb.mxu2 %v4023_v16  ;;  %v4816_v10 = vld [vmem:[#allocation5 + $0x2e4] sm:$0xf] }
  0x46   :  { %v4930_v22 = vld [vmem:[#allocation5 + $0x66c] sm:$0xf0]  ;;  %v4134_v23 = vld [vmem:[#allocation5 + $0x760] sm:$0xf]  ;;  %v3879_v28 = vor.u32 %v4898_v19, %v3878_v18  ;;  %1746 = vmatpush.bf16.msrb.mxu3 %v4151_v20  ;;  %v3560_v12 = vld [vmem:[#allocation5 + $0x2f0] sm:$0xf0] }
  0x47   :  { %v4962_v24 = vld [vmem:[#allocation5 + $0x76c] sm:$0xf0]  ;;  %v3734_v25 = vld [vmem:[#allocation5 + $0x440] sm:$0xf]  ;;  %v4007_v32 = vor.u32 %v4930_v22, %v4006_v21  ;;  %1708 = vmatpush.bf16.msrb.mxu0 %v3751_v27  ;;  %v4848_v13 = vld [vmem:[#allocation5 + $0x3e4] sm:$0xf]  ;;  %v3307_v21 = vor.u32 %v4752_v6, %v3304_v7 }
  0x48   :  { %v4862_v26 = vld [vmem:[#allocation5 + $0x44c] sm:$0xf0]  ;;  %v3862_v29 = vld [vmem:[#allocation5 + $0x540] sm:$0xf]  ;;  %v4135_v37 = vor.u32 %v4962_v24, %v4134_v23  ;;  %1721 = vmatpush.bf16.msrb.mxu1 %v3879_v28  ;;  %v3688_v14 = vld [vmem:[#allocation5 + $0x3f0] sm:$0xf0]  ;;  %v3435_v24 = vor.u32 %v4784_v8, %v3432_v9 }
  0x49   :  { %v90_v30 = vld.sshfl [vmem:[#allocation1 + $0x10] sm:$0xff pattern:$0x73625140]  ;;  %v88_v31 = vld.sshfl [vmem:[#allocation1] sm:$0xff pattern:$0x73625140]  ;;  %v3735_v45 = vor.u32 %v4862_v26, %v3734_v25  ;;  %1734 = vmatpush.bf16.msrb.mxu2 %v4007_v32  ;;  %v3563_v25 = vor.u32 %v4816_v10, %v3560_v12  ;;  %v3691_v28 = vor.u32 %v4848_v13, %v3688_v14 }
  0x4a   :  { %v5305_v33 = vpack.c.bf16 %v90_v30, %v90_v30  ;;  %v5307_v34 = vpack.c.bf16 %v88_v31, %v88_v31  ;;  %v91_v35 = vld.sshfl [vmem:[#allocation1 + $0x18] sm:$0xff pattern:$0x73625140]  ;;  %v89_v36 = vld.sshfl [vmem:[#allocation1 + $0x8] sm:$0xff pattern:$0x73625140]  ;;  %1747 = vmatpush.bf16.msrb.mxu3 %v4135_v37 }
  0x4b   :  { %v4894_v38 = vld [vmem:[#allocation5 + $0x54c] sm:$0xf0]  ;;  %v3990_v39 = vld [vmem:[#allocation5 + $0x640] sm:$0xf]  ;;  %v5309_v41 = vpack.c.bf16 %v91_v35, %v91_v35  ;;  %v5311_v42 = vpack.c.bf16 %v89_v36, %v89_v36  ;;  %1709 = vmatpush.bf16.msrb.mxu0 %v3735_v45  ;;  %v4748_v17 = vld [vmem:[#allocation5 + $0xc4] sm:$0xf] }
  0x4c   :  { %v4926_v40 = vld [vmem:[#allocation5 + $0x64c] sm:$0xf0]  ;;  %v4118_v43 = vld [vmem:[#allocation5 + $0x740] sm:$0xf]  ;;  %1686 = vmatmul.bf16.vlgmr.msra.gmra.mxu2 %v5305_v33  ;;  %1660 = vmatmul.bf16.vlgmr.msra.gmra.mxu0 %v5307_v34  ;;  %v3863_v48 = vor.u32 %v4894_v38, %v3862_v29  ;;  %v3288_v18 = vld [vmem:[#allocation5 + $0xd0] sm:$0xf0] }
  0x4d   :  { %v4958_v44 = vld [vmem:[#allocation5 + $0x74c] sm:$0xf0]  ;;  %1699 = vmatmul.bf16.vlgmr.msra.gmra.mxu3 %v5309_v41  ;;  %v3718_v46 = vld [vmem:[#allocation5 + $0x420] sm:$0xf]  ;;  %v3991_v49 = vor.u32 %v4926_v40, %v3990_v39  ;;  %1673 = vmatmul.bf16.vlgmr.msra.gmra.mxu1 %v5311_v42  ;;  %v4780_v26 = vld [vmem:[#allocation5 + $0x1c4] sm:$0xf]  ;;  %v3291_v39 = vor.u32 %v4748_v17, %v3288_v18 }
  0x4e   :  { %v4858_v47 = vld [vmem:[#allocation5 + $0x42c] sm:$0xf0]  ;;  %v3846_v50 = vld [vmem:[#allocation5 + $0x520] sm:$0xf]  ;;  %v4119_v53 = vor.u32 %v4958_v44, %v4118_v43  ;;  %1722 = vmatpush.bf16.msrb.mxu1 %v3863_v48  ;;  %v3416_v29 = vld [vmem:[#allocation5 + $0x1d0] sm:$0xf0] }
  0x4f   :  { %v4890_v51 = vld [vmem:[#allocation5 + $0x52c] sm:$0xf0]  ;;  %v3974_v54 = vld [vmem:[#allocation5 + $0x620] sm:$0xf]  ;;  %v3719_v59 = vor.u32 %v4858_v47, %v3718_v46  ;;  %1735 = vmatpush.bf16.msrb.mxu2 %v3991_v49  ;;  %v4812_v30 = vld [vmem:[#allocation5 + $0x2c4] sm:$0xf]  ;;  %v3419_v43 = vor.u32 %v4780_v26, %v3416_v29 }
  0x50   :  { %v4922_v55 = vld [vmem:[#allocation5 + $0x62c] sm:$0xf0]  ;;  %v4102_v56 = vld [vmem:[#allocation5 + $0x720] sm:$0xf]  ;;  %v3847_v63 = vor.u32 %v4890_v51, %v3846_v50  ;;  %1748 = vmatpush.bf16.msrb.mxu3 %v4119_v53  ;;  %v3544_v31 = vld [vmem:[#allocation5 + $0x2d0] sm:$0xf0] }
  0x51   :  { %v4954_v57 = vld [vmem:[#allocation5 + $0x72c] sm:$0xf0]  ;;  %v3702_v58 = vld [vmem:[#allocation5 + $0x400] sm:$0xf]  ;;  %v3975_v0 = vor.u32 %v4922_v55, %v3974_v54  ;;  %1710 = vmatpush.bf16.msrb.mxu0 %v3719_v59  ;;  %v4844_v35 = vld [vmem:[#allocation5 + $0x3c4] sm:$0xf]  ;;  %v3547_v44 = vor.u32 %v4812_v30, %v3544_v31 }
  0x52   :  { %v4854_v60 = vld [vmem:[#allocation5 + $0x40c] sm:$0xf0]  ;;  %v3830_v61 = vld [vmem:[#allocation5 + $0x500] sm:$0xf]  ;;  %v4103_v4 = vor.u32 %v4954_v57, %v4102_v56  ;;  %1723 = vmatpush.bf16.msrb.mxu1 %v3847_v63  ;;  %v3672_v36 = vld [vmem:[#allocation5 + $0x3d0] sm:$0xf0] }
  0x53   :  { %v4886_v62 = vld [vmem:[#allocation5 + $0x50c] sm:$0xf0]  ;;  %v3958_v1 = vld [vmem:[#allocation5 + $0x600] sm:$0xf]  ;;  %v3703_v11 = vor.u32 %v4854_v60, %v3702_v58  ;;  %1736 = vmatpush.bf16.msrb.mxu2 %v3975_v0  ;;  %v4744_v45 = vld [vmem:[#allocation5 + $0xa4] sm:$0xf]  ;;  %v3675_v48 = vor.u32 %v4844_v35, %v3672_v36 }
  0x54   :  { %v4918_v2 = vld [vmem:[#allocation5 + $0x60c] sm:$0xf0]  ;;  %v4086_v3 = vld [vmem:[#allocation5 + $0x700] sm:$0xf]  ;;  %v3831_v15 = vor.u32 %v4886_v62, %v3830_v61  ;;  %1749 = vmatpush.bf16.msrb.mxu3 %v4103_v4  ;;  %v3272_v46 = vld [vmem:[#allocation5 + $0xb0] sm:$0xf0] }
  0x55   :  { %v4950_v5 = vld [vmem:[#allocation5 + $0x70c] sm:$0xf0]  ;;  %v3959_v16 = vor.u32 %v4918_v2, %v3958_v1  ;;  %v94_v19 = vld.sshfl [vmem:[#allocation1 + $0x30] sm:$0xff pattern:$0x73625140]  ;;  %1711 = vmatpush.bf16.msrb.mxu0 %v3703_v11  ;;  %v3275_v54 = vor.u32 %v4744_v45, %v3272_v46 }
  0x56   :  { %v4087_v20 = vor.u32 %v4950_v5, %v4086_v3  ;;  %v92_v22 = vld.sshfl [vmem:[#allocation1 + $0x20] sm:$0xff pattern:$0x73625140]  ;;  %v95_v23 = vld.sshfl [vmem:[#allocation1 + $0x38] sm:$0xff pattern:$0x73625140]  ;;  %v5317_v32 = vpack.c.bf16 %v94_v19, %v94_v19  ;;  %1724 = vmatpush.bf16.msrb.mxu1 %v3831_v15 }
  0x57   :  { %v93_v27 = vld.sshfl [vmem:[#allocation1 + $0x28] sm:$0xff pattern:$0x73625140]  ;;  %1737 = vmatpush.bf16.msrb.mxu2 %v3959_v16  ;;  %v5319_v37 = vpack.c.bf16 %v92_v22, %v92_v22  ;;  %v5321_v38 = vpack.c.bf16 %v95_v23, %v95_v23  ;;  %v4776_v47 = vld [vmem:[#allocation5 + $0x1a4] sm:$0xf] }
  0x58   :  { %1750 = vmatpush.bf16.msrb.mxu3 %v4087_v20  ;;  %v5323_v40 = vpack.c.bf16 %v93_v27, %v93_v27  ;;  %v3400_v49 = vld [vmem:[#allocation5 + $0x1b0] sm:$0xf0]  ;;  %v4808_v50 = vld [vmem:[#allocation5 + $0x2a4] sm:$0xf] }
  0x59   :  { %1756 = vmatpush.bf16.msra.mxu0 %v3307_v21  ;;  %v3528_v51 = vld [vmem:[#allocation5 + $0x2b0] sm:$0xf0]  ;;  %v3403_v55 = vor.u32 %v4776_v47, %v3400_v49  ;;  %v4740_v57 = vld [vmem:[#allocation5 + $0x84] sm:$0xf] }
  0x5a   :  { %1769 = vmatpush.bf16.msra.mxu1 %v3435_v24  ;;  %v3656_v53 = vld [vmem:[#allocation5 + $0x3b0] sm:$0xf0]  ;;  %v3531_v56 = vor.u32 %v4808_v50, %v3528_v51  ;;  %v4772_v59 = vld [vmem:[#allocation5 + $0x184] sm:$0xf] }
  0x5b   :  { %1782 = vmatpush.bf16.msra.mxu2 %v3563_v25  ;;  %v3256_v58 = vld [vmem:[#allocation5 + $0x90] sm:$0xf0]  ;;  %v3659_v60 = vor.u32 %v4840_v52, %v3656_v53  ;;  %v4804_v62 = vld [vmem:[#allocation5 + $0x284] sm:$0xf] }
  0x5c   :  { %1795 = vmatpush.bf16.msra.mxu3 %v3691_v28  ;;  %1738 = vmatmul.bf16.vlgmr.msrb.gmra.mxu2 %v5317_v32  ;;  %v3384_v61 = vld [vmem:[#allocation5 + $0x190] sm:$0xf0]  ;;  %v4836_v0 = vld [vmem:[#allocation5 + $0x384] sm:$0xf]  ;;  %v3259_v2 = vor.u32 %v4740_v57, %v3256_v58 }
  0x5d   :  { %1712 = vmatmul.bf16.vlgmr.msrb.gmra.mxu0 %v5319_v37  ;;  %1751 = vmatmul.bf16.vlgmr.msrb.gmra.mxu3 %v5321_v38  ;;  %v3512_v63 = vld [vmem:[#allocation5 + $0x290] sm:$0xf0]  ;;  %v3387_v3 = vor.u32 %v4772_v59, %v3384_v61  ;;  %v4736_v5 = vld [vmem:[#allocation5 + $0x64] sm:$0xf] }
  0x5e   :  { %1757 = vmatpush.bf16.msra.mxu0 %v3291_v39  ;;  %1725 = vmatmul.bf16.vlgmr.msrb.gmra.mxu1 %v5323_v40  ;;  %v3640_v1 = vld [vmem:[#allocation5 + $0x390] sm:$0xf0]  ;;  %v3515_v4 = vor.u32 %v4804_v62, %v3512_v63  ;;  %v4768_v7 = vld [vmem:[#allocation5 + $0x164] sm:$0xf] }
  0x5f   :  { %1770 = vmatpush.bf16.msra.mxu1 %v3419_v43  ;;  %1783 = vmatpush.bf16.msra.mxu2 %v3547_v44  ;;  %v3240_v6 = vld [vmem:[#allocation5 + $0x70] sm:$0xf0]  ;;  %v3643_v8 = vor.u32 %v4836_v0, %v3640_v1  ;;  %v4800_v10 = vld [vmem:[#allocation5 + $0x264] sm:$0xf] }
  0x60   :  { %1796 = vmatpush.bf16.msra.mxu3 %v3675_v48  ;;  %v3368_v9 = vld [vmem:[#allocation5 + $0x170] sm:$0xf0]  ;;  %v4832_v12 = vld [vmem:[#allocation5 + $0x364] sm:$0xf]  ;;  %v3243_v14 = vor.u32 %v4736_v5, %v3240_v6 }
  0x61   :  { %v3496_v11 = vld [vmem:[#allocation5 + $0x270] sm:$0xf0]  ;;  %v3371_v15 = vor.u32 %v4768_v7, %v3368_v9  ;;  %v4732_v17 = vld [vmem:[#allocation5 + $0x44] sm:$0xf] }
  0x62   :  { %1758 = vmatpush.bf16.msra.mxu0 %v3275_v54  ;;  %v3624_v13 = vld [vmem:[#allocation5 + $0x370] sm:$0xf0]  ;;  %v3499_v16 = vor.u32 %v4800_v10, %v3496_v11  ;;  %v4764_v19 = vld [vmem:[#allocation5 + $0x144] sm:$0xf] }
  0x63   :  { %1771 = vmatpush.bf16.msra.mxu1 %v3403_v55  ;;  %1784 = vmatpush.bf16.msra.mxu2 %v3531_v56  ;;  %v3224_v18 = vld [vmem:[#allocation5 + $0x50] sm:$0xf0]  ;;  %v3627_v20 = vor.u32 %v4832_v12, %v3624_v13  ;;  %v4796_v22 = vld [vmem:[#allocation5 + $0x244] sm:$0xf] }
  0x64   :  { %1797 = vmatpush.bf16.msra.mxu3 %v3659_v60  ;;  %v3352_v21 = vld [vmem:[#allocation5 + $0x150] sm:$0xf0]  ;;  %v4828_v24 = vld [vmem:[#allocation5 + $0x344] sm:$0xf]  ;;  %v3227_v26 = vor.u32 %v4732_v17, %v3224_v18 }
  0x65   :  { %v3480_v23 = vld [vmem:[#allocation5 + $0x250] sm:$0xf0]  ;;  %v3355_v27 = vor.u32 %v4764_v19, %v3352_v21  ;;  %v4728_v29 = vld [vmem:[#allocation5 + $0x24] sm:$0xf] }
  0x66   :  { %1759 = vmatpush.bf16.msra.mxu0 %v3259_v2  ;;  %v3608_v25 = vld [vmem:[#allocation5 + $0x350] sm:$0xf0]  ;;  %v3483_v28 = vor.u32 %v4796_v22, %v3480_v23  ;;  %v4760_v31 = vld [vmem:[#allocation5 + $0x124] sm:$0xf] }
  0x67   :  { %1772 = vmatpush.bf16.msra.mxu1 %v3387_v3  ;;  %1785 = vmatpush.bf16.msra.mxu2 %v3515_v4  ;;  %v3208_v30 = vld [vmem:[#allocation5 + $0x30] sm:$0xf0]  ;;  %v3611_v35 = vor.u32 %v4828_v24, %v3608_v25  ;;  %v4792_v39 = vld [vmem:[#allocation5 + $0x224] sm:$0xf] }
  0x68   :  { %1798 = vmatpush.bf16.msra.mxu3 %v3643_v8  ;;  %v3336_v36 = vld [vmem:[#allocation5 + $0x130] sm:$0xf0]  ;;  %v4824_v44 = vld [vmem:[#allocation5 + $0x324] sm:$0xf]  ;;  %v3211_v46 = vor.u32 %v4728_v29, %v3208_v30 }
  0x69   :  { %v3464_v43 = vld [vmem:[#allocation5 + $0x230] sm:$0xf0]  ;;  %v4724_v47 = vld [vmem:[#allocation5 + $0x4] sm:$0xf]  ;;  %v3339_v49 = vor.u32 %v4760_v31, %v3336_v36 }
  0x6a   :  { %1760 = vmatpush.bf16.msra.mxu0 %v3243_v14  ;;  %v3592_v45 = vld [vmem:[#allocation5 + $0x330] sm:$0xf0]  ;;  %v3467_v50 = vor.u32 %v4792_v39, %v3464_v43  ;;  %v4756_v51 = vld [vmem:[#allocation5 + $0x104] sm:$0xf] }
  0x6b   :  { %1773 = vmatpush.bf16.msra.mxu1 %v3371_v15  ;;  %1786 = vmatpush.bf16.msra.mxu2 %v3499_v16  ;;  %v3192_v48 = vld [vmem:[#allocation5 + $0x10] sm:$0xf0]  ;;  %v4788_v53 = vld [vmem:[#allocation5 + $0x204] sm:$0xf]  ;;  %v3595_v54 = vor.u32 %v4824_v44, %v3592_v45 }
  0x6c   :  { %1799 = vmatpush.bf16.msra.mxu3 %v3627_v20  ;;  %v3320_v52 = vld [vmem:[#allocation5 + $0x110] sm:$0xf0]  ;;  %v4820_v56 = vld [vmem:[#allocation5 + $0x304] sm:$0xf]  ;;  %v3195_v61 = vor.u32 %v4724_v47, %v3192_v48 }
  0x6d   :  { %v3448_v55 = vld [vmem:[#allocation5 + $0x210] sm:$0xf0]  ;;  %v4880_v58 = vld [vmem:[#allocation5 + $0x4e4] sm:$0xf]  ;;  %v3323_v1 = vor.u32 %v4756_v51, %v3320_v52 }
  0x6e   :  { %1761 = vmatpush.bf16.msra.mxu0 %v3227_v26  ;;  %v3576_v57 = vld [vmem:[#allocation5 + $0x310] sm:$0xf0]  ;;  %v4912_v60 = vld [vmem:[#allocation5 + $0x5e4] sm:$0xf]  ;;  %v3451_v2 = vor.u32 %v4788_v53, %v3448_v55 }
  0x6f   :  { %1774 = vmatpush.bf16.msra.mxu1 %v3355_v27  ;;  %1787 = vmatpush.bf16.msra.mxu2 %v3483_v28  ;;  %v3816_v59 = vld [vmem:[#allocation5 + $0x4f0] sm:$0xf0]  ;;  %v4944_v63 = vld [vmem:[#allocation5 + $0x6e4] sm:$0xf]  ;;  %v3579_v5 = vor.u32 %v4820_v56, %v3576_v57 }
  0x70   :  { %1800 = vmatpush.bf16.msra.mxu3 %v3611_v35  ;;  %v3944_v62 = vld [vmem:[#allocation5 + $0x5f0] sm:$0xf0]  ;;  %v4976_v3 = vld [vmem:[#allocation5 + $0x7e4] sm:$0xf]  ;;  %v3819_v6 = vor.u32 %v4880_v58, %v3816_v59 }
  0x71   :  { %v4072_v0 = vld [vmem:[#allocation5 + $0x6f0] sm:$0xf0]  ;;  %v3947_v7 = vor.u32 %v4912_v60, %v3944_v62  ;;  %v4876_v9 = vld [vmem:[#allocation5 + $0x4c4] sm:$0xf] }
  0x72   :  { %1762 = vmatpush.bf16.msra.mxu0 %v3211_v46  ;;  %v4200_v4 = vld [vmem:[#allocation5 + $0x7f0] sm:$0xf0]  ;;  %v4075_v8 = vor.u32 %v4944_v63, %v4072_v0  ;;  %v4908_v11 = vld [vmem:[#allocation5 + $0x5c4] sm:$0xf] }
  0x73   :  { %1775 = vmatpush.bf16.msra.mxu1 %v3339_v49  ;;  %1788 = vmatpush.bf16.msra.mxu2 %v3467_v50  ;;  %v3800_v10 = vld [vmem:[#allocation5 + $0x4d0] sm:$0xf0]  ;;  %v4203_v12 = vor.u32 %v4976_v3, %v4200_v4  ;;  %v4940_v14 = vld [vmem:[#allocation5 + $0x6c4] sm:$0xf] }
  0x74   :  { %1801 = vmatpush.bf16.msra.mxu3 %v3595_v54  ;;  %v3928_v13 = vld [vmem:[#allocation5 + $0x5d0] sm:$0xf0]  ;;  %v4972_v16 = vld [vmem:[#allocation5 + $0x7c4] sm:$0xf]  ;;  %v3803_v18 = vor.u32 %v4876_v9, %v3800_v10 }
  0x75   :  { %v4056_v15 = vld [vmem:[#allocation5 + $0x6d0] sm:$0xf0]  ;;  %v3931_v19 = vor.u32 %v4908_v11, %v3928_v13  ;;  %v4872_v21 = vld [vmem:[#allocation5 + $0x4a4] sm:$0xf] }
  0x76   :  { %1763 = vmatpush.bf16.msra.mxu0 %v3195_v61  ;;  %v4184_v17 = vld [vmem:[#allocation5 + $0x7d0] sm:$0xf0]  ;;  %v4059_v20 = vor.u32 %v4940_v14, %v4056_v15  ;;  %v4904_v23 = vld [vmem:[#allocation5 + $0x5a4] sm:$0xf] }
  0x77   :  { %1776 = vmatpush.bf16.msra.mxu1 %v3323_v1  ;;  %1789 = vmatpush.bf16.msra.mxu2 %v3451_v2  ;;  %v3784_v22 = vld [vmem:[#allocation5 + $0x4b0] sm:$0xf0]  ;;  %v4187_v24 = vor.u32 %v4972_v16, %v4184_v17  ;;  %v4936_v26 = vld [vmem:[#allocation5 + $0x6a4] sm:$0xf] }
  0x78   :  { %1802 = vmatpush.bf16.msra.mxu3 %v3579_v5  ;;  %v3912_v25 = vld [vmem:[#allocation5 + $0x5b0] sm:$0xf0]  ;;  %v4968_v28 = vld [vmem:[#allocation5 + $0x7a4] sm:$0xf]  ;;  %v3787_v30 = vor.u32 %v4872_v21, %v3784_v22 }
  0x79   :  { %v4040_v27 = vld [vmem:[#allocation5 + $0x6b0] sm:$0xf0]  ;;  %1764 = vmatmul.bf16.vlgmr.msra.gmra.mxu0 %v5307_v34  ;;  %v3915_v31 = vor.u32 %v4904_v23, %v3912_v25  ;;  %v4868_v36 = vld [vmem:[#allocation5 + $0x484] sm:$0xf] }
  0x7a   :  { %1808 = vmatpush.bf16.msrb.mxu0 %v3819_v6  ;;  %1790 = vmatmul.bf16.vlgmr.msra.gmra.mxu2 %v5305_v33  ;;  %v4168_v29 = vld [vmem:[#allocation5 + $0x7b0] sm:$0xf0]  ;;  %v4043_v35 = vor.u32 %v4936_v26, %v4040_v27  ;;  %v4900_v43 = vld [vmem:[#allocation5 + $0x584] sm:$0xf] }
  0x7b   :  { %1821 = vmatpush.bf16.msrb.mxu1 %v3947_v7  ;;  %1834 = vmatpush.bf16.msrb.mxu2 %v4075_v8  ;;  %v3768_v39 = vld [vmem:[#allocation5 + $0x490] sm:$0xf0]  ;;  %v4171_v44 = vor.u32 %v4968_v28, %v4168_v29  ;;  %v4932_v46 = vld [vmem:[#allocation5 + $0x684] sm:$0xf] }
  0x7c   :  { %1847 = vmatpush.bf16.msrb.mxu3 %v4203_v12  ;;  %1777 = vmatmul.bf16.vlgmr.msra.gmra.mxu1 %v5311_v42  ;;  %v3896_v45 = vld [vmem:[#allocation5 + $0x590] sm:$0xf0]  ;;  %v4964_v48 = vld [vmem:[#allocation5 + $0x784] sm:$0xf]  ;;  %v3771_v50 = vor.u32 %v4868_v36, %v3768_v39  ;;  %v3310_v39 = vld [vmem:[#allocation5 + $0xe8] sm:$0xf] }
  0x7d   :  { %1803 = vmatmul.bf16.vlgmr.msra.gmra.mxu3 %v5309_v41  ;;  %v4024_v47 = vld [vmem:[#allocation5 + $0x690] sm:$0xf0]  ;;  %v3899_v51 = vor.u32 %v4900_v43, %v3896_v45  ;;  %v4864_v53 = vld [vmem:[#allocation5 + $0x464] sm:$0xf]  ;;  %v4755_v43 = vld [vmem:[#allocation5 + $0xf4] sm:$0xf0] }
  0x7e   :  { %1809 = vmatpush.bf16.msrb.mxu0 %v3803_v18  ;;  %v4152_v49 = vld [vmem:[#allocation5 + $0x790] sm:$0xf0]  ;;  %v4027_v52 = vor.u32 %v4932_v46, %v4024_v47  ;;  %v4896_v55 = vld [vmem:[#allocation5 + $0x564] sm:$0xf]  ;;  %v4787_v46 = vld [vmem:[#allocation5 + $0x1f4] sm:$0xf0] }
  0x7f   :  { %1822 = vmatpush.bf16.msrb.mxu1 %v3931_v19  ;;  %1835 = vmatpush.bf16.msrb.mxu2 %v4059_v20  ;;  %v3752_v54 = vld [vmem:[#allocation5 + $0x470] sm:$0xf0]  ;;  %v4155_v56 = vor.u32 %v4964_v48, %v4152_v49  ;;  %v4928_v58 = vld [vmem:[#allocation5 + $0x664] sm:$0xf]  ;;  %v3566_v47 = vld [vmem:[#allocation5 + $0x2e8] sm:$0xf] }
  0x80   :  { %1848 = vmatpush.bf16.msrb.mxu3 %v4187_v24  ;;  %v3880_v57 = vld [vmem:[#allocation5 + $0x570] sm:$0xf0]  ;;  %v4960_v60 = vld [vmem:[#allocation5 + $0x764] sm:$0xf]  ;;  %v3755_v62 = vor.u32 %v4864_v53, %v3752_v54  ;;  %v4819_v48 = vld [vmem:[#allocation5 + $0x2f4] sm:$0xf0]  ;;  %v3311_v54 = vor.u32 %v4755_v43, %v3310_v39 }
  0x81   :  { %v4008_v59 = vld [vmem:[#allocation5 + $0x670] sm:$0xf0]  ;;  %v3883_v63 = vor.u32 %v4896_v55, %v3880_v57  ;;  %v4860_v1 = vld [vmem:[#allocation5 + $0x444] sm:$0xf]  ;;  %v3294_v57 = vld [vmem:[#allocation5 + $0xc8] sm:$0xf] }
  0x82   :  { %1810 = vmatpush.bf16.msrb.mxu0 %v3787_v30  ;;  %v4136_v61 = vld [vmem:[#allocation5 + $0x770] sm:$0xf0]  ;;  %v4011_v0 = vor.u32 %v4928_v58, %v4008_v59  ;;  %v4892_v3 = vld [vmem:[#allocation5 + $0x544] sm:$0xf]  ;;  %v4751_v58 = vld [vmem:[#allocation5 + $0xd4] sm:$0xf0] }
  0x83   :  { %1823 = vmatpush.bf16.msrb.mxu1 %v3915_v31  ;;  %1836 = vmatpush.bf16.msrb.mxu2 %v4043_v35  ;;  %v3736_v2 = vld [vmem:[#allocation5 + $0x450] sm:$0xf0]  ;;  %v4139_v4 = vor.u32 %v4960_v60, %v4136_v61  ;;  %v4924_v6 = vld [vmem:[#allocation5 + $0x644] sm:$0xf]  ;;  %v3422_v59 = vld [vmem:[#allocation5 + $0x1c8] sm:$0xf] }
  0x84   :  { %1849 = vmatpush.bf16.msrb.mxu3 %v4171_v44  ;;  %v3864_v5 = vld [vmem:[#allocation5 + $0x550] sm:$0xf0]  ;;  %v4956_v8 = vld [vmem:[#allocation5 + $0x744] sm:$0xf]  ;;  %v3739_v10 = vor.u32 %v4860_v1, %v3736_v2  ;;  %v3438_v44 = vld [vmem:[#allocation5 + $0x1e8] sm:$0xf]  ;;  %v3295_v2 = vor.u32 %v4751_v58, %v3294_v57 }
  0x85   :  { %v3992_v7 = vld [vmem:[#allocation5 + $0x650] sm:$0xf0]  ;;  %v3867_v11 = vor.u32 %v4892_v3, %v3864_v5  ;;  %v4856_v13 = vld [vmem:[#allocation5 + $0x424] sm:$0xf]  ;;  %v3439_v55 = vor.u32 %v4787_v46, %v3438_v44  ;;  %v4783_v61 = vld [vmem:[#allocation5 + $0x1d4] sm:$0xf0] }
  0x86   :  { %1811 = vmatpush.bf16.msrb.mxu0 %v3771_v50  ;;  %v4120_v9 = vld [vmem:[#allocation5 + $0x750] sm:$0xf0]  ;;  %v3995_v12 = vor.u32 %v4924_v6, %v3992_v7  ;;  %v4888_v15 = vld [vmem:[#allocation5 + $0x524] sm:$0xf]  ;;  %v4847_v1 = vld [vmem:[#allocation5 + $0x3d4] sm:$0xf0]  ;;  %v3423_v3 = vor.u32 %v4783_v61, %v3422_v59 }
  0x87   :  { %1824 = vmatpush.bf16.msrb.mxu1 %v3899_v51  ;;  %1837 = vmatpush.bf16.msrb.mxu2 %v4027_v52  ;;  %v3720_v14 = vld [vmem:[#allocation5 + $0x430] sm:$0xf0]  ;;  %v4123_v16 = vor.u32 %v4956_v8, %v4120_v9  ;;  %v4920_v18 = vld [vmem:[#allocation5 + $0x624] sm:$0xf]  ;;  %v3694_v51 = vld [vmem:[#allocation5 + $0x3e8] sm:$0xf] }
  0x88   :  { %1850 = vmatpush.bf16.msrb.mxu3 %v4155_v56  ;;  %v3848_v17 = vld [vmem:[#allocation5 + $0x530] sm:$0xf0]  ;;  %v4952_v20 = vld [vmem:[#allocation5 + $0x724] sm:$0xf]  ;;  %v3723_v22 = vor.u32 %v4856_v13, %v3720_v14  ;;  %v4851_v52 = vld [vmem:[#allocation5 + $0x3f4] sm:$0xf0]  ;;  %v3567_v56 = vor.u32 %v4819_v48, %v3566_v47 }
  0x89   :  { %v3976_v19 = vld [vmem:[#allocation5 + $0x630] sm:$0xf0]  ;;  %v4852_v23 = vld [vmem:[#allocation5 + $0x404] sm:$0xf]  ;;  %v3851_v25 = vor.u32 %v4888_v15, %v3848_v17  ;;  %v3695_v60 = vor.u32 %v4851_v52, %v3694_v51  ;;  %v3278_v5 = vld [vmem:[#allocation5 + $0xa8] sm:$0xf] }
  0x8a   :  { %1812 = vmatpush.bf16.msrb.mxu0 %v3755_v62  ;;  %v4104_v21 = vld [vmem:[#allocation5 + $0x730] sm:$0xf0]  ;;  %v3979_v26 = vor.u32 %v4920_v18, %v3976_v19  ;;  %v4884_v27 = vld [vmem:[#allocation5 + $0x504] sm:$0xf]  ;;  %v3550_v62 = vld [vmem:[#allocation5 + $0x2c8] sm:$0xf] }
  0x8b   :  { %1825 = vmatpush.bf16.msrb.mxu1 %v3883_v63  ;;  %1838 = vmatpush.bf16.msrb.mxu2 %v4011_v0  ;;  %v3704_v24 = vld [vmem:[#allocation5 + $0x410] sm:$0xf0]  ;;  %v4916_v29 = vld [vmem:[#allocation5 + $0x604] sm:$0xf]  ;;  %v4107_v30 = vor.u32 %v4952_v20, %v4104_v21  ;;  %v4815_v63 = vld [vmem:[#allocation5 + $0x2d4] sm:$0xf0] }
  0x8c   :  { %1851 = vmatpush.bf16.msrb.mxu3 %v4139_v4  ;;  %v3832_v28 = vld [vmem:[#allocation5 + $0x510] sm:$0xf0]  ;;  %v4948_v35 = vld [vmem:[#allocation5 + $0x704] sm:$0xf]  ;;  %v3707_v45 = vor.u32 %v4852_v23, %v3704_v24  ;;  %v3678_v0 = vld [vmem:[#allocation5 + $0x3c8] sm:$0xf]  ;;  %v3551_v4 = vor.u32 %v4815_v63, %v3550_v62 }
  0x8d   :  { %v3960_v31 = vld [vmem:[#allocation5 + $0x610] sm:$0xf0]  ;;  %v3835_v49 = vor.u32 %v4884_v27, %v3832_v28  ;;  %v4747_v6 = vld [vmem:[#allocation5 + $0xb4] sm:$0xf0]  ;;  %v3406_v7 = vld [vmem:[#allocation5 + $0x1a8] sm:$0xf]  ;;  %v3679_v8 = vor.u32 %v4847_v1, %v3678_v0 }
  0x8e   :  { %1813 = vmatpush.bf16.msrb.mxu0 %v3739_v10  ;;  %v4088_v36 = vld [vmem:[#allocation5 + $0x710] sm:$0xf0]  ;;  %v3963_v50 = vor.u32 %v4916_v29, %v3960_v31  ;;  %v4779_v9 = vld [vmem:[#allocation5 + $0x1b4] sm:$0xf0]  ;;  %v3534_v10 = vld [vmem:[#allocation5 + $0x2a8] sm:$0xf]  ;;  %v3279_v14 = vor.u32 %v4747_v6, %v3278_v5 }
  0x8f   :  { %1826 = vmatpush.bf16.msrb.mxu1 %v3867_v11  ;;  %1839 = vmatpush.bf16.msrb.mxu2 %v3995_v12  ;;  %v4091_v53 = vor.u32 %v4948_v35, %v4088_v36  ;;  %v4811_v11 = vld [vmem:[#allocation5 + $0x2b4] sm:$0xf0]  ;;  %v3662_v12 = vld [vmem:[#allocation5 + $0x3a8] sm:$0xf]  ;;  %v3407_v15 = vor.u32 %v4779_v9, %v3406_v7 }
  0x90   :  { %1852 = vmatpush.bf16.msrb.mxu3 %v4123_v16  ;;  %v4843_v13 = vld [vmem:[#allocation5 + $0x3b4] sm:$0xf0]  ;;  %v3535_v16 = vor.u32 %v4811_v11, %v3534_v10  ;;  %v3262_v17 = vld [vmem:[#allocation5 + $0x88] sm:$0xf] }
  0x91   :  { %v4743_v18 = vld [vmem:[#allocation5 + $0x94] sm:$0xf0]  ;;  %v3390_v19 = vld [vmem:[#allocation5 + $0x188] sm:$0xf]  ;;  %v3663_v20 = vor.u32 %v4843_v13, %v3662_v12 }
  0x92   :  { %1814 = vmatpush.bf16.msrb.mxu0 %v3723_v22  ;;  %v4775_v21 = vld [vmem:[#allocation5 + $0x194] sm:$0xf0]  ;;  %v3518_v22 = vld [vmem:[#allocation5 + $0x288] sm:$0xf] }
  0x93   :  { %1827 = vmatpush.bf16.msrb.mxu1 %v3851_v25  ;;  %1840 = vmatpush.bf16.msrb.mxu2 %v3979_v26  ;;  %v4807_v23 = vld [vmem:[#allocation5 + $0x294] sm:$0xf0]  ;;  %v3646_v24 = vld [vmem:[#allocation5 + $0x388] sm:$0xf]  ;;  %v3263_v26 = vor.u32 %v4743_v18, %v3262_v17  ;;  %v3391_v27 = vor.u32 %v4775_v21, %v3390_v19 }
  0x94   :  { %1853 = vmatpush.bf16.msrb.mxu3 %v4107_v30  ;;  %v4839_v25 = vld [vmem:[#allocation5 + $0x394] sm:$0xf0]  ;;  %v3519_v28 = vor.u32 %v4807_v23, %v3518_v22  ;;  %v3246_v29 = vld [vmem:[#allocation5 + $0x68] sm:$0xf] }
  0x95   :  { %v4739_v30 = vld [vmem:[#allocation5 + $0x74] sm:$0xf0]  ;;  %v3374_v31 = vld [vmem:[#allocation5 + $0x168] sm:$0xf]  ;;  %v3647_v35 = vor.u32 %v4839_v25, %v3646_v24 }
  0x96   :  { %1815 = vmatpush.bf16.msrb.mxu0 %v3707_v45  ;;  %v4771_v36 = vld [vmem:[#allocation5 + $0x174] sm:$0xf0]  ;;  %v3502_v39 = vld [vmem:[#allocation5 + $0x268] sm:$0xf]  ;;  %v3247_v46 = vor.u32 %v4739_v30, %v3246_v29 }
  0x97   :  { %1828 = vmatpush.bf16.msrb.mxu1 %v3835_v49  ;;  %1841 = vmatpush.bf16.msrb.mxu2 %v3963_v50  ;;  %v4803_v43 = vld [vmem:[#allocation5 + $0x274] sm:$0xf0]  ;;  %v3630_v44 = vld [vmem:[#allocation5 + $0x368] sm:$0xf]  ;;  %v3375_v47 = vor.u32 %v4771_v36, %v3374_v31 }
  0x98   :  { %1854 = vmatpush.bf16.msrb.mxu3 %v4091_v53  ;;  %v4835_v45 = vld [vmem:[#allocation5 + $0x374] sm:$0xf0]  ;;  %v3503_v48 = vor.u32 %v4803_v43, %v3502_v39  ;;  %v3230_v49 = vld [vmem:[#allocation5 + $0x48] sm:$0xf] }
  0x99   :  { %1816 = vmatmul.bf16.vlgmr.msrb.gmra.mxu0 %v5319_v37  ;;  %v4735_v50 = vld [vmem:[#allocation5 + $0x54] sm:$0xf0]  ;;  %v3358_v51 = vld [vmem:[#allocation5 + $0x148] sm:$0xf]  ;;  %v3631_v52 = vor.u32 %v4835_v45, %v3630_v44 }
  0x9a   :  { %1860 = vmatpush.bf16.msra.mxu0 %v3311_v54  ;;  %1842 = vmatmul.bf16.vlgmr.msrb.gmra.mxu2 %v5317_v32  ;;  %v4767_v53 = vld [vmem:[#allocation5 + $0x154] sm:$0xf0]  ;;  %v3486_v54 = vld [vmem:[#allocation5 + $0x248] sm:$0xf]  ;;  %v3231_v58 = vor.u32 %v4735_v50, %v3230_v49 }
  0x9b   :  { %1873 = vmatpush.bf16.msra.mxu1 %v3439_v55  ;;  %1886 = vmatpush.bf16.msra.mxu2 %v3567_v56  ;;  %v4799_v55 = vld [vmem:[#allocation5 + $0x254] sm:$0xf0]  ;;  %v3614_v56 = vld [vmem:[#allocation5 + $0x348] sm:$0xf]  ;;  %v3359_v59 = vor.u32 %v4767_v53, %v3358_v51 }
  0x9c   :  { %1899 = vmatpush.bf16.msra.mxu3 %v3695_v60  ;;  %1829 = vmatmul.bf16.vlgmr.msrb.gmra.mxu1 %v5323_v40  ;;  %v4831_v57 = vld [vmem:[#allocation5 + $0x354] sm:$0xf0]  ;;  %v3487_v60 = vor.u32 %v4799_v55, %v3486_v54  ;;  %v3214_v61 = vld [vmem:[#allocation5 + $0x28] sm:$0xf] }
  0x9d   :  { %1855 = vmatmul.bf16.vlgmr.msrb.gmra.mxu3 %v5321_v38  ;;  %v4731_v62 = vld [vmem:[#allocation5 + $0x34] sm:$0xf0]  ;;  %v3342_v63 = vld [vmem:[#allocation5 + $0x128] sm:$0xf]  ;;  %v3615_v0 = vor.u32 %v4831_v57, %v3614_v56 }
  0x9e   :  { %1861 = vmatpush.bf16.msra.mxu0 %v3295_v2  ;;  %v4763_v1 = vld [vmem:[#allocation5 + $0x134] sm:$0xf0]  ;;  %v3470_v2 = vld [vmem:[#allocation5 + $0x228] sm:$0xf]  ;;  %v3215_v6 = vor.u32 %v4731_v62, %v3214_v61 }
  0x9f   :  { %1874 = vmatpush.bf16.msra.mxu1 %v3423_v3  ;;  %1887 = vmatpush.bf16.msra.mxu2 %v3551_v4  ;;  %v4795_v3 = vld [vmem:[#allocation5 + $0x234] sm:$0xf0]  ;;  %v3598_v4 = vld [vmem:[#allocation5 + $0x328] sm:$0xf]  ;;  %v3343_v9 = vor.u32 %v4763_v1, %v3342_v63 }
  0xa0   :  { %1900 = vmatpush.bf16.msra.mxu3 %v3679_v8  ;;  %v4827_v5 = vld [vmem:[#allocation5 + $0x334] sm:$0xf0]  ;;  %v3198_v7 = vld [vmem:[#allocation5 + $0x8] sm:$0xf]  ;;  %v3471_v10 = vor.u32 %v4795_v3, %v3470_v2 }
  0xa1   :  { %v4727_v8 = vld [vmem:[#allocation5 + $0x14] sm:$0xf0]  ;;  %v3326_v11 = vld [vmem:[#allocation5 + $0x108] sm:$0xf] }
  0xa2   :  { %1862 = vmatpush.bf16.msra.mxu0 %v3279_v14  ;;  %v4759_v12 = vld [vmem:[#allocation5 + $0x114] sm:$0xf0]  ;;  %v3454_v13 = vld [vmem:[#allocation5 + $0x208] sm:$0xf]  ;;  %v3599_v14 = vor.u32 %v4827_v5, %v3598_v4  ;;  %v3199_v21 = vor.u32 %v4727_v8, %v3198_v7 }
  0xa3   :  { %1875 = vmatpush.bf16.msra.mxu1 %v3407_v15  ;;  %1888 = vmatpush.bf16.msra.mxu2 %v3535_v16  ;;  %v4791_v15 = vld [vmem:[#allocation5 + $0x214] sm:$0xf0]  ;;  %v3582_v16 = vld [vmem:[#allocation5 + $0x308] sm:$0xf]  ;;  %v3327_v25 = vor.u32 %v4759_v12, %v3326_v11 }
  0xa4   :  { %1901 = vmatpush.bf16.msra.mxu3 %v3663_v20  ;;  %v4823_v17 = vld [vmem:[#allocation5 + $0x314] sm:$0xf0]  ;;  %v3822_v18 = vld [vmem:[#allocation5 + $0x4e8] sm:$0xf] }
  0xa5   :  { %v4883_v19 = vld [vmem:[#allocation5 + $0x4f4] sm:$0xf0]  ;;  %v3950_v20 = vld [vmem:[#allocation5 + $0x5e8] sm:$0xf]  ;;  %v3583_v29 = vor.u32 %v4823_v17, %v3582_v16 }
  0xa6   :  { %1863 = vmatpush.bf16.msra.mxu0 %v3263_v26  ;;  %v4915_v22 = vld [vmem:[#allocation5 + $0x5f4] sm:$0xf0]  ;;  %v4078_v23 = vld [vmem:[#allocation5 + $0x6e8] sm:$0xf]  ;;  %v3455_v26 = vor.u32 %v4791_v15, %v3454_v13  ;;  %v3823_v30 = vor.u32 %v4883_v19, %v3822_v18 }
  0xa7   :  { %1876 = vmatpush.bf16.msra.mxu1 %v3391_v27  ;;  %1889 = vmatpush.bf16.msra.mxu2 %v3519_v28  ;;  %v4947_v24 = vld [vmem:[#allocation5 + $0x6f4] sm:$0xf0]  ;;  %v4206_v27 = vld [vmem:[#allocation5 + $0x7e8] sm:$0xf]  ;;  %v3951_v31 = vor.u32 %v4915_v22, %v3950_v20 }
  0xa8   :  { %1902 = vmatpush.bf16.msra.mxu3 %v3647_v35  ;;  %v4979_v28 = vld [vmem:[#allocation5 + $0x7f4] sm:$0xf0]  ;;  %v4079_v35 = vor.u32 %v4947_v24, %v4078_v23  ;;  %v3806_v36 = vld [vmem:[#allocation5 + $0x4c8] sm:$0xf] }
  0xa9   :  { %v4879_v39 = vld [vmem:[#allocation5 + $0x4d4] sm:$0xf0]  ;;  %v3934_v43 = vld [vmem:[#allocation5 + $0x5c8] sm:$0xf]  ;;  %v4207_v44 = vor.u32 %v4979_v28, %v4206_v27 }
  0xaa   :  { %1864 = vmatpush.bf16.msra.mxu0 %v3247_v46  ;;  %v4911_v45 = vld [vmem:[#allocation5 + $0x5d4] sm:$0xf0]  ;;  %v4062_v46 = vld [vmem:[#allocation5 + $0x6c8] sm:$0xf]  ;;  %v3807_v50 = vor.u32 %v4879_v39, %v3806_v36 }
  0xab   :  { %1877 = vmatpush.bf16.msra.mxu1 %v3375_v47  ;;  %1890 = vmatpush.bf16.msra.mxu2 %v3503_v48  ;;  %v4943_v47 = vld [vmem:[#allocation5 + $0x6d4] sm:$0xf0]  ;;  %v4190_v48 = vld [vmem:[#allocation5 + $0x7c8] sm:$0xf]  ;;  %v3935_v51 = vor.u32 %v4911_v45, %v3934_v43 }
  0xac   :  { %1903 = vmatpush.bf16.msra.mxu3 %v3631_v52  ;;  %v4975_v49 = vld [vmem:[#allocation5 + $0x7d4] sm:$0xf0]  ;;  %v4063_v52 = vor.u32 %v4943_v47, %v4062_v46  ;;  %v3790_v53 = vld [vmem:[#allocation5 + $0x4a8] sm:$0xf] }
  0xad   :  { %v4875_v54 = vld [vmem:[#allocation5 + $0x4b4] sm:$0xf0]  ;;  %v3918_v55 = vld [vmem:[#allocation5 + $0x5a8] sm:$0xf]  ;;  %v4191_v56 = vor.u32 %v4975_v49, %v4190_v48 }
  0xae   :  { %1865 = vmatpush.bf16.msra.mxu0 %v3231_v58  ;;  %v4907_v57 = vld [vmem:[#allocation5 + $0x5b4] sm:$0xf0]  ;;  %v4046_v58 = vld [vmem:[#allocation5 + $0x6a8] sm:$0xf]  ;;  %v3791_v62 = vor.u32 %v4875_v54, %v3790_v53 }
  0xaf   :  { %1878 = vmatpush.bf16.msra.mxu1 %v3359_v59  ;;  %1891 = vmatpush.bf16.msra.mxu2 %v3487_v60  ;;  %v4939_v59 = vld [vmem:[#allocation5 + $0x6b4] sm:$0xf0]  ;;  %v4174_v60 = vld [vmem:[#allocation5 + $0x7a8] sm:$0xf]  ;;  %v3919_v63 = vor.u32 %v4907_v57, %v3918_v55 }
  0xb0   :  { %1904 = vmatpush.bf16.msra.mxu3 %v3615_v0  ;;  %v4971_v61 = vld [vmem:[#allocation5 + $0x7b4] sm:$0xf0]  ;;  %v4047_v0 = vor.u32 %v4939_v59, %v4046_v58  ;;  %v3774_v1 = vld [vmem:[#allocation5 + $0x488] sm:$0xf] }
  0xb1   :  { %v4871_v2 = vld [vmem:[#allocation5 + $0x494] sm:$0xf0]  ;;  %v3902_v3 = vld [vmem:[#allocation5 + $0x588] sm:$0xf]  ;;  %v4175_v4 = vor.u32 %v4971_v61, %v4174_v60 }
  0xb2   :  { %1866 = vmatpush.bf16.msra.mxu0 %v3215_v6  ;;  %v4903_v5 = vld [vmem:[#allocation5 + $0x594] sm:$0xf0]  ;;  %v4030_v6 = vld [vmem:[#allocation5 + $0x688] sm:$0xf] }
  0xb3   :  { %1879 = vmatpush.bf16.msra.mxu1 %v3343_v9  ;;  %1892 = vmatpush.bf16.msra.mxu2 %v3471_v10  ;;  %v4935_v7 = vld [vmem:[#allocation5 + $0x694] sm:$0xf0]  ;;  %v4158_v8 = vld [vmem:[#allocation5 + $0x788] sm:$0xf]  ;;  %v3775_v10 = vor.u32 %v4871_v2, %v3774_v1  ;;  %v3903_v11 = vor.u32 %v4903_v5, %v3902_v3 }
  0xb4   :  { %1905 = vmatpush.bf16.msra.mxu3 %v3599_v14  ;;  %v4967_v9 = vld [vmem:[#allocation5 + $0x794] sm:$0xf0]  ;;  %v4031_v12 = vor.u32 %v4935_v7, %v4030_v6  ;;  %v3758_v13 = vld [vmem:[#allocation5 + $0x468] sm:$0xf]  ;;  %v4753_v6 = vld [vmem:[#allocation5 + $0xec] sm:$0xf] }
  0xb5   :  { %v4867_v14 = vld [vmem:[#allocation5 + $0x474] sm:$0xf0]  ;;  %v3886_v15 = vld [vmem:[#allocation5 + $0x568] sm:$0xf]  ;;  %v4159_v16 = vor.u32 %v4967_v9, %v4158_v8  ;;  %v3312_v7 = vld [vmem:[#allocation5 + $0xf8] sm:$0xf0] }
  0xb6   :  { %1867 = vmatpush.bf16.msra.mxu0 %v3199_v21  ;;  %v4899_v17 = vld [vmem:[#allocation5 + $0x574] sm:$0xf0]  ;;  %v4014_v18 = vld [vmem:[#allocation5 + $0x668] sm:$0xf]  ;;  %v3759_v22 = vor.u32 %v4867_v14, %v3758_v13  ;;  %v4785_v8 = vld [vmem:[#allocation5 + $0x1ec] sm:$0xf] }
  0xb7   :  { %1880 = vmatpush.bf16.msra.mxu1 %v3327_v25  ;;  %1893 = vmatpush.bf16.msra.mxu2 %v3455_v26  ;;  %v4931_v19 = vld [vmem:[#allocation5 + $0x674] sm:$0xf0]  ;;  %v4142_v20 = vld [vmem:[#allocation5 + $0x768] sm:$0xf]  ;;  %v3887_v24 = vor.u32 %v4899_v17, %v3886_v15  ;;  %v3568_v13 = vld [vmem:[#allocation5 + $0x2f8] sm:$0xf0] }
  0xb8   :  { %1906 = vmatpush.bf16.msra.mxu3 %v3583_v29  ;;  %v4963_v21 = vld [vmem:[#allocation5 + $0x774] sm:$0xf0]  ;;  %v3742_v23 = vld [vmem:[#allocation5 + $0x448] sm:$0xf]  ;;  %v4015_v25 = vor.u32 %v4931_v19, %v4014_v18  ;;  %v4849_v17 = vld [vmem:[#allocation5 + $0x3ec] sm:$0xf] }
  0xb9   :  { %1868 = vmatmul.bf16.vlgmr.msra.gmra.mxu0 %v5307_v34  ;;  %v4863_v26 = vld [vmem:[#allocation5 + $0x454] sm:$0xf0]  ;;  %v3870_v27 = vld [vmem:[#allocation5 + $0x548] sm:$0xf]  ;;  %v4143_v29 = vor.u32 %v4963_v21, %v4142_v20  ;;  %v3696_v18 = vld [vmem:[#allocation5 + $0x3f8] sm:$0xf0]  ;;  %v3315_v20 = vor.u32 %v4753_v6, %v3312_v7 }
  0xba   :  { %1912 = vmatpush.bf16.msrb.mxu0 %v3823_v30  ;;  %1894 = vmatmul.bf16.vlgmr.msra.gmra.mxu2 %v5305_v33  ;;  %v4895_v28 = vld [vmem:[#allocation5 + $0x554] sm:$0xf0]  ;;  %v3998_v30 = vld [vmem:[#allocation5 + $0x648] sm:$0xf]  ;;  %v3743_v43 = vor.u32 %v4863_v26, %v3742_v23  ;;  %v4781_v26 = vld [vmem:[#allocation5 + $0x1cc] sm:$0xf] }
  0xbb   :  { %1925 = vmatpush.bf16.msrb.mxu1 %v3951_v31  ;;  %1938 = vmatpush.bf16.msrb.mxu2 %v4079_v35  ;;  %v4927_v31 = vld [vmem:[#allocation5 + $0x654] sm:$0xf0]  ;;  %v77_v35 = vld [vmem:[#allocation8] sm:$0xff]  ;;  %v4126_v36 = vld [vmem:[#allocation5 + $0x748] sm:$0xf]  ;;  %v3871_v45 = vor.u32 %v4895_v28, %v3870_v27 }
  0xbc   :  { %1951 = vmatpush.bf16.msrb.mxu3 %v4207_v44  ;;  %1881 = vmatmul.bf16.vlgmr.msra.gmra.mxu1 %v5311_v42  ;;  %v4959_v39 = vld [vmem:[#allocation5 + $0x754] sm:$0xf0]  ;;  %v3726_v44 = vld [vmem:[#allocation5 + $0x428] sm:$0xf]  ;;  %v3999_v46 = vor.u32 %v4927_v31, %v3998_v30  ;;  %v368_v49 = vperm.slane %v77_v35, 0 }
  0xbd   :  { %1907 = vmatmul.bf16.vlgmr.msra.gmra.mxu3 %v5309_v41  ;;  %v4859_v47 = vld [vmem:[#allocation5 + $0x434] sm:$0xf0]  ;;  %v3854_v48 = vld [vmem:[#allocation5 + $0x528] sm:$0xf]  ;;  %v3424_v30 = vld [vmem:[#allocation5 + $0x1d8] sm:$0xf0] }
  0xbe   :  { %1913 = vmatpush.bf16.msrb.mxu0 %v3807_v50  ;;  %v4127_v50 = vor.u32 %v4959_v39, %v4126_v36  ;;  %v4923_v53 = vld [vmem:[#allocation5 + $0x634] sm:$0xf0]  ;;  %v4110_v54 = vld [vmem:[#allocation5 + $0x728] sm:$0xf]  ;;  %v4813_v31 = vld [vmem:[#allocation5 + $0x2cc] sm:$0xf] }
  0xbf   :  { %1926 = vmatpush.bf16.msrb.mxu1 %v3935_v51  ;;  %1939 = vmatpush.bf16.msrb.mxu2 %v4063_v52  ;;  %v4891_v51 = vld [vmem:[#allocation5 + $0x534] sm:$0xf0]  ;;  %v3982_v52 = vld [vmem:[#allocation5 + $0x628] sm:$0xf]  ;;  %v3552_v35 = vld [vmem:[#allocation5 + $0x2d8] sm:$0xf0] }
  0xc0   :  { %1952 = vmatpush.bf16.msrb.mxu3 %v4191_v56  ;;  %v4955_v55 = vld [vmem:[#allocation5 + $0x734] sm:$0xf0]  ;;  %v3727_v56 = vor.u32 %v4859_v47, %v3726_v44  ;;  %v3710_v57 = vld [vmem:[#allocation5 + $0x408] sm:$0xf]  ;;  %v3855_v60 = vor.u32 %v4891_v51, %v3854_v48  ;;  %v3983_v61 = vor.u32 %v4923_v53, %v3982_v52  ;;  %v4845_v39 = vld [vmem:[#allocation5 + $0x3cc] sm:$0xf]  ;;  %v3555_v47 = vor.u32 %v4813_v31, %v3552_v35 }
  0xc1   :  { %v4855_v58 = vld [vmem:[#allocation5 + $0x414] sm:$0xf0]  ;;  %v4111_v2 = vor.u32 %v4955_v55, %v4110_v54  ;;  %v4745_v48 = vld [vmem:[#allocation5 + $0xac] sm:$0xf]  ;;  %v3408_v53 = vld [vmem:[#allocation5 + $0x1b8] sm:$0xf0] }
  0xc2   :  { %1914 = vmatpush.bf16.msrb.mxu0 %v3791_v62  ;;  %v3838_v62 = vld [vmem:[#allocation5 + $0x508] sm:$0xf]  ;;  %v4919_v3 = vld [vmem:[#allocation5 + $0x614] sm:$0xf0]  ;;  %v4809_v54 = vld [vmem:[#allocation5 + $0x2ac] sm:$0xf] }
  0xc3   :  { %1927 = vmatpush.bf16.msrb.mxu1 %v3919_v63  ;;  %1940 = vmatpush.bf16.msrb.mxu2 %v4047_v0  ;;  %v4887_v63 = vld [vmem:[#allocation5 + $0x514] sm:$0xf0]  ;;  %v3966_v0 = vld [vmem:[#allocation5 + $0x608] sm:$0xf]  ;;  %v3536_v55 = vld [vmem:[#allocation5 + $0x2b8] sm:$0xf0] }
  0xc4   :  { %1953 = vmatpush.bf16.msrb.mxu3 %v4175_v4  ;;  %v4094_v4 = vld [vmem:[#allocation5 + $0x708] sm:$0xf]  ;;  %v4951_v5 = vld [vmem:[#allocation5 + $0x714] sm:$0xf0]  ;;  %v3839_v15 = vor.u32 %v4887_v63, %v3838_v62  ;;  %v4741_v62 = vld [vmem:[#allocation5 + $0x8c] sm:$0xf] }
  0xc5   :  { %v4095_v19 = vor.u32 %v4951_v5, %v4094_v4  ;;  %v3264_v63 = vld [vmem:[#allocation5 + $0x98] sm:$0xf0]  ;;  %v4805_v4 = vld [vmem:[#allocation5 + $0x28c] sm:$0xf] }
  0xc6   :  { %1915 = vmatpush.bf16.msrb.mxu0 %v3775_v10  ;;  %v3711_v10 = vor.u32 %v4855_v58, %v3710_v57  ;;  %v3664_v57 = vld [vmem:[#allocation5 + $0x3b8] sm:$0xf0]  ;;  %v4837_v6 = vld [vmem:[#allocation5 + $0x38c] sm:$0xf] }
  0xc7   :  { %1928 = vmatpush.bf16.msrb.mxu1 %v3903_v11  ;;  %1941 = vmatpush.bf16.msrb.mxu2 %v4031_v12  ;;  %v3440_v11 = vld [vmem:[#allocation5 + $0x1f8] sm:$0xf0]  ;;  %v4817_v12 = vld [vmem:[#allocation5 + $0x2ec] sm:$0xf] }
  0xc8   :  { %1954 = vmatpush.bf16.msrb.mxu3 %v4159_v16  ;;  %v3967_v16 = vor.u32 %v4919_v3, %v3966_v0  ;;  %v3571_v23 = vor.u32 %v4817_v12, %v3568_v13  ;;  %v4773_v0 = vld [vmem:[#allocation5 + $0x18c] sm:$0xf]  ;;  %v3392_v3 = vld [vmem:[#allocation5 + $0x198] sm:$0xf0] }
  0xc9   :  { %v1661_v59 = vpop.f32.mrf.mxu0  ;;  %v3520_v5 = vld [vmem:[#allocation5 + $0x298] sm:$0xf0]  ;;  %v4737_v12 = vld [vmem:[#allocation5 + $0x6c] sm:$0xf] }
  0xca   :  { %1916 = vmatpush.bf16.msrb.mxu0 %v3759_v22  ;;  %v1662_v1 = vadd.f32 %v1661_v59, %v368_v49  ;;  %v1674_v9 = vpop.f32.mrf.mxu1  ;;  %v3443_v22 = vor.u32 %v4785_v8, %v3440_v11  ;;  %v3280_v49 = vld [vmem:[#allocation5 + $0xb8] sm:$0xf0]  ;;  %v3267_v8 = vor.u32 %v4741_v62, %v3264_v63  ;;  %v3523_v11 = vor.u32 %v4805_v4, %v3520_v5  ;;  %v4725_v63 = vld [vmem:[#allocation5 + $0xc] sm:$0xf] }
  0xcb   :  { %1929 = vmatpush.bf16.msrb.mxu1 %v3887_v24  ;;  %1942 = vmatpush.bf16.msrb.mxu2 %v4015_v25  ;;  %v4749_v24 = vld [vmem:[#allocation5 + $0xcc] sm:$0xf]  ;;  %v3296_v25 = vld [vmem:[#allocation5 + $0xd8] sm:$0xf0]  ;;  %v3283_v58 = vor.u32 %v4745_v48, %v3280_v49 }
  0xcc   :  { %1955 = vmatpush.bf16.msrb.mxu3 %v4143_v29  ;;  %v1675_v14 = vadd.f32 %v1674_v9, %v1662_v1  ;;  %v3699_v29 = vor.u32 %v4849_v17, %v3696_v18  ;;  %v3648_v7 = vld [vmem:[#allocation5 + $0x398] sm:$0xf0]  ;;  %v4789_v5 = vld [vmem:[#allocation5 + $0x20c] sm:$0xf] }
  0xcd   :  { %v3248_v13 = vld [vmem:[#allocation5 + $0x78] sm:$0xf0]  ;;  %v3651_v17 = vor.u32 %v4837_v6, %v3648_v7 }
  0xce   :  { %1917 = vmatpush.bf16.msrb.mxu0 %v3743_v43  ;;  %v3680_v43 = vld [vmem:[#allocation5 + $0x3d8] sm:$0xf0] }
  0xcf   :  { %1930 = vmatpush.bf16.msrb.mxu1 %v3871_v45  ;;  %1943 = vmatpush.bf16.msrb.mxu2 %v3999_v46  ;;  %v1687_v21 = vpop.f32.mrf.mxu2  ;;  %v3299_v45 = vor.u32 %v4749_v24, %v3296_v25  ;;  %v3427_v46 = vor.u32 %v4781_v26, %v3424_v30  ;;  %v3683_v52 = vor.u32 %v4845_v39, %v3680_v43  ;;  %v3376_v18 = vld [vmem:[#allocation5 + $0x178] sm:$0xf0] }
  0xd0   :  { %1956 = vmatpush.bf16.msrb.mxu3 %v4127_v50  ;;  %v1688_v27 = vadd.f32 %v1687_v21, %v1675_v14  ;;  %v1700_v28 = vpop.f32.mrf.mxu3  ;;  %v4777_v50 = vld [vmem:[#allocation5 + $0x1ac] sm:$0xf]  ;;  %v3251_v24 = vor.u32 %v4737_v12, %v3248_v13  ;;  %v3360_v35 = vld [vmem:[#allocation5 + $0x158] sm:$0xf0] }
  0xd1   :  { %v1663_v36 = vpop.f32.mrf.mxu0  ;;  %v4769_v14 = vld [vmem:[#allocation5 + $0x16c] sm:$0xf]  ;;  %v3488_v39 = vld [vmem:[#allocation5 + $0x258] sm:$0xf0] }
  0xd2   :  { %1918 = vmatpush.bf16.msrb.mxu0 %v3727_v56  ;;  %v1701_v44 = vadd.f32 %v1700_v28, %v1688_v27  ;;  %v1676_v51 = vpop.f32.mrf.mxu1  ;;  %v4841_v56 = vld [vmem:[#allocation5 + $0x3ac] sm:$0xf]  ;;  %v3379_v25 = vor.u32 %v4769_v14, %v3376_v18  ;;  %v3232_v28 = vld [vmem:[#allocation5 + $0x58] sm:$0xf0] }
  0xd3   :  { %1931 = vmatpush.bf16.msrb.mxu1 %v3855_v60  ;;  %1944 = vmatpush.bf16.msrb.mxu2 %v3983_v61  ;;  %v3411_v60 = vor.u32 %v4777_v50, %v3408_v53  ;;  %v3539_v61 = vor.u32 %v4809_v54, %v3536_v55  ;;  %v4833_v21 = vld [vmem:[#allocation5 + $0x36c] sm:$0xf]  ;;  %v3216_v53 = vld [vmem:[#allocation5 + $0x38] sm:$0xf0] }
  0xd4   :  { %1957 = vmatpush.bf16.msrb.mxu3 %v4111_v2  ;;  %v3667_v2 = vor.u32 %v4841_v56, %v3664_v57  ;;  %v4733_v27 = vld [vmem:[#allocation5 + $0x4c] sm:$0xf]  ;;  %v3344_v57 = vld [vmem:[#allocation5 + $0x138] sm:$0xf0] }
  0xd5   :  { %v4797_v36 = vld [vmem:[#allocation5 + $0x24c] sm:$0xf]  ;;  %v3328_v4 = vld [vmem:[#allocation5 + $0x118] sm:$0xf0] }
  0xd6   :  { %1919 = vmatpush.bf16.msrb.mxu0 %v3711_v10  ;;  %v3395_v10 = vor.u32 %v4773_v0, %v3392_v3  ;;  %v3491_v51 = vor.u32 %v4797_v36, %v3488_v39  ;;  %v4761_v54 = vld [vmem:[#allocation5 + $0x12c] sm:$0xf]  ;;  %v3200_v0 = vld [vmem:[#allocation5 + $0x18] sm:$0xf0] }
  0xd7   :  { %1932 = vmatpush.bf16.msrb.mxu1 %v3839_v15  ;;  %1945 = vmatpush.bf16.msrb.mxu2 %v3967_v16  ;;  %v1689_v59 = vpop.f32.mrf.mxu2  ;;  %v4757_v3 = vld [vmem:[#allocation5 + $0x10c] sm:$0xf]  ;;  %v3824_v13 = vld [vmem:[#allocation5 + $0x4f8] sm:$0xf0] }
  0xd8   :  { %1958 = vmatpush.bf16.msrb.mxu3 %v4095_v19  ;;  %v1702_v1 = vpop.f32.mrf.mxu3  ;;  %v4801_v19 = vld [vmem:[#allocation5 + $0x26c] sm:$0xf]  ;;  %v3472_v59 = vld [vmem:[#allocation5 + $0x238] sm:$0xf0] }
  0xd9   :  { %1920 = vmatmul.bf16.vlgmr.msrb.gmra.mxu0 %v5319_v37  ;;  %v3347_v1 = vor.u32 %v4761_v54, %v3344_v57  ;;  %v4881_v12 = vld [vmem:[#allocation5 + $0x4ec] sm:$0xf]  ;;  %v4080_v18 = vld [vmem:[#allocation5 + $0x6f8] sm:$0xf0] }
  0xda   :  { %1964 = vmatpush.bf16.msra.mxu0 %v3315_v20  ;;  %1946 = vmatmul.bf16.vlgmr.msrb.gmra.mxu2 %v5317_v32  ;;  %v1713_v9 = vpop.f32.mrf.mxu0  ;;  %v3504_v20 = vld [vmem:[#allocation5 + $0x278] sm:$0xf0]  ;;  %v4913_v14 = vld [vmem:[#allocation5 + $0x5ec] sm:$0xf] }
  0xdb   :  { %1977 = vmatpush.bf16.msra.mxu1 %v3443_v22  ;;  %1990 = vmatpush.bf16.msra.mxu2 %v3571_v23  ;;  %v1714_v15 = vadd.f32 %v1713_v9, %v1701_v44  ;;  %v1726_v16 = vpop.f32.mrf.mxu1  ;;  %v3632_v22 = vld [vmem:[#allocation5 + $0x378] sm:$0xf0]  ;;  %v3507_v26 = vor.u32 %v4801_v19, %v3504_v20  ;;  %v4821_v9 = vld [vmem:[#allocation5 + $0x30c] sm:$0xf]  ;;  %v3331_v19 = vor.u32 %v4757_v3, %v3328_v4 }
  0xdc   :  { %2003 = vmatpush.bf16.msra.mxu3 %v3699_v29  ;;  %1933 = vmatmul.bf16.vlgmr.msrb.gmra.mxu1 %v5323_v40  ;;  %v4765_v29 = vld [vmem:[#allocation5 + $0x14c] sm:$0xf]  ;;  %v3635_v31 = vor.u32 %v4833_v21, %v3632_v22  ;;  %v4208_v22 = vld [vmem:[#allocation5 + $0x7f8] sm:$0xf0] }
  0xdd   :  { %1959 = vmatmul.bf16.vlgmr.msrb.gmra.mxu3 %v5321_v38  ;;  %v1727_v23 = vadd.f32 %v1726_v16, %v1714_v15  ;;  %v3363_v50 = vor.u32 %v4765_v29, %v3360_v35  ;;  %v3203_v15 = vor.u32 %v4725_v63, %v3200_v0  ;;  %v3952_v16 = vld [vmem:[#allocation5 + $0x5f8] sm:$0xf0]  ;;  %v4977_v21 = vld [vmem:[#allocation5 + $0x7ec] sm:$0xf] }
  0xde   :  { %1965 = vmatpush.bf16.msra.mxu0 %v3299_v45  ;;  %v4829_v45 = vld [vmem:[#allocation5 + $0x34c] sm:$0xf]  ;;  %v4064_v36 = vld [vmem:[#allocation5 + $0x6d8] sm:$0xf0] }
  0xdf   :  { %1978 = vmatpush.bf16.msra.mxu1 %v3427_v46  ;;  %1991 = vmatpush.bf16.msra.mxu2 %v3555_v47  ;;  %v1739_v30 = vpop.f32.mrf.mxu2  ;;  %v3616_v46 = vld [vmem:[#allocation5 + $0x358] sm:$0xf0]  ;;  %v3235_v47 = vor.u32 %v4733_v27, %v3232_v28  ;;  %v4877_v27 = vld [vmem:[#allocation5 + $0x4cc] sm:$0xf] }
  0xe0   :  { %2004 = vmatpush.bf16.msra.mxu3 %v3683_v52  ;;  %v1740_v43 = vadd.f32 %v1739_v30, %v1727_v23  ;;  %v1752_v44 = vpop.f32.mrf.mxu3  ;;  %v4729_v52 = vld [vmem:[#allocation5 + $0x2c] sm:$0xf]  ;;  %v3619_v56 = vor.u32 %v4829_v45, %v3616_v46  ;;  %v3808_v28 = vld [vmem:[#allocation5 + $0x4d8] sm:$0xf0]  ;;  %v4211_v30 = vor.u32 %v4977_v21, %v4208_v22 }
  0xe1   :  { %v3219_v62 = vor.u32 %v4729_v52, %v3216_v53  ;;  %v4909_v29 = vld [vmem:[#allocation5 + $0x5cc] sm:$0xf]  ;;  %v4048_v54 = vld [vmem:[#allocation5 + $0x6b8] sm:$0xf0] }
  0xe2   :  { %1966 = vmatpush.bf16.msra.mxu0 %v3283_v58  ;;  %v5345_v48 = vadd.f32 %v1752_v44, %v1740_v43  ;;  %v1715_v49 = vpop.f32.mrf.mxu0  ;;  %v4793_v58 = vld [vmem:[#allocation5 + $0x22c] sm:$0xf]  ;;  %v4192_v43 = vld [vmem:[#allocation5 + $0x7d8] sm:$0xf0]  ;;  %v3811_v44 = vor.u32 %v4877_v27, %v3808_v28 }
  0xe3   :  { %1979 = vmatpush.bf16.msra.mxu1 %v3411_v60  ;;  %1992 = vmatpush.bf16.msra.mxu2 %v3539_v61  ;;  %v1728_v55 = vpop.f32.mrf.mxu1  ;;  %v4825_v60 = vld [vmem:[#allocation5 + $0x32c] sm:$0xf]  ;;  %v3600_v61 = vld [vmem:[#allocation5 + $0x338] sm:$0xf0] }
  0xe4   :  { %2005 = vmatpush.bf16.msra.mxu3 %v3667_v2  ;;  %v3475_v2 = vor.u32 %v4793_v58, %v3472_v59  ;;  %v3603_v7 = vor.u32 %v4825_v60, %v3600_v61  ;;  %v4941_v35 = vld [vmem:[#allocation5 + $0x6cc] sm:$0xf]  ;;  %v3792_v49 = vld [vmem:[#allocation5 + $0x4b8] sm:$0xf0] }
  0xe5   :  { %v4973_v39 = vld [vmem:[#allocation5 + $0x7cc] sm:$0xf]  ;;  %v4176_v57 = vld [vmem:[#allocation5 + $0x7b8] sm:$0xf0] }
  0xe6   :  { %1967 = vmatpush.bf16.msra.mxu0 %v3267_v8  ;;  %v3456_v8 = vld [vmem:[#allocation5 + $0x218] sm:$0xf0]  ;;  %v4873_v45 = vld [vmem:[#allocation5 + $0x4ac] sm:$0xf]  ;;  %v4195_v52 = vor.u32 %v4973_v39, %v4192_v43 }
  0xe7   :  { %1980 = vmatpush.bf16.msra.mxu1 %v3395_v10  ;;  %1993 = vmatpush.bf16.msra.mxu2 %v3523_v11  ;;  %v1741_v6 = vpop.f32.mrf.mxu2  ;;  %v3584_v10 = vld [vmem:[#allocation5 + $0x318] sm:$0xf0]  ;;  %v3459_v20 = vor.u32 %v4789_v5, %v3456_v8  ;;  %v4937_v53 = vld [vmem:[#allocation5 + $0x6ac] sm:$0xf]  ;;  %v3795_v58 = vor.u32 %v4873_v45, %v3792_v49 }
  0xe8   :  { %2006 = vmatpush.bf16.msra.mxu3 %v3651_v17  ;;  %v1754_v11 = vpop.f32.mrf.mxu3  ;;  %v4945_v17 = vld [vmem:[#allocation5 + $0x6ec] sm:$0xf]  ;;  %v3587_v23 = vor.u32 %v4821_v9, %v3584_v10  ;;  %v4051_v61 = vor.u32 %v4937_v53, %v4048_v54  ;;  %v3760_v8 = vld [vmem:[#allocation5 + $0x478] sm:$0xf0] }
  0xe9   :  { %v5348_v55 = vld [vmem:[#allocation8 + $0x8] sm:$0xff]  ;;  %v3872_v27 = vld [vmem:[#allocation5 + $0x558] sm:$0xf0] }
  0xea   :  { %1968 = vmatpush.bf16.msra.mxu0 %v3251_v24  ;;  %v3827_v24 = vor.u32 %v4881_v12, %v3824_v13  ;;  %v4869_v59 = vld [vmem:[#allocation5 + $0x48c] sm:$0xf]  ;;  %v369_v63 = vperm.slane %v5348_v55, 0  ;;  %v3888_v13 = vld [vmem:[#allocation5 + $0x578] sm:$0xf0] }
  0xeb   :  { %1981 = vmatpush.bf16.msra.mxu1 %v3379_v25  ;;  %1994 = vmatpush.bf16.msra.mxu2 %v3507_v26  ;;  %v3955_v25 = vor.u32 %v4913_v14, %v3952_v16  ;;  %v4083_v26 = vor.u32 %v4945_v17, %v4080_v18  ;;  %v4965_v3 = vld [vmem:[#allocation5 + $0x78c] sm:$0xf]  ;;  %v4144_v17 = vld [vmem:[#allocation5 + $0x778] sm:$0xf0] }
  0xec   :  { %2007 = vmatpush.bf16.msra.mxu3 %v3635_v31  ;;  %v3936_v31 = vld [vmem:[#allocation5 + $0x5d8] sm:$0xf0]  ;;  %v4897_v9 = vld [vmem:[#allocation5 + $0x56c] sm:$0xf] }
  0xed   :  { %v3939_v46 = vor.u32 %v4909_v29, %v3936_v31  ;;  %v4929_v14 = vld [vmem:[#allocation5 + $0x66c] sm:$0xf]  ;;  %v4000_v29 = vld [vmem:[#allocation5 + $0x658] sm:$0xf0] }
  0xee   :  { %1969 = vmatpush.bf16.msra.mxu0 %v3235_v47  ;;  %v4067_v47 = vor.u32 %v4941_v35, %v4064_v36  ;;  %v4961_v16 = vld [vmem:[#allocation5 + $0x76c] sm:$0xf]  ;;  %v4128_v36 = vld [vmem:[#allocation5 + $0x758] sm:$0xf0] }
  0xef   :  { %1982 = vmatpush.bf16.msra.mxu1 %v3363_v50  ;;  %1995 = vmatpush.bf16.msra.mxu2 %v3491_v51  ;;  %v4905_v50 = vld [vmem:[#allocation5 + $0x5ac] sm:$0xf]  ;;  %v3920_v51 = vld [vmem:[#allocation5 + $0x5b8] sm:$0xf0] }
  0xf0   :  { %2008 = vmatpush.bf16.msra.mxu3 %v3619_v56  ;;  %v4969_v56 = vld [vmem:[#allocation5 + $0x7ac] sm:$0xf]  ;;  %v3923_v60 = vor.u32 %v4905_v50, %v3920_v51  ;;  %v3728_v49 = vld [vmem:[#allocation5 + $0x438] sm:$0xf0] }
  0xf1   :  { %v4179_v0 = vor.u32 %v4969_v56, %v4176_v57  ;;  %v4861_v22 = vld [vmem:[#allocation5 + $0x44c] sm:$0xf]  ;;  %v3856_v53 = vld [vmem:[#allocation5 + $0x538] sm:$0xf0] }
  0xf2   :  { %1970 = vmatpush.bf16.msra.mxu0 %v3219_v62  ;;  %v4901_v62 = vld [vmem:[#allocation5 + $0x58c] sm:$0xf]  ;;  %v3984_v56 = vld [vmem:[#allocation5 + $0x638] sm:$0xf0] }
  0xf3   :  { %1983 = vmatpush.bf16.msra.mxu1 %v3347_v1  ;;  %1996 = vmatpush.bf16.msra.mxu2 %v3475_v2  ;;  %v3904_v1 = vld [vmem:[#allocation5 + $0x598] sm:$0xf0]  ;;  %v4933_v2 = vld [vmem:[#allocation5 + $0x68c] sm:$0xf] }
  0xf4   :  { %2009 = vmatpush.bf16.msra.mxu3 %v3603_v7  ;;  %v4865_v7 = vld [vmem:[#allocation5 + $0x46c] sm:$0xf] }
  0xf5   :  { %v4925_v28 = vld [vmem:[#allocation5 + $0x64c] sm:$0xf] }
  0xf6   :  { %1971 = vmatpush.bf16.msra.mxu0 %v3203_v15  ;;  %v1765_v5 = vpop.f32.mrf.mxu0  ;;  %v4016_v15 = vld [vmem:[#allocation5 + $0x678] sm:$0xf0]  ;;  %v4957_v35 = vld [vmem:[#allocation5 + $0x74c] sm:$0xf] }
  0xf7   :  { %1984 = vmatpush.bf16.msra.mxu1 %v3331_v19  ;;  %1997 = vmatpush.bf16.msra.mxu2 %v3459_v20  ;;  %v1766_v10 = vadd.f32 %v1765_v5, %v369_v63  ;;  %v3763_v19 = vor.u32 %v4865_v7, %v3760_v8  ;;  %v3891_v20 = vor.u32 %v4897_v9, %v3888_v13  ;;  %v4889_v50 = vld [vmem:[#allocation5 + $0x52c] sm:$0xf]  ;;  %v4096_v5 = vld [vmem:[#allocation5 + $0x718] sm:$0xf0] }
  0xf8   :  { %2010 = vmatpush.bf16.msra.mxu3 %v3587_v23  ;;  %v4019_v21 = vor.u32 %v4929_v14, %v4016_v15  ;;  %v3744_v23 = vld [vmem:[#allocation5 + $0x458] sm:$0xf0]  ;;  %v4921_v54 = vld [vmem:[#allocation5 + $0x62c] sm:$0xf] }
  0xf9   :  { %1972 = vmatmul.bf16.vlgmr.msra.gmra.mxu0 %v5307_v34  ;;  %v4032_v34 = vld [vmem:[#allocation5 + $0x698] sm:$0xf0]  ;;  %v1778_v11 = vpop.f32.mrf.mxu1  ;;  %v3747_v39 = vor.u32 %v4861_v22, %v3744_v23  ;;  %v4953_v57 = vld [vmem:[#allocation5 + $0x72c] sm:$0xf] }
  0xfa   :  { %2016 = vmatpush.bf16.msrb.mxu0 %v3827_v24  ;;  %1998 = vmatmul.bf16.vlgmr.msra.gmra.mxu2 %v5305_v33  ;;  %v3776_v33 = vld [vmem:[#allocation5 + $0x498] sm:$0xf0]  ;;  %v4035_v6 = vor.u32 %v4933_v2, %v4032_v34  ;;  %v1779_v18 = vadd.f32 %v1778_v11, %v1766_v10  ;;  %v4893_v24 = vld [vmem:[#allocation5 + $0x54c] sm:$0xf] }
  0xfb   :  { %2029 = vmatpush.bf16.msrb.mxu1 %v3955_v25  ;;  %2042 = vmatpush.bf16.msrb.mxu2 %v4083_v26  ;;  %v3779_v4 = vor.u32 %v4869_v59, %v3776_v33  ;;  %v4147_v26 = vor.u32 %v4961_v16, %v4144_v17  ;;  %v3875_v45 = vor.u32 %v4893_v24, %v3872_v27  ;;  %v4853_v33 = vld [vmem:[#allocation5 + $0x40c] sm:$0xf]  ;;  %v3840_v2 = vld [vmem:[#allocation5 + $0x518] sm:$0xf0] }
  0xfc   :  { %2055 = vmatpush.bf16.msrb.mxu3 %v4211_v30  ;;  %1985 = vmatmul.bf16.vlgmr.msra.gmra.mxu1 %v5311_v42  ;;  %v3907_v42 = vor.u32 %v4901_v62, %v3904_v1  ;;  %v3712_v62 = vld [vmem:[#allocation5 + $0x418] sm:$0xf0]  ;;  %v4885_v63 = vld [vmem:[#allocation5 + $0x50c] sm:$0xf] }
  0xfd   :  { %2011 = vmatmul.bf16.vlgmr.msra.gmra.mxu3 %v5309_v41  ;;  %v4160_v41 = vld [vmem:[#allocation5 + $0x798] sm:$0xf0]  ;;  %v1791_v25 = vpop.f32.mrf.mxu2  ;;  %v4917_v34 = vld [vmem:[#allocation5 + $0x60c] sm:$0xf] }
  0xfe   :  { %2017 = vmatpush.bf16.msrb.mxu0 %v3811_v44  ;;  %v4163_v12 = vor.u32 %v4965_v3, %v4160_v41  ;;  %v1792_v30 = vadd.f32 %v1791_v25, %v1779_v18  ;;  %v1767_v44 = vpop.f32.mrf.mxu0  ;;  %v3968_v3 = vld [vmem:[#allocation5 + $0x618] sm:$0xf0] }
  0xff   :  { %2030 = vmatpush.bf16.msrb.mxu1 %v3939_v46  ;;  %2043 = vmatpush.bf16.msrb.mxu2 %v4067_v47  ;;  %v4003_v46 = vor.u32 %v4925_v28, %v4000_v29  ;;  %v4857_v47 = vld [vmem:[#allocation5 + $0x42c] sm:$0xf]  ;;  %v3971_v7 = vor.u32 %v4917_v34, %v3968_v3 }
 0x100   :  { %2056 = vmatpush.bf16.msrb.mxu3 %v4195_v52  ;;  %v1804_v31 = vpop.f32.mrf.mxu3  ;;  %v4131_v52 = vor.u32 %v4957_v35, %v4128_v36  ;;  %v3731_v59 = vor.u32 %v4857_v47, %v3728_v49 }
 0x101   :  { %v1805_v43 = vadd.f32 %v1804_v31, %v1792_v30  ;;  %v1780_v51 = vpop.f32.mrf.mxu1 }
 0x102   :  { %2018 = vmatpush.bf16.msrb.mxu0 %v3795_v58  ;;  %v4112_v58 = vld [vmem:[#allocation5 + $0x738] sm:$0xf0] }
 0x103   :  { %2031 = vmatpush.bf16.msrb.mxu1 %v3923_v60  ;;  %2044 = vmatpush.bf16.msrb.mxu2 %v4051_v61  ;;  %v3859_v60 = vor.u32 %v4889_v50, %v3856_v53  ;;  %v3987_v61 = vor.u32 %v4921_v54, %v3984_v56  ;;  %v4115_v1 = vor.u32 %v4953_v57, %v4112_v58  ;;  %v5363_v53 = vld [vmem:[#allocation8 + $0x18] sm:$0xff] }
 0x104   :  { %2057 = vmatpush.bf16.msrb.mxu3 %v4179_v0  ;;  %v371_v56 = vperm.slane %v5363_v53, 0 }
 0x105   :  { %v1793_v0 = vpop.f32.mrf.mxu2 }
 0x106   :  { %2019 = vmatpush.bf16.msrb.mxu0 %v3779_v4  ;;  %v4949_v4 = vld [vmem:[#allocation5 + $0x70c] sm:$0xf] }
 0x107   :  { %2032 = vmatpush.bf16.msrb.mxu1 %v3907_v42  ;;  %2045 = vmatpush.bf16.msrb.mxu2 %v4035_v6  ;;  %v3715_v42 = vor.u32 %v4853_v33, %v3712_v62  ;;  %v3843_v6 = vor.u32 %v4885_v63, %v3840_v2  ;;  %v4099_v8 = vor.u32 %v4949_v4, %v4096_v5 }
 0x108   :  { %2058 = vmatpush.bf16.msrb.mxu3 %v4163_v12  ;;  %v1806_v41 = vpop.f32.mrf.mxu3 }
 0x10a   :  { %2020 = vmatpush.bf16.msrb.mxu0 %v3763_v19 }
 0x10b   :  { %2033 = vmatpush.bf16.msrb.mxu1 %v3891_v20  ;;  %2046 = vmatpush.bf16.msrb.mxu2 %v4019_v21 }
 0x10c   :  { %2059 = vmatpush.bf16.msrb.mxu3 %v4147_v26 }
 0x10e   :  { %2021 = vmatpush.bf16.msrb.mxu0 %v3747_v39 }
 0x10f   :  { %2034 = vmatpush.bf16.msrb.mxu1 %v3875_v45  ;;  %2047 = vmatpush.bf16.msrb.mxu2 %v4003_v46 }
 0x110   :  { %2060 = vmatpush.bf16.msrb.mxu3 %v4131_v52 }
 0x112   :  { %2022 = vmatpush.bf16.msrb.mxu0 %v3731_v59 }
 0x113   :  { %2035 = vmatpush.bf16.msrb.mxu1 %v3859_v60  ;;  %2048 = vmatpush.bf16.msrb.mxu2 %v3987_v61 }
 0x114   :  { %2061 = vmatpush.bf16.msrb.mxu3 %v4115_v1 }
 0x116   :  { %2023 = vmatpush.bf16.msrb.mxu0 %v3715_v42  ;;  %v1817_v9 = vpop.f32.mrf.mxu0  ;;  %v2069_v42 = vsel %vm2068_vm0, %v5345_v48, 0.0 }
 0x117   :  { %2036 = vmatpush.bf16.msrb.mxu1 %v3843_v6  ;;  %2049 = vmatpush.bf16.msrb.mxu2 %v3971_v7  ;;  %v1818_v10 = vadd.f32 %v1817_v9, %v1805_v43 }
 0x118   :  { %2062 = vmatpush.bf16.msrb.mxu3 %v4099_v8 }
 0x119   :  { %2024 = vmatmul.bf16.vlgmr.msrb.gmra.mxu0 %v5319_v37  ;;  %v1830_v11 = vpop.f32.mrf.mxu1  ;;  %v5360_v37 = vld [vmem:[#allocation8 + $0x10] sm:$0xff] }
 0x11a   :  { %2037 = vmatmul.bf16.vlgmr.msrb.gmra.mxu1 %v5323_v40  ;;  %2050 = vmatmul.bf16.vlgmr.msrb.gmra.mxu2 %v5317_v32  ;;  %v1831_v12 = vadd.f32 %v1830_v11, %v1818_v10  ;;  %v370_v40 = vperm.slane %v5360_v37, 0 }
 0x11b   :  { %2063 = vmatmul.bf16.vlgmr.msrb.gmra.mxu3 %v5321_v38 }
 0x11d   :  { %v1843_v13 = vpop.f32.mrf.mxu2 }
 0x11e   :  { %v1844_v14 = vadd.f32 %v1843_v13, %v1831_v12  ;;  %v1819_v17 = vpop.f32.mrf.mxu0 }
 0x120   :  { %v1856_v15 = vpop.f32.mrf.mxu3 }
 0x121   :  { %v5358_v16 = vadd.f32 %v1856_v15, %v1844_v14  ;;  %v1832_v18 = vpop.f32.mrf.mxu1 }
 0x123   :  { %v2070_v41 = vsel %vm2068_vm0, %v5358_v16, 0.0 }
 0x124   :  { %v2071_v10 = vadd.f32 %v2070_v41, %v2069_v42  ;;  %v4294_v42 = vld [vmem:[#allocation7 + $0xa0] sm:$0xf] }
 0x125   :  { %v1845_v19 = vpop.f32.mrf.mxu2 }
 0x126   :  { %v5266_v19 = vmov 512.0  }
 0x127   :  { %5116 = vrcp.f32 %v5266_v19  ;;  %v4998_v19 = vld [vmem:[#allocation7 + $0x8c] sm:$0xf0] }
 0x128   :  { %v1858_v20 = vpop.f32.mrf.mxu3 }
 0x12d   :  { %v5117_v20 = vpop.eup %5116 }
 0x12e   :  { %vm2083_vm1 = vweird.f32 %v5117_v20 }
 0x136   :  { %v1869_v32 = vpop.f32.mrf.mxu0 }
 0x137   :  { %v1870_v21 = vadd.f32 %v1869_v32, %v370_v40  ;;  %v2079_v40 = vmul.f32 512.0, %v5117_v20 }
 0x139   :  { %v1882_v38 = vpop.f32.mrf.mxu1  ;;  %v2080_v32 = vsub.f32 1.0, %v2079_v40 }
 0x13a   :  { %v1883_v22 = vadd.f32 %v1882_v38, %v1870_v21  ;;  %v4326_v21 = vld [vmem:[#allocation7 + $0xe0] sm:$0xf]  ;;  %v5010_v38 = vld [vmem:[#allocation7 + $0xec] sm:$0xf0] }
 0x13d   :  { %v1895_v23 = vpop.f32.mrf.mxu2 }
 0x13e   :  { %v1896_v24 = vadd.f32 %v1895_v23, %v1883_v22  ;;  %v1871_v27 = vpop.f32.mrf.mxu0  ;;  %v4454_v22 = vld [vmem:[#allocation7 + $0x1e0] sm:$0xf]  ;;  %v4327_v23 = vor.u32 %v5010_v38, %v4326_v21  ;;  %v5062_v38 = vld [vmem:[#allocation7 + $0x28c] sm:$0xf0] }
 0x13f   :  { %v4534_v21 = vld [vmem:[#allocation7 + $0x280] sm:$0xf] }
 0x140   :  { %v1908_v25 = vpop.f32.mrf.mxu3  ;;  %2947 = vmatpush.bf16.msra.mxu0 %v4327_v23  ;;  %v4535_v23 = vor.u32 %v5062_v38, %v4534_v21  ;;  %v4328_v21 = vld [vmem:[#allocation7 + $0xf0] sm:$0xf0]  ;;  %v5040_v38 = vld [vmem:[#allocation7 + $0x1e4] sm:$0xf] }
 0x141   :  { %v1909_v26 = vadd.f32 %v1908_v25, %v1896_v24  ;;  %v1884_v28 = vpop.f32.mrf.mxu1  ;;  %v5042_v24 = vld [vmem:[#allocation7 + $0x1ec] sm:$0xf0]  ;;  %v4582_v25 = vld [vmem:[#allocation7 + $0x2e0] sm:$0xf] }
 0x142   :  { %v4455_v27 = vor.u32 %v5042_v24, %v4454_v22  ;;  %v4662_v24 = vld [vmem:[#allocation7 + $0x380] sm:$0xf] }
 0x144   :  { %2960 = vmatpush.bf16.msra.mxu1 %v4455_v27  ;;  %v4262_v27 = vld [vmem:[#allocation7 + $0x60] sm:$0xf] }
 0x145   :  { %v1897_v29 = vpop.f32.mrf.mxu2 }
 0x146   :  { %v4710_v29 = vld [vmem:[#allocation7 + $0x3e0] sm:$0xf] }
 0x148   :  { %v1910_v30 = vpop.f32.mrf.mxu3 }
 0x149   :  { %v5106_v30 = vld [vmem:[#allocation7 + $0x3ec] sm:$0xf0] }
 0x156   :  { %v1921_v31 = vpop.f32.mrf.mxu0 }
 0x157   :  { %v1922_v60 = vadd.f32 %v1921_v31, %v1909_v26  ;;  %v5074_v26 = vld [vmem:[#allocation7 + $0x2ec] sm:$0xf0]  ;;  %v4310_v31 = vld [vmem:[#allocation7 + $0xc0] sm:$0xf] }
 0x158   :  { %v4583_v28 = vor.u32 %v5074_v26, %v4582_v25  ;;  %v5094_v25 = vld [vmem:[#allocation7 + $0x38c] sm:$0xf0] }
 0x159   :  { %v1934_v35 = vpop.f32.mrf.mxu1  ;;  %v4663_v26 = vor.u32 %v5094_v25, %v4662_v24  ;;  %v5072_v25 = vld [vmem:[#allocation7 + $0x2e4] sm:$0xf] }
 0x15a   :  { %v1935_v33 = vadd.f32 %v1934_v35, %v1922_v60  ;;  %v4711_v35 = vor.u32 %v5106_v30, %v4710_v29  ;;  %2973 = vmatpush.bf16.msra.mxu2 %v4583_v28  ;;  %v4994_v28 = vld [vmem:[#allocation7 + $0x6c] sm:$0xf0]  ;;  %v4390_v29 = vld [vmem:[#allocation7 + $0x160] sm:$0xf] }
 0x15b   :  { %v4263_v30 = vor.u32 %v4994_v28, %v4262_v27  ;;  %v5104_v27 = vld [vmem:[#allocation7 + $0x3e4] sm:$0xf] }
 0x15c   :  { %2986 = vmatpush.bf16.msra.mxu3 %v4711_v35  ;;  %v4518_v35 = vld [vmem:[#allocation7 + $0x260] sm:$0xf] }
 0x15d   :  { %v1947_v36 = vpop.f32.mrf.mxu2 }
 0x15e   :  { %v1923_v43 = vpop.f32.mrf.mxu0  ;;  %v1948_v63 = vadd.f32 %v1947_v36, %v1935_v33  ;;  %v5006_v36 = vld [vmem:[#allocation7 + $0xcc] sm:$0xf0] }
 0x15f   :  { %v5038_v43 = vld [vmem:[#allocation7 + $0x1cc] sm:$0xf0] }
 0x160   :  { %v1960_v39 = vpop.f32.mrf.mxu3 }
 0x161   :  { %v1936_v44 = vpop.f32.mrf.mxu1  ;;  %v5366_v3 = vadd.f32 %v1960_v39, %v1948_v63  ;;  %v4438_v39 = vld [vmem:[#allocation7 + $0x1c0] sm:$0xf] }
 0x162   :  { %v4311_v44 = vor.u32 %v5006_v36, %v4310_v31  ;;  %v5026_v31 = vld [vmem:[#allocation7 + $0x16c] sm:$0xf0] }
 0x163   :  { %v2072_v6 = vsel %vm2068_vm0, %v5366_v3, 0.0  ;;  %v5058_v36 = vld [vmem:[#allocation7 + $0x26c] sm:$0xf0] }
 0x164   :  { %v2073_v13 = vadd.f32 %v2072_v6, %v2071_v10  ;;  %2948 = vmatpush.bf16.msra.mxu0 %v4311_v44  ;;  %v5002_v6 = vld [vmem:[#allocation7 + $0xac] sm:$0xf0]  ;;  %v4550_v10 = vld [vmem:[#allocation7 + $0x2a0] sm:$0xf] }
 0x165   :  { %v1949_v45 = vpop.f32.mrf.mxu2  ;;  %v4646_v44 = vld [vmem:[#allocation7 + $0x360] sm:$0xf] }
 0x166   :  { %v4439_v45 = vor.u32 %v5038_v43, %v4438_v39  ;;  %v4391_v39 = vor.u32 %v5026_v31, %v4390_v29  ;;  %v4519_v43 = vor.u32 %v5058_v36, %v4518_v35  ;;  %v4712_v29 = vld [vmem:[#allocation7 + $0x3f0] sm:$0xf0] }
 0x167   :  { %v4312_v31 = vld [vmem:[#allocation7 + $0xd0] sm:$0xf0]  ;;  %v4715_v35 = vor.u32 %v5104_v27, %v4712_v29  ;;  %v5052_v29 = vld [vmem:[#allocation7 + $0x244] sm:$0xf] }
 0x168   :  { %v1962_v46 = vpop.f32.mrf.mxu3  ;;  %2961 = vmatpush.bf16.msra.mxu1 %v4439_v45  ;;  %v5090_v45 = vld [vmem:[#allocation7 + $0x36c] sm:$0xf0]  ;;  %v4376_v27 = vld [vmem:[#allocation7 + $0x150] sm:$0xf0] }
 0x169   :  { %v4566_v46 = vld [vmem:[#allocation7 + $0x2c0] sm:$0xf] }
 0x176   :  { %v1973_v47 = vpop.f32.mrf.mxu0 }
 0x177   :  { %v1974_v59 = vadd.f32 %v1973_v47, %v371_v56  ;;  %v5070_v47 = vld [vmem:[#allocation7 + $0x2cc] sm:$0xf0] }
 0x179   :  { %v1986_v49 = vpop.f32.mrf.mxu1 }
 0x17a   :  { %v1987_v61 = vadd.f32 %v1986_v49, %v1974_v59  ;;  %v4694_v49 = vld [vmem:[#allocation7 + $0x3c0] sm:$0xf] }
 0x17d   :  { %v1999_v50 = vpop.f32.mrf.mxu2 }
 0x17e   :  { %v1975_v52 = vpop.f32.mrf.mxu0  ;;  %v2000_v62 = vadd.f32 %v1999_v50, %v1987_v61  ;;  %v4567_v50 = vor.u32 %v5070_v47, %v4566_v46  ;;  %v4647_v46 = vor.u32 %v5090_v45, %v4646_v44  ;;  %v4246_v47 = vld [vmem:[#allocation7 + $0x40] sm:$0xf]  ;;  %v5068_v44 = vld [vmem:[#allocation7 + $0x2c4] sm:$0xf] }
 0x180   :  { %v2012_v51 = vpop.f32.mrf.mxu3  ;;  %2974 = vmatpush.bf16.msra.mxu2 %v4567_v50  ;;  %v4374_v50 = vld [vmem:[#allocation7 + $0x140] sm:$0xf] }
 0x181   :  { %v1988_v54 = vpop.f32.mrf.mxu1  ;;  %v2013_v0 = vadd.f32 %v2012_v51, %v2000_v62  ;;  %v5102_v51 = vld [vmem:[#allocation7 + $0x3cc] sm:$0xf0] }
 0x182   :  { %v4695_v52 = vor.u32 %v5102_v51, %v4694_v49  ;;  %v2081_v54 = vmul.f32 %v5117_v20, %v2080_v32  ;;  %v5030_v32 = vld [vmem:[#allocation7 + $0x18c] sm:$0xf0] }
 0x183   :  { %v4990_v49 = vld [vmem:[#allocation7 + $0x4c] sm:$0xf0] }
 0x184   :  { %2987 = vmatpush.bf16.msra.mxu3 %v4695_v52  ;;  %v2082_v56 = vadd.f32 %v5117_v20, %v2081_v54  ;;  %v4247_v51 = vor.u32 %v4990_v49, %v4246_v47  ;;  %v5022_v52 = vld [vmem:[#allocation7 + $0x14c] sm:$0xf0]  ;;  %v4502_v54 = vld [vmem:[#allocation7 + $0x240] sm:$0xf]  ;;  %v5100_v47 = vld [vmem:[#allocation7 + $0x3c4] sm:$0xf] }
 0x185   :  { %v2001_v57 = vpop.f32.mrf.mxu2  ;;  %v4696_v49 = vld [vmem:[#allocation7 + $0x3d0] sm:$0xf0] }
 0x186   :  { %v5375_v57 = vsel %vm2083_vm1, %v5117_v20, %v2082_v56  ;;  %v4406_v20 = vld [vmem:[#allocation7 + $0x180] sm:$0xf]  ;;  %v5054_v56 = vld [vmem:[#allocation7 + $0x24c] sm:$0xf0] }
 0x187   :  { %v4407_v22 = vor.u32 %v5030_v32, %v4406_v20  ;;  %v5078_v20 = vld [vmem:[#allocation7 + $0x30c] sm:$0xf0] }
 0x188   :  { %v2014_v58 = vpop.f32.mrf.mxu3 }
 0x196   :  { %v2025_v1 = vpop.f32.mrf.mxu0 }
 0x197   :  { %v2038_v2 = vpop.f32.mrf.mxu1  ;;  %v2026_v34 = vadd.f32 %v2025_v1, %v2013_v0 }
 0x199   :  { %v2039_v4 = vadd.f32 %v2038_v2, %v2026_v34 }
 0x19d   :  { %v2051_v5 = vpop.f32.mrf.mxu2 }
 0x19e   :  { %v2052_v7 = vadd.f32 %v2051_v5, %v2039_v4  ;;  %v2064_v8 = vpop.f32.mrf.mxu3  ;;  %v2027_v9 = vpop.f32.mrf.mxu0 }
 0x19f   :  { %v2040_v11 = vpop.f32.mrf.mxu1  ;;  %v5034_v9 = vld [vmem:[#allocation7 + $0x1ac] sm:$0xf0] }
 0x1a0   :  { %v2065_v12 = vadd.f32 %v2064_v8, %v2052_v7  ;;  %v4422_v7 = vld [vmem:[#allocation7 + $0x1a0] sm:$0xf]  ;;  %v4295_v8 = vor.u32 %v5002_v6, %v4294_v42  ;;  %v5066_v11 = vld [vmem:[#allocation7 + $0x2ac] sm:$0xf0] }
 0x1a1   :  { %v4614_v6 = vld [vmem:[#allocation7 + $0x320] sm:$0xf] }
 0x1a2   :  { %v2074_v14 = vsel %vm2068_vm0, %v2065_v12, 0.0  ;;  %2949 = vmatpush.bf16.msra.mxu0 %v4295_v8 }
 0x1a3   :  { %v2075_v15 = vadd.f32 %v2074_v14, %v2073_v13  ;;  %v4551_v13 = vor.u32 %v5066_v11, %v4550_v10  ;;  %v4678_v14 = vld [vmem:[#allocation7 + $0x3a0] sm:$0xf]  ;;  %v4982_v10 = vld [vmem:[#allocation7 + $0xc] sm:$0xf0] }
 0x1a4   :  { %v4342_v11 = vld [vmem:[#allocation7 + $0x100] sm:$0xf] }
 0x1a5   :  { %v2053_v17 = vpop.f32.mrf.mxu2  ;;  %2076 = vadd.xlane.f32.xlu0 %v2075_v15  ;;  %v5098_v15 = vld [vmem:[#allocation7 + $0x3ac] sm:$0xf0]  ;;  %2975 = vmatpush.bf16.msra.mxu2 %v4551_v13 }
 0x1a6   :  { %v2066_v18 = vpop.f32.mrf.mxu3  ;;  %v4679_v17 = vor.u32 %v5098_v15, %v4678_v14  ;;  %v5014_v13 = vld [vmem:[#allocation7 + $0x10c] sm:$0xf0]  ;;  %v4470_v14 = vld [vmem:[#allocation7 + $0x200] sm:$0xf] }
 0x1a7   :  { %v4278_v18 = vld [vmem:[#allocation7 + $0x80] sm:$0xf]  ;;  %v5046_v15 = vld [vmem:[#allocation7 + $0x20c] sm:$0xf0] }
 0x1a8   :  { %2988 = vmatpush.bf16.msra.mxu3 %v4679_v17  ;;  %v4279_v40 = vor.u32 %v4998_v19, %v4278_v18  ;;  %v4343_v17 = vor.u32 %v5014_v13, %v4342_v11  ;;  %v4471_v18 = vor.u32 %v5046_v15, %v4470_v14  ;;  %v4598_v19 = vld [vmem:[#allocation7 + $0x300] sm:$0xf]  ;;  %v4992_v13 = vld [vmem:[#allocation7 + $0x64] sm:$0xf]  ;;  %v4264_v14 = vld [vmem:[#allocation7 + $0x70] sm:$0xf0] }
 0x1a9   :  { %2976 = vmatpush.bf16.msra.mxu2 %v4535_v23  ;;  %v4599_v32 = vor.u32 %v5078_v20, %v4598_v19  ;;  %v4392_v19 = vld [vmem:[#allocation7 + $0x170] sm:$0xf0] }
 0x1aa   :  { %2950 = vmatpush.bf16.msra.mxu0 %v4279_v40  ;;  %v5008_v40 = vld [vmem:[#allocation7 + $0xe4] sm:$0xf] }
 0x1ab   :  { %v4331_v23 = vor.u32 %v5008_v40, %v4328_v21  ;;  %v5056_v40 = vld [vmem:[#allocation7 + $0x264] sm:$0xf]  ;;  %v4648_v21 = vld [vmem:[#allocation7 + $0x370] sm:$0xf0] }
 0x1ac   :  { %2989 = vmatpush.bf16.msra.mxu3 %v4663_v26  ;;  %v4584_v26 = vld [vmem:[#allocation7 + $0x2f0] sm:$0xf0] }
 0x1ad   :  { %2977 = vmatpush.bf16.msra.mxu2 %v4519_v43  ;;  %v4587_v28 = vor.u32 %v5072_v25, %v4584_v26  ;;  %v4440_v43 = vld [vmem:[#allocation7 + $0x1d0] sm:$0xf0]  ;;  %v5020_v26 = vld [vmem:[#allocation7 + $0x144] sm:$0xf] }
 0x1ae   :  { %2951 = vmatpush.bf16.msra.mxu0 %v4263_v30  ;;  %v5004_v30 = vld [vmem:[#allocation7 + $0xc4] sm:$0xf]  ;;  %v4248_v25 = vld [vmem:[#allocation7 + $0x50] sm:$0xf0] }
 0x1af   :  { %v4315_v36 = vor.u32 %v5004_v30, %v4312_v31  ;;  %v4504_v30 = vld [vmem:[#allocation7 + $0x250] sm:$0xf0]  ;;  %v5084_v31 = vld [vmem:[#allocation7 + $0x344] sm:$0xf] }
 0x1b0   :  { %2990 = vmatpush.bf16.msra.mxu3 %v4647_v46  ;;  %v4568_v46 = vld [vmem:[#allocation7 + $0x2d0] sm:$0xf0] }
 0x1b2   :  { %2952 = vmatpush.bf16.msra.mxu0 %v4247_v51  ;;  %v4699_v51 = vor.u32 %v5100_v47, %v4696_v49  ;;  %v5016_v47 = vld [vmem:[#allocation7 + $0x124] sm:$0xf]  ;;  %v4360_v49 = vld [vmem:[#allocation7 + $0x130] sm:$0xf0] }
 0x218   :  { %v2077_v58 = vpop.xlane.xlu0 %2076 }
 0x219   :  { %v2085_v59 = vmul.f32 %v5375_v57, %v2077_v58  ;;  %v4375_v58 = vor.u32 %v5022_v52, %v4374_v50  ;;  %v4571_v50 = vor.u32 %v5068_v44, %v4568_v46  ;;  %v5000_v52 = vld [vmem:[#allocation7 + $0xa4] sm:$0xf]  ;;  %v4232_v46 = vld [vmem:[#allocation7 + $0x30] sm:$0xf0] }
 0x21b   :  { %v5379_v60 = vsub.f32 %v5345_v48, %v2085_v59  ;;  %v5382_v61 = vsub.f32 %v5358_v16, %v2085_v59  ;;  %v5385_v33 = vsub.f32 %v5366_v3, %v2085_v59  ;;  %v5387_v62 = vsub.f32 %v2065_v12, %v2085_v59 }
 0x21c   :  { %v4423_v12 = vor.u32 %v5034_v9, %v4422_v7  ;;  %v4503_v59 = vor.u32 %v5054_v56, %v4502_v54  ;;  %v5082_v7 = vld [vmem:[#allocation7 + $0x32c] sm:$0xf0]  ;;  %v4214_v9 = vld [vmem:[#allocation7] sm:$0xf]  ;;  %v4296_v54 = vld [vmem:[#allocation7 + $0xb0] sm:$0xf0] }
 0x21d   :  { %v2090_v63 = vmul.f32 %v5379_v60, %v5379_v60  ;;  %v2091_v0 = vmul.f32 %v5382_v61, %v5382_v61  ;;  %v2092_v1 = vmul.f32 %v5385_v33, %v5385_v33  ;;  %v2093_v48 = vmul.f32 %v5387_v62, %v5387_v62  ;;  %v5032_v56 = vld [vmem:[#allocation7 + $0x1a4] sm:$0xf] }
 0x21e   :  { %2962 = vmatpush.bf16.msra.mxu1 %v4423_v12  ;;  %2978 = vmatpush.bf16.msra.mxu2 %v4503_v59  ;;  %v4615_v8 = vor.u32 %v5082_v7, %v4614_v6  ;;  %v4215_v12 = vor.u32 %v4982_v10, %v4214_v9  ;;  %v5064_v59 = vld [vmem:[#allocation7 + $0x2a4] sm:$0xf]  ;;  %v4536_v7 = vld [vmem:[#allocation7 + $0x290] sm:$0xf0] }
 0x21f   :  { %v2094_v16 = vsel %vm2068_vm0, %v2090_v63, 0.0  ;;  %v2095_v2 = vsel %vm2068_vm0, %v2091_v0, 0.0  ;;  %v2097_v3 = vsel %vm2068_vm0, %v2092_v1, 0.0  ;;  %v2099_v4 = vsel %vm2068_vm0, %v2093_v48, 0.0  ;;  %v4630_v63 = vld [vmem:[#allocation7 + $0x340] sm:$0xf] }
 0x220   :  { %v2096_v34 = vadd.f32 %v2095_v2, %v2094_v16  ;;  %v5086_v0 = vld [vmem:[#allocation7 + $0x34c] sm:$0xf0]  ;;  %v4230_v48 = vld [vmem:[#allocation7 + $0x20] sm:$0xf]  ;;  %v5060_v6 = vld [vmem:[#allocation7 + $0x284] sm:$0xf] }
 0x221   :  { %v4631_v1 = vor.u32 %v5086_v0, %v4630_v63  ;;  %v4986_v16 = vld [vmem:[#allocation7 + $0x2c] sm:$0xf0]  ;;  %v4358_v2 = vld [vmem:[#allocation7 + $0x120] sm:$0xf]  ;;  %v4552_v63 = vld [vmem:[#allocation7 + $0x2b0] sm:$0xf0]  ;;  %v4299_v0 = vor.u32 %v5000_v52, %v4296_v54 }
 0x222   :  { %v2098_v41 = vadd.f32 %v2097_v3, %v2096_v34  ;;  %2963 = vmatpush.bf16.msra.mxu1 %v4407_v22  ;;  %v4231_v34 = vor.u32 %v4986_v16, %v4230_v48  ;;  %v5018_v3 = vld [vmem:[#allocation7 + $0x12c] sm:$0xf0]  ;;  %v4456_v22 = vld [vmem:[#allocation7 + $0x1f0] sm:$0xf0]  ;;  %v5096_v48 = vld [vmem:[#allocation7 + $0x3a4] sm:$0xf] }
 0x223   :  { %2991 = vmatpush.bf16.msra.mxu3 %v4631_v1  ;;  %v4459_v24 = vor.u32 %v5040_v38, %v4456_v22  ;;  %v4680_v16 = vld [vmem:[#allocation7 + $0x3b0] sm:$0xf0]  ;;  %v5092_v9 = vld [vmem:[#allocation7 + $0x384] sm:$0xf]  ;;  %v4267_v38 = vor.u32 %v4992_v13, %v4264_v14 }
 0x224   :  { %v2100_v5 = vadd.f32 %v2099_v4, %v2098_v41  ;;  %v4486_v41 = vld [vmem:[#allocation7 + $0x220] sm:$0xf]  ;;  %v5050_v4 = vld [vmem:[#allocation7 + $0x22c] sm:$0xf0]  ;;  %2953 = vmatpush.bf16.msra.mxu0 %v4231_v34  ;;  %v4555_v34 = vor.u32 %v5064_v59, %v4552_v63  ;;  %v4664_v10 = vld [vmem:[#allocation7 + $0x390] sm:$0xf0] }
 0x225   :  { %v4487_v42 = vor.u32 %v5050_v4, %v4486_v41  ;;  %v5028_v41 = vld [vmem:[#allocation7 + $0x184] sm:$0xf]  ;;  %v4408_v4 = vld [vmem:[#allocation7 + $0x190] sm:$0xf0]  ;;  %v4667_v20 = vor.u32 %v5092_v9, %v4664_v10 }
 0x226   :  { %2101 = vadd.xlane.f32.xlu0 %v2100_v5  ;;  %2964 = vmatpush.bf16.msra.mxu1 %v4391_v39  ;;  %v4359_v5 = vor.u32 %v5018_v3, %v4358_v2  ;;  %v5036_v39 = vld [vmem:[#allocation7 + $0x1c4] sm:$0xf]  ;;  %v4280_v3 = vld [vmem:[#allocation7 + $0x90] sm:$0xf0] }
 0x227   :  { %2979 = vmatpush.bf16.msra.mxu2 %v4487_v42  ;;  %2992 = vmatpush.bf16.msra.mxu3 %v4615_v8  ;;  %v4443_v45 = vor.u32 %v5036_v39, %v4440_v43  ;;  %v4996_v2 = vld [vmem:[#allocation7 + $0x84] sm:$0xf]  ;;  %v4683_v42 = vor.u32 %v5096_v48, %v4680_v16  ;;  %v4379_v39 = vor.u32 %v5020_v26, %v4376_v27  ;;  %v4488_v54 = vld [vmem:[#allocation7 + $0x230] sm:$0xf0] }
 0x228   :  { %2954 = vmatpush.bf16.msra.mxu0 %v4215_v12  ;;  %v4283_v11 = vor.u32 %v4996_v2, %v4280_v3  ;;  %v4411_v12 = vor.u32 %v5028_v41, %v4408_v4  ;;  %v4984_v43 = vld [vmem:[#allocation7 + $0x24] sm:$0xf]  ;;  %v4216_v16 = vld [vmem:[#allocation7 + $0x10] sm:$0xf0] }
 0x229   :  { %v5048_v52 = vld [vmem:[#allocation7 + $0x224] sm:$0xf]  ;;  %v4235_v63 = vor.u32 %v4984_v43, %v4232_v46 }
 0x22a   :  { %2965 = vmatpush.bf16.msra.mxu1 %v4375_v58  ;;  %v4424_v58 = vld [vmem:[#allocation7 + $0x1b0] sm:$0xf0]  ;;  %v4491_v48 = vor.u32 %v5048_v52, %v4488_v54  ;;  %v5012_v2 = vld [vmem:[#allocation7 + $0x104] sm:$0xf] }
 0x22b   :  { %2980 = vmatpush.bf16.msra.mxu2 %v4471_v18  ;;  %2993 = vmatpush.bf16.msra.mxu3 %v4599_v32  ;;  %v4427_v1 = vor.u32 %v5032_v56, %v4424_v58  ;;  %v5024_v18 = vld [vmem:[#allocation7 + $0x164] sm:$0xf]  ;;  %v4520_v32 = vld [vmem:[#allocation7 + $0x270] sm:$0xf0] }
 0x22c   :  { %2999 = vmatpush.bf16.msrb.mxu0 %v4331_v23  ;;  %v4395_v22 = vor.u32 %v5024_v18, %v4392_v19  ;;  %v4988_v23 = vld [vmem:[#allocation7 + $0x44] sm:$0xf]  ;;  %v4616_v58 = vld [vmem:[#allocation7 + $0x330] sm:$0xf0]  ;;  %v2120_v18 = vperm.slane %v5348_v55, 1  ;;  %v2121_v19 = vperm.slane %v5360_v37, 1 }
 0x22d   :  { %v5080_v56 = vld [vmem:[#allocation7 + $0x324] sm:$0xf] }
 0x22e   :  { %2966 = vmatpush.bf16.msra.mxu1 %v4359_v5  ;;  %v4619_v41 = vor.u32 %v5080_v56, %v4616_v58  ;;  %v5044_v4 = vld [vmem:[#allocation7 + $0x204] sm:$0xf] }
 0x22f   :  { %3025 = vmatpush.bf16.msrb.mxu2 %v4587_v28  ;;  %3038 = vmatpush.bf16.msrb.mxu3 %v4715_v35  ;;  %v4632_v35 = vld [vmem:[#allocation7 + $0x350] sm:$0xf0] }
 0x230   :  { %3000 = vmatpush.bf16.msrb.mxu0 %v4315_v36  ;;  %v4251_v36 = vor.u32 %v4988_v23, %v4248_v25 }
 0x232   :  { %2967 = vmatpush.bf16.msra.mxu1 %v4343_v17  ;;  %v4539_v17 = vor.u32 %v5060_v6, %v4536_v7  ;;  %v4600_v6 = vld [vmem:[#allocation7 + $0x310] sm:$0xf0] }
 0x233   :  { %3026 = vmatpush.bf16.msrb.mxu2 %v4571_v50  ;;  %3039 = vmatpush.bf16.msrb.mxu3 %v4699_v51  ;;  %v4635_v51 = vor.u32 %v5084_v31, %v4632_v35 }
 0x234   :  { %3001 = vmatpush.bf16.msrb.mxu0 %v4299_v0  ;;  %v4363_v0 = vor.u32 %v5016_v47, %v4360_v49 }
 0x236   :  { %3012 = vmatpush.bf16.msrb.mxu1 %v4459_v24  ;;  %v4523_v24 = vor.u32 %v5056_v40, %v4520_v32  ;;  %v2128_v40 = vperm.slane %v5348_v55, 2  ;;  %v2129_v32 = vperm.slane %v5360_v37, 2 }
 0x237   :  { %3027 = vmatpush.bf16.msrb.mxu2 %v4555_v34  ;;  %3040 = vmatpush.bf16.msrb.mxu3 %v4683_v42  ;;  %v4344_v34 = vld [vmem:[#allocation7 + $0x110] sm:$0xf0]  ;;  %v5076_v42 = vld [vmem:[#allocation7 + $0x304] sm:$0xf] }
 0x238   :  { %3002 = vmatpush.bf16.msrb.mxu0 %v4283_v11  ;;  %v4347_v9 = vor.u32 %v5012_v2, %v4344_v34  ;;  %v5406_v11 = vld [vmem:[#allocation8] sm:$0xff]  ;;  %v4603_v14 = vor.u32 %v5076_v42, %v4600_v6  ;;  %v4462_v34 = vld [vmem:[#allocation7 + $0x1e8] sm:$0xf] }
 0x239   :  { %v4590_v6 = vld [vmem:[#allocation7 + $0x2e8] sm:$0xf] }
 0x23a   :  { %3013 = vmatpush.bf16.msrb.mxu1 %v4443_v45  ;;  %v4507_v45 = vor.u32 %v5052_v29, %v4504_v30 }
 0x23b   :  { %3028 = vmatpush.bf16.msrb.mxu2 %v4539_v17  ;;  %3041 = vmatpush.bf16.msrb.mxu3 %v4667_v20  ;;  %v2127_v17 = vperm.slane %v5406_v11, 2  ;;  %v2122_v20 = vperm.slane %v5363_v53, 1 }
 0x23c   :  { %3003 = vmatpush.bf16.msrb.mxu0 %v4267_v38 }
 0x23e   :  { %3014 = vmatpush.bf16.msrb.mxu1 %v4427_v1  ;;  %v4980_v1 = vld [vmem:[#allocation7 + $0x4] sm:$0xf] }
 0x23f   :  { %3029 = vmatpush.bf16.msrb.mxu2 %v4523_v24 }
 0x240   :  { %3004 = vmatpush.bf16.msrb.mxu0 %v4251_v36 }
 0x242   :  { %3015 = vmatpush.bf16.msrb.mxu1 %v4411_v12  ;;  %v2119_v12 = vperm.slane %v5406_v11, 1 }
 0x243   :  { %3030 = vmatpush.bf16.msrb.mxu2 %v4507_v45 }
 0x244   :  { %3005 = vmatpush.bf16.msrb.mxu0 %v4235_v63 }
 0x246   :  { %3016 = vmatpush.bf16.msrb.mxu1 %v4395_v22 }
 0x247   :  { %3031 = vmatpush.bf16.msrb.mxu2 %v4491_v48 }
 0x24a   :  { %3017 = vmatpush.bf16.msrb.mxu1 %v4379_v39 }
 0x24e   :  { %3018 = vmatpush.bf16.msrb.mxu1 %v4363_v0  ;;  %v4334_v0 = vld [vmem:[#allocation7 + $0xe8] sm:$0xf] }
 0x252   :  { %3019 = vmatpush.bf16.msrb.mxu1 %v4347_v9 }
 0x299   :  { %v2102_v5 = vpop.xlane.xlu0 %2101 }
 0x29a   :  { %v2103_v8 = vmul.f32 %v2102_v5, %v5375_v57  ;;  %v5088_v57 = vld [vmem:[#allocation7 + $0x364] sm:$0xf]  ;;  %v4472_v5 = vld [vmem:[#allocation7 + $0x210] sm:$0xf0] }
 0x29b   :  { %v4651_v28 = vor.u32 %v5088_v57, %v4648_v21  ;;  %v4475_v10 = vor.u32 %v5044_v4, %v4472_v5  ;;  %v2130_v57 = vperm.slane %v5363_v53, 2 }
 0x29c   :  { %v5402_v15 = vadd.f32 1e-05, %v2103_v8  ;;  %v4219_v8 = vor.u32 %v4980_v1, %v4216_v16  ;;  %v5011_v1 = vld [vmem:[#allocation7 + $0xf4] sm:$0xf0] }
 0x29d   :  { %3042 = vmatpush.bf16.msrb.mxu3 %v4651_v28  ;;  %3032 = vmatpush.bf16.msrb.mxu2 %v4475_v10 }
 0x29e   :  { %5118 = vrsqrt.f32 %v5402_v15  ;;  %vm2111_vm3 = vweird.f32 %v5402_v15  ;;  %3006 = vmatpush.bf16.msrb.mxu0 %v4219_v8 }
 0x2a1   :  { %3043 = vmatpush.bf16.msrb.mxu3 %v4635_v51 }
 0x2a4   :  { %v5119_v44 = vpop.eup %5118 }
 0x2a5   :  { %v2106_v50 = vmul.f32 %v5119_v44, %v5402_v15  ;;  %vm2112_vm2 = vweird.f32 %v5119_v44  ;;  %3044 = vmatpush.bf16.msrb.mxu3 %v4619_v41 }
 0x2a6   :  { %vm2113_vm4 = vmor %vm2111_vm3, %vm2112_vm2 }
 0x2a7   :  { %v2107_v59 = vmul.f32 %v5119_v44, %v2106_v50 }
 0x2a9   :  { %v2108_v3 = vmul.f32 0.5, %v2107_v59  ;;  %3045 = vmatpush.bf16.msrb.mxu3 %v4603_v14  ;;  %v5107_v14 = vld [vmem:[#allocation7 + $0x3f4] sm:$0xf0] }
 0x2ab   :  { %v2109_v7 = vsub.f32 1.5, %v2108_v3  ;;  %v5043_v3 = vld [vmem:[#allocation7 + $0x1f4] sm:$0xf0] }
 0x2ad   :  { %v2110_v13 = vmul.f32 %v5119_v44, %v2109_v7  ;;  %v5075_v7 = vld [vmem:[#allocation7 + $0x2f4] sm:$0xf0] }
 0x2af   :  { %v2114_v21 = vsel %vm2113_vm4, %v5119_v44, %v2110_v13  ;;  %v4718_v13 = vld [vmem:[#allocation7 + $0x3e8] sm:$0xf] }
 0x2b0   :  { %v2115_v15 = vmul.f32 %v2114_v21, %v5379_v60  ;;  %v2116_v38 = vmul.f32 %v2114_v21, %v5382_v61  ;;  %v2117_v22 = vmul.f32 %v2114_v21, %v5385_v33  ;;  %v2118_v23 = vmul.f32 %v2114_v21, %v5387_v62 }
 0x2b1   :  { %v4591_v21 = vor.u32 %v5075_v7, %v4590_v6  ;;  %v4254_v6 = vld [vmem:[#allocation7 + $0x48] sm:$0xf]  ;;  %v4991_v7 = vld [vmem:[#allocation7 + $0x54] sm:$0xf0] }
 0x2b2   :  { %v2123_v24 = vmul.f32 %v2119_v12, %v2115_v15  ;;  %v2124_v25 = vmul.f32 %v2120_v18, %v2116_v38  ;;  %v2125_v55 = vmul.f32 %v2121_v19, %v2117_v22  ;;  %v2126_v26 = vmul.f32 %v2122_v20, %v2118_v23  ;;  %v4318_v20 = vld [vmem:[#allocation7 + $0xc8] sm:$0xf]  ;;  %v5039_v38 = vld [vmem:[#allocation7 + $0x1d4] sm:$0xf0] }
 0x2b3   :  { %v4335_v12 = vor.u32 %v5011_v1, %v4334_v0  ;;  %v4463_v19 = vor.u32 %v5043_v3, %v4462_v34  ;;  %v4446_v15 = vld [vmem:[#allocation7 + $0x1c8] sm:$0xf]  ;;  %v4719_v23 = vor.u32 %v5107_v14, %v4718_v13  ;;  %v4995_v0 = vld [vmem:[#allocation7 + $0x74] sm:$0xf0] }
 0x2b4   :  { %v2131_v37 = vadd.f32 %v2127_v17, %v2123_v24  ;;  %v2132_v27 = vadd.f32 %v2128_v40, %v2124_v25  ;;  %v2133_v53 = vadd.f32 %v2129_v32, %v2125_v55  ;;  %v2134_v28 = vadd.f32 %v2130_v57, %v2126_v26  ;;  %v5007_v40 = vld [vmem:[#allocation7 + $0xd4] sm:$0xf0]  ;;  %v4574_v24 = vld [vmem:[#allocation7 + $0x2c8] sm:$0xf] }
 0x2b5   :  { %v5071_v25 = vld [vmem:[#allocation7 + $0x2d4] sm:$0xf0]  ;;  %v4319_v26 = vor.u32 %v5007_v40, %v4318_v20  ;;  %v4526_v34 = vld [vmem:[#allocation7 + $0x268] sm:$0xf] }
 0x2b6   :  { %v2139_v29 = vmul.f32 0.044715, %v2131_v37  ;;  %v2140_v30 = vmul.f32 0.044715, %v2132_v27  ;;  %v2141_v31 = vmul.f32 0.044715, %v2133_v53 }
 0x2b7   :  { %v2142_v60 = vmul.f32 0.044715, %v2134_v28  ;;  %v2135_v59 = vmul.f32 0.5, %v2131_v37  ;;  %v2136_v16 = vmul.f32 0.5, %v2132_v27  ;;  %v2137_v5 = vmul.f32 0.5, %v2133_v53 }
 0x2b8   :  { %v2143_v35 = vmul.f32 %v2139_v29, %v2131_v37  ;;  %v2144_v61 = vmul.f32 %v2140_v30, %v2132_v27  ;;  %v2145_v36 = vmul.f32 %v2141_v31, %v2133_v53  ;;  %v2138_v9 = vmul.f32 0.5, %v2134_v28  ;;  %v5003_v29 = vld [vmem:[#allocation7 + $0xb4] sm:$0xf0]  ;;  %v4430_v31 = vld [vmem:[#allocation7 + $0x1a8] sm:$0xf] }
 0x2b9   :  { %v2146_v33 = vmul.f32 %v2142_v60, %v2134_v28  ;;  %v4575_v30 = vor.u32 %v5071_v25, %v4574_v24  ;;  %v5035_v60 = vld [vmem:[#allocation7 + $0x1b4] sm:$0xf0]  ;;  %v4510_v13 = vld [vmem:[#allocation7 + $0x248] sm:$0xf] }
 0x2ba   :  { %v2147_v39 = vmul.f32 %v2143_v35, %v2131_v37  ;;  %v2148_v62 = vmul.f32 %v2144_v61, %v2132_v27  ;;  %v2149_v43 = vmul.f32 %v2145_v36, %v2133_v53  ;;  %v4558_v61 = vld [vmem:[#allocation7 + $0x2a8] sm:$0xf]  ;;  %v5067_v36 = vld [vmem:[#allocation7 + $0x2b4] sm:$0xf0] }
 0x2bb   :  { %v2150_v44 = vmul.f32 %v2146_v33, %v2134_v28  ;;  %v5059_v3 = vld [vmem:[#allocation7 + $0x274] sm:$0xf0]  ;;  %v4494_v25 = vld [vmem:[#allocation7 + $0x228] sm:$0xf] }
 0x2bc   :  { %v2151_v45 = vadd.f32 %v2147_v39, %v2131_v37  ;;  %v2152_v46 = vadd.f32 %v2148_v62, %v2132_v27  ;;  %v2153_v47 = vadd.f32 %v2149_v43, %v2133_v53  ;;  %v4702_v37 = vld [vmem:[#allocation7 + $0x3c8] sm:$0xf]  ;;  %v5103_v27 = vld [vmem:[#allocation7 + $0x3d4] sm:$0xf0]  ;;  %v4447_v53 = vor.u32 %v5039_v38, %v4446_v15 }
 0x2bd   :  { %v2154_v49 = vadd.f32 %v2150_v44, %v2134_v28  ;;  %v4302_v28 = vld [vmem:[#allocation7 + $0xa8] sm:$0xf]  ;;  %v4703_v35 = vor.u32 %v5103_v27, %v4702_v37  ;;  %v5099_v62 = vld [vmem:[#allocation7 + $0x3b4] sm:$0xf0]  ;;  %v4431_v43 = vor.u32 %v5035_v60, %v4430_v31 }
 0x2be   :  { %v2155_v50 = vmul.f32 0.7978846, %v2151_v45  ;;  %v2156_v51 = vmul.f32 0.7978846, %v2152_v46  ;;  %v2157_v52 = vmul.f32 0.7978846, %v2153_v47  ;;  %v4303_v33 = vor.u32 %v5003_v29, %v4302_v28 }
 0x2bf   :  { %v2158_v54 = vmul.f32 0.7978846, %v2154_v49  ;;  %v4686_v39 = vld [vmem:[#allocation7 + $0x3a8] sm:$0xf]  ;;  %v4999_v45 = vld [vmem:[#allocation7 + $0x94] sm:$0xf0]  ;;  %v4559_v46 = vor.u32 %v5067_v36, %v4558_v61 }
 0x2c0   :  { %5120 = vtanh.f32 %v2155_v50  ;;  %v4286_v44 = vld [vmem:[#allocation7 + $0x88] sm:$0xf]  ;;  %v5031_v49 = vld [vmem:[#allocation7 + $0x194] sm:$0xf0]  ;;  %v4687_v50 = vor.u32 %v5099_v62, %v4686_v39  ;;  %v4336_v39 = vld [vmem:[#allocation7 + $0xf8] sm:$0xf0] }
 0x2c1   :  { %5122 = vtanh.f32 %v2156_v51  ;;  %v4414_v47 = vld [vmem:[#allocation7 + $0x188] sm:$0xf]  ;;  %v5055_v14 = vld [vmem:[#allocation7 + $0x254] sm:$0xf0] }
 0x2c2   :  { %5124 = vtanh.f32 %v2157_v52  ;;  %v4542_v51 = vld [vmem:[#allocation7 + $0x288] sm:$0xf]  ;;  %v5063_v52 = vld [vmem:[#allocation7 + $0x294] sm:$0xf0]  ;;  %v4511_v15 = vor.u32 %v5055_v14, %v4510_v13  ;;  %v4432_v13 = vld [vmem:[#allocation7 + $0x1b8] sm:$0xf0] }
 0x2c3   :  { %5126 = vtanh.f32 %v2158_v54  ;;  %v4287_v54 = vor.u32 %v4999_v45, %v4286_v44  ;;  %v4543_v1 = vor.u32 %v5063_v52, %v4542_v51  ;;  %v5087_v20 = vld [vmem:[#allocation7 + $0x354] sm:$0xf0]  ;;  %v4366_v38 = vld [vmem:[#allocation7 + $0x128] sm:$0xf]  ;;  %v5041_v44 = vld [vmem:[#allocation7 + $0x1ec] sm:$0xf] }
 0x2c4   :  { %v4622_v37 = vld [vmem:[#allocation7 + $0x328] sm:$0xf]  ;;  %v4983_v29 = vld [vmem:[#allocation7 + $0x14] sm:$0xf0]  ;;  %v4464_v45 = vld [vmem:[#allocation7 + $0x1f8] sm:$0xf0] }
 0x2c5   :  { %v4222_v28 = vld [vmem:[#allocation7 + $0x8] sm:$0xf]  ;;  %v5015_v60 = vld [vmem:[#allocation7 + $0x114] sm:$0xf0]  ;;  %v5065_v14 = vld [vmem:[#allocation7 + $0x2ac] sm:$0xf] }
 0x2c6   :  { %v5121_v56 = vpop.eup %5120  ;;  %v4350_v31 = vld [vmem:[#allocation7 + $0x108] sm:$0xf]  ;;  %v5047_v36 = vld [vmem:[#allocation7 + $0x214] sm:$0xf0] }
 0x2c7   :  { %v5123_v58 = vpop.eup %5122  ;;  %v2163_v63 = vadd.f32 1.0, %v5121_v56  ;;  %v4670_v56 = vld [vmem:[#allocation7 + $0x388] sm:$0xf]  ;;  %v4351_v51 = vor.u32 %v5015_v60, %v4350_v31  ;;  %v4993_v31 = vld [vmem:[#allocation7 + $0x6c] sm:$0xf] }
 0x2c8   :  { %v5125_v48 = vpop.eup %5124  ;;  %v2164_v2 = vadd.f32 1.0, %v5123_v58  ;;  %v5095_v58 = vld [vmem:[#allocation7 + $0x394] sm:$0xf0]  ;;  %v4272_v60 = vld [vmem:[#allocation7 + $0x78] sm:$0xf0] }
 0x2c9   :  { %v5127_v41 = vpop.eup %5126  ;;  %v2167_v4 = vmul.f32 %v2163_v63, %v2135_v59  ;;  %v2165_v42 = vadd.f32 1.0, %v5125_v48  ;;  %v4415_v59 = vor.u32 %v5031_v49, %v4414_v47  ;;  %v4270_v63 = vld [vmem:[#allocation7 + $0x68] sm:$0xf]  ;;  %v5079_v47 = vld [vmem:[#allocation7 + $0x314] sm:$0xf0] }
 0x2ca   :  { %v2168_v8 = vmul.f32 %v2164_v2, %v2136_v16  ;;  %v2166_v10 = vadd.f32 1.0, %v5127_v41  ;;  %v4398_v48 = vld [vmem:[#allocation7 + $0x168] sm:$0xf]  ;;  %v5027_v16 = vld [vmem:[#allocation7 + $0x174] sm:$0xf0]  ;;  %v4671_v2 = vor.u32 %v5095_v58, %v4670_v56  ;;  %v4271_v41 = vor.u32 %v4995_v0, %v4270_v63 }
 0x2cb   :  { %v5422_v17 = vpack.c.bf16 %v2167_v4, %v2167_v4  ;;  %v2169_v18 = vmul.f32 %v2165_v42, %v2137_v5  ;;  %v4654_v4 = vld [vmem:[#allocation7 + $0x368] sm:$0xf]  ;;  %v5091_v5 = vld [vmem:[#allocation7 + $0x374] sm:$0xf0]  ;;  %v4399_v42 = vor.u32 %v5027_v16, %v4398_v48  ;;  %v5073_v49 = vld [vmem:[#allocation7 + $0x2ec] sm:$0xf] }
 0x2cc   :  { %v5424_v32 = vpack.c.bf16 %v2168_v8, %v2168_v8  ;;  %v2170_v57 = vmul.f32 %v2166_v10, %v2138_v9  ;;  %v4527_v8 = vor.u32 %v5059_v3, %v4526_v34  ;;  %v4382_v9 = vld [vmem:[#allocation7 + $0x148] sm:$0xf]  ;;  %v5023_v10 = vld [vmem:[#allocation7 + $0x154] sm:$0xf0]  ;;  %v4720_v56 = vld [vmem:[#allocation7 + $0x3f8] sm:$0xf0] }
 0x2cd   :  { %2955 = vmatmul.bf16.vlgmr.msra.gmra.mxu0 %v5422_v17  ;;  %v5427_v22 = vpack.c.bf16 %v2169_v18, %v2169_v18  ;;  %v4255_v18 = vor.u32 %v4991_v7, %v4254_v6  ;;  %v4383_v40 = vor.u32 %v5023_v10, %v4382_v9  ;;  %v4320_v48 = vld [vmem:[#allocation7 + $0xd8] sm:$0xf0]  ;;  %v5037_v16 = vld [vmem:[#allocation7 + $0x1cc] sm:$0xf] }
 0x2ce   :  { %2968 = vmatmul.bf16.vlgmr.msra.gmra.mxu1 %v5424_v32  ;;  %v5430_v55 = vpack.c.bf16 %v2170_v57, %v2170_v57  ;;  %3051 = vmatpush.bf16.msra.mxu0 %v4335_v12  ;;  %v4655_v12 = vor.u32 %v5091_v5, %v4654_v4  ;;  %v4238_v57 = vld [vmem:[#allocation7 + $0x28] sm:$0xf]  ;;  %v4448_v34 = vld [vmem:[#allocation7 + $0x1d8] sm:$0xf0]  ;;  %v5069_v3 = vld [vmem:[#allocation7 + $0x2cc] sm:$0xf] }
 0x2cf   :  { %2981 = vmatmul.bf16.vlgmr.msra.gmra.mxu2 %v5427_v22  ;;  %3064 = vmatpush.bf16.msra.mxu1 %v4463_v19  ;;  %v4638_v19 = vld [vmem:[#allocation7 + $0x348] sm:$0xf]  ;;  %v5101_v4 = vld [vmem:[#allocation7 + $0x3cc] sm:$0xf]  ;;  %v4704_v5 = vld [vmem:[#allocation7 + $0x3d8] sm:$0xf0]  ;;  %v4451_v6 = vor.u32 %v5037_v16, %v4448_v34 }
 0x2d0   :  { %2994 = vmatmul.bf16.vlgmr.msra.gmra.mxu3 %v5430_v55  ;;  %3077 = vmatpush.bf16.msra.mxu2 %v4591_v21  ;;  %v4987_v21 = vld [vmem:[#allocation7 + $0x34] sm:$0xf0]  ;;  %v4639_v24 = vor.u32 %v5087_v20, %v4638_v19  ;;  %v4304_v9 = vld [vmem:[#allocation7 + $0xb8] sm:$0xf0]  ;;  %v5033_v10 = vld [vmem:[#allocation7 + $0x1ac] sm:$0xf] }
 0x2d1   :  { %3090 = vmatpush.bf16.msra.mxu3 %v4719_v23  ;;  %v5019_v23 = vld [vmem:[#allocation7 + $0x134] sm:$0xf0]  ;;  %v4239_v27 = vor.u32 %v4987_v21, %v4238_v57  ;;  %v5097_v19 = vld [vmem:[#allocation7 + $0x3ac] sm:$0xf]  ;;  %v4688_v20 = vld [vmem:[#allocation7 + $0x3b8] sm:$0xf0]  ;;  %v4435_v57 = vor.u32 %v5033_v10, %v4432_v13 }
 0x2d2   :  { %3052 = vmatpush.bf16.msra.mxu0 %v4319_v26  ;;  %v5051_v26 = vld [vmem:[#allocation7 + $0x234] sm:$0xf0]  ;;  %v4240_v16 = vld [vmem:[#allocation7 + $0x38] sm:$0xf0] }
 0x2d3   :  { %3065 = vmatpush.bf16.msra.mxu1 %v4447_v53  ;;  %v5083_v53 = vld [vmem:[#allocation7 + $0x334] sm:$0xf0]  ;;  %v4495_v61 = vor.u32 %v5051_v26, %v4494_v25  ;;  %v4416_v25 = vld [vmem:[#allocation7 + $0x198] sm:$0xf0]  ;;  %v5061_v26 = vld [vmem:[#allocation7 + $0x28c] sm:$0xf] }
 0x2d4   :  { %3078 = vmatpush.bf16.msra.mxu2 %v4575_v30  ;;  %v4367_v30 = vor.u32 %v5019_v23, %v4366_v38  ;;  %v4623_v62 = vor.u32 %v5083_v53, %v4622_v37  ;;  %v4288_v38 = vld [vmem:[#allocation7 + $0x98] sm:$0xf0]  ;;  %v5029_v23 = vld [vmem:[#allocation7 + $0x18c] sm:$0xf] }
 0x2d5   :  { %3091 = vmatpush.bf16.msra.mxu3 %v4703_v35  ;;  %v4478_v35 = vld [vmem:[#allocation7 + $0x208] sm:$0xf]  ;;  %v4544_v37 = vld [vmem:[#allocation7 + $0x298] sm:$0xf0] }
 0x2d6   :  { %3053 = vmatpush.bf16.msra.mxu0 %v4303_v33  ;;  %v5009_v33 = vld [vmem:[#allocation7 + $0xec] sm:$0xf]  ;;  %v4479_v58 = vor.u32 %v5047_v36, %v4478_v35  ;;  %v4672_v53 = vld [vmem:[#allocation7 + $0x398] sm:$0xf0] }
 0x2d7   :  { %3066 = vmatpush.bf16.msra.mxu1 %v4431_v43  ;;  %v4606_v43 = vld [vmem:[#allocation7 + $0x308] sm:$0xf]  ;;  %v4339_v52 = vor.u32 %v5009_v33, %v4336_v39  ;;  %v5025_v35 = vld [vmem:[#allocation7 + $0x16c] sm:$0xf]  ;;  %v4400_v36 = vld [vmem:[#allocation7 + $0x178] sm:$0xf0] }
 0x2d8   :  { %3079 = vmatpush.bf16.msra.mxu2 %v4559_v46  ;;  %v4223_v46 = vor.u32 %v4983_v29, %v4222_v28  ;;  %v4607_v63 = vor.u32 %v5079_v47, %v4606_v43  ;;  %v4419_v29 = vor.u32 %v5029_v23, %v4416_v25  ;;  %v5057_v33 = vld [vmem:[#allocation7 + $0x26c] sm:$0xf]  ;;  %v4528_v39 = vld [vmem:[#allocation7 + $0x278] sm:$0xf0]  ;;  %v2303_v23 = vperm.slane %v5406_v11, 3 }
 0x2d9   :  { %3092 = vmatpush.bf16.msra.mxu3 %v4687_v50  ;;  %v4592_v50 = vld [vmem:[#allocation7 + $0x2f8] sm:$0xf0]  ;;  %v4989_v47 = vld [vmem:[#allocation7 + $0x4c] sm:$0xf] }
 0x2da   :  { %3054 = vmatpush.bf16.msra.mxu0 %v4287_v54  ;;  %v5105_v54 = vld [vmem:[#allocation7 + $0x3ec] sm:$0xf]  ;;  %v4595_v0 = vor.u32 %v5073_v49, %v4592_v50  ;;  %v4656_v43 = vld [vmem:[#allocation7 + $0x378] sm:$0xf0] }
 0x2db   :  { %3067 = vmatpush.bf16.msra.mxu1 %v4415_v59  ;;  %v4467_v59 = vor.u32 %v5041_v44, %v4464_v45  ;;  %v4275_v44 = vor.u32 %v4993_v31, %v4272_v60  ;;  %v4403_v45 = vor.u32 %v5025_v35, %v4400_v36  ;;  %v4256_v49 = vld [vmem:[#allocation7 + $0x58] sm:$0xf0]  ;;  %v5021_v50 = vld [vmem:[#allocation7 + $0x14c] sm:$0xf] }
 0x2dc   :  { %3080 = vmatpush.bf16.msra.mxu2 %v4543_v1  ;;  %v5005_v1 = vld [vmem:[#allocation7 + $0xcc] sm:$0xf]  ;;  %v4224_v10 = vld [vmem:[#allocation7 + $0x18] sm:$0xf0] }
 0x2dd   :  { %3093 = vmatpush.bf16.msra.mxu3 %v4671_v2  ;;  %3007 = vmatmul.bf16.vlgmr.msrb.gmra.mxu0 %v5422_v17  ;;  %v4723_v2 = vor.u32 %v5105_v54, %v4720_v56  ;;  %v5053_v54 = vld [vmem:[#allocation7 + $0x24c] sm:$0xf]  ;;  %v4512_v56 = vld [vmem:[#allocation7 + $0x258] sm:$0xf0] }
 0x2de   :  { %3020 = vmatmul.bf16.vlgmr.msrb.gmra.mxu1 %v5424_v32  ;;  %3055 = vmatpush.bf16.msra.mxu0 %v4271_v41  ;;  %v4576_v41 = vld [vmem:[#allocation7 + $0x2d8] sm:$0xf0] }
 0x2df   :  { %3033 = vmatmul.bf16.vlgmr.msrb.gmra.mxu2 %v5427_v22  ;;  %3068 = vmatpush.bf16.msra.mxu1 %v4399_v42  ;;  %v4323_v42 = vor.u32 %v5005_v1, %v4320_v48  ;;  %v4579_v7 = vor.u32 %v5069_v3, %v4576_v41  ;;  %v4515_v1 = vor.u32 %v5053_v54, %v4512_v56  ;;  %v4985_v48 = vld [vmem:[#allocation7 + $0x2c] sm:$0xf]  ;;  %v4368_v3 = vld [vmem:[#allocation7 + $0x138] sm:$0xf0] }
 0x2e0   :  { %3046 = vmatmul.bf16.vlgmr.msrb.gmra.mxu3 %v5430_v55  ;;  %3081 = vmatpush.bf16.msra.mxu2 %v4527_v8  ;;  %v5001_v8 = vld [vmem:[#allocation7 + $0xac] sm:$0xf] }
 0x2e1   :  { %3094 = vmatpush.bf16.msra.mxu3 %v4655_v12  ;;  %v4707_v12 = vor.u32 %v5101_v4, %v4704_v5  ;;  %v5049_v41 = vld [vmem:[#allocation7 + $0x22c] sm:$0xf]  ;;  %v4496_v4 = vld [vmem:[#allocation7 + $0x238] sm:$0xf0] }
 0x2e2   :  { %3056 = vmatpush.bf16.msra.mxu0 %v4255_v18  ;;  %v4560_v18 = vld [vmem:[#allocation7 + $0x2b8] sm:$0xf0]  ;;  %v5081_v5 = vld [vmem:[#allocation7 + $0x32c] sm:$0xf] }
 0x2e3   :  { %3069 = vmatpush.bf16.msra.mxu1 %v4383_v40  ;;  %v4307_v40 = vor.u32 %v5001_v8, %v4304_v9  ;;  %v4563_v21 = vor.u32 %v5065_v14, %v4560_v18  ;;  %v4499_v8 = vor.u32 %v5049_v41, %v4496_v4  ;;  %v4981_v9 = vld [vmem:[#allocation7 + $0xc] sm:$0xf]  ;;  %v4352_v14 = vld [vmem:[#allocation7 + $0x118] sm:$0xf0] }
 0x2e4   :  { %3082 = vmatpush.bf16.msra.mxu2 %v4511_v15  ;;  %v4997_v15 = vld [vmem:[#allocation7 + $0x8c] sm:$0xf] }
 0x2e5   :  { %3095 = vmatpush.bf16.msra.mxu3 %v4639_v24  ;;  %v4691_v24 = vor.u32 %v5097_v19, %v4688_v20  ;;  %v4291_v28 = vor.u32 %v4997_v15, %v4288_v38  ;;  %v5045_v18 = vld [vmem:[#allocation7 + $0x20c] sm:$0xf]  ;;  %v4480_v19 = vld [vmem:[#allocation7 + $0x218] sm:$0xf0] }
 0x2e6   :  { %3057 = vmatpush.bf16.msra.mxu0 %v4239_v27  ;;  %v5093_v27 = vld [vmem:[#allocation7 + $0x38c] sm:$0xf]  ;;  %v4483_v15 = vor.u32 %v5045_v18, %v4480_v19 }
 0x2e7   :  { %3070 = vmatpush.bf16.msra.mxu1 %v4367_v30  ;;  %v4547_v30 = vor.u32 %v5061_v26, %v4544_v37  ;;  %v5077_v20 = vld [vmem:[#allocation7 + $0x30c] sm:$0xf] }
 0x2e8   :  { %3083 = vmatpush.bf16.msra.mxu2 %v4495_v61  ;;  %v4675_v61 = vor.u32 %v5093_v27, %v4672_v53 }
 0x2e9   :  { %3096 = vmatpush.bf16.msra.mxu3 %v4623_v62  ;;  %v5089_v62 = vld [vmem:[#allocation7 + $0x36c] sm:$0xf] }
 0x2ea   :  { %3058 = vmatpush.bf16.msra.mxu0 %v4223_v46  ;;  %v4531_v46 = vor.u32 %v5057_v33, %v4528_v39 }
 0x2eb   :  { %3071 = vmatpush.bf16.msra.mxu1 %v4351_v51  ;;  %v4659_v51 = vor.u32 %v5089_v62, %v4656_v43 }
 0x2ec   :  { %3084 = vmatpush.bf16.msra.mxu2 %v4479_v58  ;;  %v5085_v58 = vld [vmem:[#allocation7 + $0x34c] sm:$0xf] }
 0x2ed   :  { %3097 = vmatpush.bf16.msra.mxu3 %v4607_v63  ;;  %3059 = vmatmul.bf16.vlgmr.msra.gmra.mxu0 %v5422_v17  ;;  %v4259_v63 = vor.u32 %v4989_v47, %v4256_v49 }
 0x2ee   :  { %3103 = vmatpush.bf16.msrb.mxu0 %v4339_v52  ;;  %3072 = vmatmul.bf16.vlgmr.msra.gmra.mxu1 %v5424_v32  ;;  %v4384_v52 = vld [vmem:[#allocation7 + $0x158] sm:$0xf0] }
 0x2ef   :  { %3116 = vmatpush.bf16.msrb.mxu1 %v4467_v59  ;;  %3085 = vmatmul.bf16.vlgmr.msra.gmra.mxu2 %v5427_v22  ;;  %v4640_v59 = vld [vmem:[#allocation7 + $0x358] sm:$0xf0] }
 0x2f0   :  { %3129 = vmatpush.bf16.msrb.mxu2 %v4595_v0  ;;  %3098 = vmatmul.bf16.vlgmr.msra.gmra.mxu3 %v5430_v55  ;;  %v4387_v0 = vor.u32 %v5021_v50, %v4384_v52  ;;  %v4643_v34 = vor.u32 %v5085_v58, %v4640_v59  ;;  %v5129_v50 = vld [vmem:[#allocation8 + $0x8] sm:$0xff]  ;;  %v5130_v52 = vld [vmem:[#allocation8 + $0x10] sm:$0xff]  ;;  %v5131_v59 = vld [vmem:[#allocation8 + $0x18] sm:$0xff] }
 0x2f1   :  { %3142 = vmatpush.bf16.msrb.mxu3 %v4723_v2  ;;  %v5017_v2 = vld [vmem:[#allocation7 + $0x12c] sm:$0xf]  ;;  %v2305_v54 = vperm.slane %v5130_v52, 3 }
 0x2f2   :  { %3104 = vmatpush.bf16.msrb.mxu0 %v4323_v42  ;;  %v4624_v42 = vld [vmem:[#allocation7 + $0x338] sm:$0xf0] }
 0x2f3   :  { %3117 = vmatpush.bf16.msrb.mxu1 %v4451_v6  ;;  %v4243_v6 = vor.u32 %v4985_v48, %v4240_v16  ;;  %v4627_v13 = vor.u32 %v5081_v5, %v4624_v42 }
 0x2f4   :  { %3130 = vmatpush.bf16.msrb.mxu2 %v4579_v7  ;;  %v4371_v7 = vor.u32 %v5017_v2, %v4368_v3 }
 0x2f5   :  { %3143 = vmatpush.bf16.msrb.mxu3 %v4707_v12  ;;  %v5013_v12 = vld [vmem:[#allocation7 + $0x10c] sm:$0xf] }
 0x2f6   :  { %3105 = vmatpush.bf16.msrb.mxu0 %v4307_v40  ;;  %v4608_v40 = vld [vmem:[#allocation7 + $0x318] sm:$0xf0] }
 0x2f7   :  { %3118 = vmatpush.bf16.msrb.mxu1 %v4435_v57  ;;  %v4227_v57 = vor.u32 %v4981_v9, %v4224_v10  ;;  %v4611_v38 = vor.u32 %v5077_v20, %v4608_v40 }
 0x2f8   :  { %3131 = vmatpush.bf16.msrb.mxu2 %v4563_v21  ;;  %v4355_v21 = vor.u32 %v5013_v12, %v4352_v14 }
 0x2f9   :  { %3144 = vmatpush.bf16.msrb.mxu3 %v4691_v24 }
 0x2fa   :  { %3106 = vmatpush.bf16.msrb.mxu0 %v4291_v28 }
 0x2fb   :  { %3119 = vmatpush.bf16.msrb.mxu1 %v4419_v29 }
 0x2fc   :  { %3132 = vmatpush.bf16.msrb.mxu2 %v4547_v30 }
 0x2fd   :  { %3145 = vmatpush.bf16.msrb.mxu3 %v4675_v61 }
 0x2fe   :  { %3107 = vmatpush.bf16.msrb.mxu0 %v4275_v44 }
 0x2ff   :  { %3120 = vmatpush.bf16.msrb.mxu1 %v4403_v45 }
 0x300   :  { %3133 = vmatpush.bf16.msrb.mxu2 %v4531_v46 }
 0x301   :  { %3146 = vmatpush.bf16.msrb.mxu3 %v4659_v51  ;;  %v2304_v51 = vperm.slane %v5129_v50, 3 }
 0x302   :  { %3108 = vmatpush.bf16.msrb.mxu0 %v4259_v63  ;;  %v2306_v63 = vperm.slane %v5131_v59, 3 }
 0x303   :  { %3121 = vmatpush.bf16.msrb.mxu1 %v4387_v0 }
 0x304   :  { %3134 = vmatpush.bf16.msrb.mxu2 %v4515_v1 }
 0x305   :  { %3147 = vmatpush.bf16.msrb.mxu3 %v4643_v34 }
 0x306   :  { %3109 = vmatpush.bf16.msrb.mxu0 %v4243_v6 }
 0x307   :  { %3122 = vmatpush.bf16.msrb.mxu1 %v4371_v7 }
 0x308   :  { %3135 = vmatpush.bf16.msrb.mxu2 %v4499_v8 }
 0x309   :  { %3148 = vmatpush.bf16.msrb.mxu3 %v4627_v13 }
 0x30a   :  { %3110 = vmatpush.bf16.msrb.mxu0 %v4227_v57 }
 0x30b   :  { %3123 = vmatpush.bf16.msrb.mxu1 %v4355_v21 }
 0x30c   :  { %3136 = vmatpush.bf16.msrb.mxu2 %v4483_v15 }
 0x30d   :  { %3149 = vmatpush.bf16.msrb.mxu3 %v4611_v38  ;;  %3111 = vmatmul.bf16.vlgmr.msrb.gmra.mxu0 %v5422_v17 }
 0x30e   :  { %3124 = vmatmul.bf16.vlgmr.msrb.gmra.mxu1 %v5424_v32 }
 0x30f   :  { %3137 = vmatmul.bf16.vlgmr.msrb.gmra.mxu2 %v5427_v22 }
 0x310   :  { %3150 = vmatmul.bf16.vlgmr.msrb.gmra.mxu3 %v5430_v55 }
 0x34a   :  { %v2956_v24 = vpop.f32.mrf.mxu0 }
 0x34b   :  { %v2957_v25 = vadd.f32 %v2956_v24, %v2303_v23  ;;  %v2969_v26 = vpop.f32.mrf.mxu1 }
 0x34d   :  { %v2970_v37 = vadd.f32 %v2969_v26, %v2957_v25 }
 0x352   :  { %v2982_v27 = vpop.f32.mrf.mxu2  ;;  %v2958_v53 = vpop.f32.mrf.mxu0 }
 0x353   :  { %v2983_v28 = vadd.f32 %v2982_v27, %v2970_v37  ;;  %v2995_v29 = vpop.f32.mrf.mxu3  ;;  %v2971_v30 = vpop.f32.mrf.mxu1 }
 0x355   :  { %v2996_v31 = vadd.f32 %v2995_v29, %v2983_v28 }
 0x35a   :  { %v2984_v60 = vpop.f32.mrf.mxu2  ;;  %v3008_v17 = vpop.f32.mrf.mxu0 }
 0x35b   :  { %v2997_v35 = vpop.f32.mrf.mxu3  ;;  %v3021_v32 = vpop.f32.mrf.mxu1  ;;  %v3009_v56 = vadd.f32 %v3008_v17, %v2304_v51 }
 0x35d   :  { %v3022_v0 = vadd.f32 %v3021_v32, %v3009_v56 }
 0x362   :  { %v3034_v61 = vpop.f32.mrf.mxu2  ;;  %v3010_v22 = vpop.f32.mrf.mxu0 }
 0x363   :  { %v3047_v36 = vpop.f32.mrf.mxu3  ;;  %v3023_v55 = vpop.f32.mrf.mxu1  ;;  %v3035_v16 = vadd.f32 %v3034_v61, %v3022_v0 }
 0x365   :  { %v3048_v41 = vadd.f32 %v3047_v36, %v3035_v16 }
 0x367   :  { %v3159_v10 = vrot.slane %v3048_v41, 6 }
 0x369   :  { %v3162_v18 = vsel %vm2068_vm0, %v2996_v31, %v3159_v10 }
 0x36a   :  { %v3036_v33 = vpop.f32.mrf.mxu2  ;;  %v3060_v39 = vpop.f32.mrf.mxu0 }
 0x36b   :  { %v3049_v11 = vpop.f32.mrf.mxu3  ;;  %v3073_v62 = vpop.f32.mrf.mxu1  ;;  %v3061_v58 = vadd.f32 %v3060_v39, %v2305_v54 }
 0x36d   :  { %v3074_v2 = vadd.f32 %v3073_v62, %v3061_v58 }
 0x372   :  { %v3086_v43 = vpop.f32.mrf.mxu2  ;;  %v3062_v45 = vpop.f32.mrf.mxu0 }
 0x373   :  { %v3099_v44 = vpop.f32.mrf.mxu3  ;;  %v3075_v46 = vpop.f32.mrf.mxu1  ;;  %v3087_v3 = vadd.f32 %v3086_v43, %v3074_v2 }
 0x375   :  { %v3100_v42 = vadd.f32 %v3099_v44, %v3087_v3 }
 0x377   :  { %v3160_v13 = vrot.slane %v3100_v42, 4 }
 0x37a   :  { %v3088_v47 = vpop.f32.mrf.mxu2 }
 0x37b   :  { %v3101_v49 = vpop.f32.mrf.mxu3 }
 0x38a   :  { %v3112_v1 = vpop.f32.mrf.mxu0 }
 0x38b   :  { %v3125_v48 = vpop.f32.mrf.mxu1  ;;  %v3113_v34 = vadd.f32 %v3112_v1, %v2306_v63 }
 0x38d   :  { %v3126_v4 = vadd.f32 %v3125_v48, %v3113_v34 }
 0x392   :  { %v3138_v5 = vpop.f32.mrf.mxu2  ;;  %v3114_v8 = vpop.f32.mrf.mxu0 }
 0x393   :  { %v3139_v6 = vadd.f32 %v3138_v5, %v3126_v4  ;;  %v3151_v7 = vpop.f32.mrf.mxu3  ;;  %v3127_v9 = vpop.f32.mrf.mxu1 }
 0x395   :  { %v3152_v12 = vadd.f32 %v3151_v7, %v3139_v6 }
 0x397   :  { %v3161_v14 = vrot.slane %v3152_v12, 2 }
 0x399   :  { %v3164_v19 = vsel %vm3163_vm5, %v3160_v13, %v3161_v14 }
 0x39a   :  { %v3140_v20 = vpop.f32.mrf.mxu2  ;;  %v3166_v40 = vsel %vm3165_vm6, %v3162_v18, %v3164_v19 }
 0x39b   :  { %v3153_v57 = vpop.f32.mrf.mxu3  ;;  %3168 = vst [vmem:[#allocation10] sm:$0xff] %v3166_v40 }
 0x39c   :  { %3179 = dma.vmem_to_hbm [thread:$0]  %s3175_s3, 128, %s3177_s11, [#allocation4]  }
 0x39d   :  { %5258 = dma.done.wait [#allocation4], 128  }
 0x39e   :  { %5259 = vsyncadd [#allocation4], 4294967168 }
 0x39f   :  { %3184 = vsyncpa [#allocation3], 1 }
 0x3a0   :  { %3185 = vsyncpa [#allocation6], 1 }
 0x3a1   :  { %3186 = vsyncpa [#allocation9], 1 }
 0x3a2   :  { %3187 = vsyncpa [#allocation4], 1 }

</bundles_post_ra>
